<compile_context>
chip_gen: v7x
topology: tpu7x:2x2x1
jax: 0.10.0
libtpu: 0.0.40
codegen_flags: <defaults>
</compile_context>

<pallas_src>
import functools
import math

import jax
import jax.numpy as jnp
from jax import lax
from jax.experimental import pallas as pl
from jax.experimental.pallas import tpu as pltpu

CFG = dict(vocab_size=256, context_length=16, emb_dim=128, n_heads=4,
           n_layers=2, drop_rate=0.0, qkv_bias=False)

_SQRT_2_OVER_PI = math.sqrt(2.0 / math.pi)
_NEG_BIG = -1e30   # finite mask value: robust even for fully-masked rows


# ---------------------------------------------------------------------------
# In-kernel math helpers (traced inside the Pallas kernel)
# ---------------------------------------------------------------------------
def _layernorm(v, scale, shift, eps=1e-5):
    mean = jnp.mean(v, axis=-1, keepdims=True)
    c = v - mean
    var = jnp.mean(c * c, axis=-1, keepdims=True)            # unbiased=False
    return c * lax.rsqrt(var + eps) * scale + shift           # rsqrt -> EUP slot


def _gelu(x):
    return 0.5 * x * (1.0 + jnp.tanh(_SQRT_2_OVER_PI * (x + 0.044715 * x ** 3)))


# ---------------------------------------------------------------------------
# Per-layer kernel body.  grid = (n_layers,); residual carried in VMEM scratch.
# ---------------------------------------------------------------------------
def gpt_layer_kernel(x_ref,
                     ln1s_ref, ln1b_ref, wqkv_ref, wo_ref, bo_ref,
                     ln2s_ref, ln2b_ref, w1_ref, b1_ref, w2_ref, b2_ref,
                     lnfs_ref, lnfb_ref, wout_ref,
                     o_ref, x_acc, *, num_heads, batch, seq):
    l = pl.program_id(0)

    @pl.when(l == 0)
    def _():                                   # load embeddings into the residual
        x_acc[...] = x_ref[...]

    x = x_acc[...]                             # (N, E) float32, N = B*T
    N, E = x.shape
    dh = E // num_heads
    scale = 1.0 / math.sqrt(dh)

    # Causal mask (True => future token), reused for every head.
    row = lax.broadcasted_iota(jnp.int32, (1, seq, seq), 1)
    col = lax.broadcasted_iota(jnp.int32, (1, seq, seq), 2)
    causal = col > row

    # ---- norm1 + causal multi-head attention ----
    h1 = _layernorm(x, ln1s_ref[...], ln1b_ref[...]).astype(jnp.bfloat16)
    # one lane-dense fused QKV matmul: 128-deep contraction, 384 output lanes
    qkv = jnp.dot(h1, wqkv_ref[...], preferred_element_type=jnp.float32)  # (N, 3E)
    q_all = qkv[:, :E]
    k_all = qkv[:, E:2 * E]
    v_all = qkv[:, 2 * E:3 * E]

    ctx_heads = []
    for hh in range(num_heads):                # static loop over H=4 heads
        sl = slice(hh * dh, (hh + 1) * dh)
        q3 = q_all[:, sl].reshape(batch, seq, dh).astype(jnp.bfloat16)
        k3 = k_all[:, sl].reshape(batch, seq, dh).astype(jnp.bfloat16)
        v3 = v_all[:, sl].reshape(batch, seq, dh).astype(jnp.bfloat16)

        s = jnp.einsum('btd,bsd->bts', q3, k3,
                       preferred_element_type=jnp.float32) * scale
        s = jnp.where(causal, _NEG_BIG, s)
        m = jnp.max(s, axis=-1, keepdims=True)
        p = jnp.exp(s - m)
        denom = jnp.sum(p, axis=-1, keepdims=True)
        w = p / denom                           # exact softmax normalization

        ctx = jnp.einsum('bts,bsd->btd', w.astype(jnp.bfloat16), v3,
                         preferred_element_type=jnp.float32)
        ctx_heads.append(ctx.reshape(N, dh))

    # one-time lane concat of head contexts, then a single lane-dense out-proj
    ctx_all = jnp.concatenate(ctx_heads, axis=-1).astype(jnp.bfloat16)   # (N, E)
    attn = jnp.dot(ctx_all, wo_ref[...], preferred_element_type=jnp.float32)
    x = x + attn + bo_ref[...]                  # residual 1 (+ out_proj bias)

    # ---- norm2 + feed-forward (GELU) ----
    h2 = _layernorm(x, ln2s_ref[...], ln2b_ref[...]).astype(jnp.bfloat16)
    f = jnp.dot(h2, w1_ref[...], preferred_element_type=jnp.float32) + b1_ref[...]
    f = _gelu(f).astype(jnp.bfloat16)           # GELU in f32 for parity with torch
    f = jnp.dot(f, w2_ref[...], preferred_element_type=jnp.float32) + b2_ref[...]
    x = x + f                                   # residual 2

    x_acc[...] = x                              # carry residual to next layer

    # ---- final norm + LM head (last grid step only) ----
    @pl.when(l == pl.num_programs(0) - 1)
    def _():
        hf = _layernorm(x, lnfs_ref[...], lnfb_ref[...]).astype(jnp.bfloat16)
        o_ref[...] = jnp.dot(hf, wout_ref[...], preferred_element_type=jnp.float32)


# ---------------------------------------------------------------------------
# Wrapper: weight packing (layer-stack, fuse QKV, cast matmul weights to bf16)
# ---------------------------------------------------------------------------
def pack_params(params, cfg):
    blocks = params['blocks']

    def stack(key, dtype=jnp.float32):
        return jnp.stack([b[key] for b in blocks]).astype(dtype)

    wqkv = jnp.stack([jnp.concatenate([b['wq'], b['wk'], b['wv']], axis=-1)
                      for b in blocks]).astype(jnp.bfloat16)       # (L, E, 3E)

    return dict(
        tok_emb=params['tok_emb'],
        pos_emb=params['pos_emb'],
        ln1_s=stack('ln1_s'), ln1_b=stack('ln1_b'),
        wqkv=wqkv,
        wo=stack('wo', jnp.bfloat16), bo=stack('bo'),
        ln2_s=stack('ln2_s'), ln2_b=stack('ln2_b'),
        w1=stack('w1', jnp.bfloat16), b1=stack('b1'),
        w2=stack('w2', jnp.bfloat16), b2=stack('b2'),
        final_ln_s=params['final_ln_s'], final_ln_b=params['final_ln_b'],
        w_out=params['w_out'].astype(jnp.bfloat16),
    )


@jax.jit
def gpt_forward(in_idx, packed):
    B, T = in_idx.shape
    E = packed['tok_emb'].shape[1]
    V = packed['w_out'].shape[1]
    L = packed['wqkv'].shape[0]
    H = CFG['n_heads']
    N = B * T

    # Embedding gather + positional add (plain JAX glue; drop_emb = identity).
    x = packed['tok_emb'][in_idx] + packed['pos_emb'][:T][None, :, :]
    x2 = x.reshape(N, E).astype(jnp.float32)

    kern = functools.partial(gpt_layer_kernel, num_heads=H, batch=B, seq=T)

    layer3 = lambda l: (l, 0, 0)     # layer-stacked weights: block per grid step
    fixed2 = lambda l: (0, 0)        # whole-array operands, resident across grid

    in_specs = [
        pl.BlockSpec((N, E), fixed2),                     # x (embeddings)
        pl.BlockSpec((None, 1, E), layer3),               # ln1 scale
        pl.BlockSpec((None, 1, E), layer3),               # ln1 shift
        pl.BlockSpec((None, E, 3 * E), layer3),           # fused Wqkv
        pl.BlockSpec((None, E, E), layer3),               # Wout_proj
        pl.BlockSpec((None, 1, E), layer3),               # out_proj bias
        pl.BlockSpec((None, 1, E), layer3),               # ln2 scale
        pl.BlockSpec((None, 1, E), layer3),               # ln2 shift
        pl.BlockSpec((None, E, 4 * E), layer3),           # FF W1
        pl.BlockSpec((None, 1, 4 * E), layer3),           # FF b1
        pl.BlockSpec((None, 4 * E, E), layer3),           # FF W2
        pl.BlockSpec((None, 1, E), layer3),               # FF b2
        pl.BlockSpec((1, E), fixed2),                     # final norm scale
        pl.BlockSpec((1, E), fixed2),                     # final norm shift
        pl.BlockSpec((E, V), fixed2),                     # LM head
    ]

    logits = pl.pallas_call(
        kern,
        out_shape=jax.ShapeDtypeStruct((N, V), jnp.float32),
        grid_spec=pltpu.PrefetchScalarGridSpec(
            num_scalar_prefetch=0,
            grid=(L,),
            in_specs=in_specs,
            out_specs=pl.BlockSpec((N, V), fixed2),
            scratch_shapes=[pltpu.VMEM((N, E), jnp.float32)],   # residual stream
        ),
        compiler_params=pltpu.CompilerParams(
            dimension_semantics=("arbitrary",),   # layer axis is a sequential carry
            vmem_limit_bytes=64 * 1024 * 1024,    # explicit: fits v5e/v6e/v7x scoped VMEM
        ),
    )(x2,
      packed['ln1_s'], packed['ln1_b'], packed['wqkv'], packed['wo'], packed['bo'],
      packed['ln2_s'], packed['ln2_b'], packed['w1'], packed['b1'],
      packed['w2'], packed['b2'],
      packed['final_ln_s'], packed['final_ln_b'], packed['w_out'])
    return logits.reshape(B, T, V)


# ---------------------------------------------------------------------------
# Deterministic parameter init (shapes match GPTModel.__init__; Linear weights
# are stored pre-transposed as (in, out))
# ---------------------------------------------------------------------------
def init_params(key, cfg):
    E, V, C, L = cfg['emb_dim'], cfg['vocab_size'], cfg['context_length'], cfg['n_layers']
    keys = jax.random.split(key, 4 + L)

    def nrm(k, shape, std=0.02):
        return (std * jax.random.normal(k, shape)).astype(jnp.float32)

    params = dict(
        tok_emb=nrm(keys[0], (V, E)),
        pos_emb=nrm(keys[1], (C, E)),
        final_ln_s=jnp.ones((1, E), jnp.float32),
        final_ln_b=jnp.zeros((1, E), jnp.float32),
        w_out=nrm(keys[2], (E, V)),
        blocks=[],
    )
    for l in range(L):
        bk = jax.random.split(keys[4 + l], 8)
        params['blocks'].append(dict(
            ln1_s=jnp.ones((1, E), jnp.float32),
            ln1_b=jnp.zeros((1, E), jnp.float32),
            wq=nrm(bk[0], (E, E)), wk=nrm(bk[1], (E, E)), wv=nrm(bk[2], (E, E)),
            wo=nrm(bk[3], (E, E)), bo=jnp.zeros((1, E), jnp.float32),
            ln2_s=jnp.ones((1, E), jnp.float32),
            ln2_b=jnp.zeros((1, E), jnp.float32),
            w1=nrm(bk[4], (E, 4 * E)), b1=nrm(bk[5], (1, 4 * E)),
            w2=nrm(bk[6], (4 * E, E)), b2=nrm(bk[7], (1, E)),
        ))
    return params


# ---------------------------------------------------------------------------
# Pure-JAX float32 reference (exact torch semantics) for a correctness guard
# ---------------------------------------------------------------------------
def _ref_block(x, p, num_heads):
    B, T, E = x.shape
    dh = E // num_heads
    h = _layernorm(x, p['ln1_s'][0], p['ln1_b'][0])
    q = h @ p['wq']; k = h @ p['wk']; v = h @ p['wv']
    q = q.reshape(B, T, num_heads, dh).transpose(0, 2, 1, 3)
    k = k.reshape(B, T, num_heads, dh).transpose(0, 2, 1, 3)
    v = v.reshape(B, T, num_heads, dh).transpose(0, 2, 1, 3)
    s = jnp.einsum('bhtd,bhsd->bhts', q, k) / (dh ** 0.5)
    mask = jnp.triu(jnp.ones((T, T), bool), 1)
    s = jnp.where(mask, -jnp.inf, s)
    w = jax.nn.softmax(s, axis=-1)
    ctx = jnp.einsum('bhts,bhsd->bhtd', w, v).transpose(0, 2, 1, 3).reshape(B, T, E)
    x = x + ctx @ p['wo'] + p['bo'][0]
    h2 = _layernorm(x, p['ln2_s'][0], p['ln2_b'][0])
    f = _gelu(h2 @ p['w1'] + p['b1'][0]) @ p['w2'] + p['b2'][0]
    return x + f


def ref_forward(in_idx, params):
    T = in_idx.shape[1]
    x = params['tok_emb'][in_idx] + params['pos_emb'][:T][None, :, :]
    for blk in params['blocks']:
        x = _ref_block(x, blk, CFG['n_heads'])
    x = _layernorm(x, params['final_ln_s'][0], params['final_ln_b'][0])
    return x @ params['w_out']


if __name__ == "__main__":
    key = jax.random.PRNGKey(0)
    k_param, k_idx = jax.random.split(key)
    params = init_params(k_param, CFG)
    packed = pack_params(params, CFG)

    B, T = 2, CFG['context_length']   # (2, 16) token ids
    in_idx = jax.random.randint(k_idx, (B, T), 0, CFG['vocab_size'], dtype=jnp.int32)

    logits = gpt_forward(in_idx, packed)
    logits = jax.block_until_ready(logits)

    ref = ref_forward(in_idx, params)
    assert logits.shape == (B, T, CFG['vocab_size'])
    max_err = float(jnp.max(jnp.abs(logits - ref)))
    # tolerance relaxed vs f32 reference because matmul inputs are bf16 (MXU-native)
    assert jnp.allclose(logits, ref, rtol=2e-2, atol=2e-2), \
        f"mismatch vs reference (max abs err {max_err})"

    print("KERNEL_OK")
</pallas_src>

<mosaic_0001>
module attributes {stable_mosaic.version = 11 : i64} {
  func.func @gpt_layer_kernel(%arg0: i32, %arg1: memref<32x128xf32, #tpu.memory_space<vmem>>, %arg2: memref<1x1x128xf32, #tpu.memory_space<vmem>>, %arg3: memref<1x1x128xf32, #tpu.memory_space<vmem>>, %arg4: memref<1x128x384xbf16, #tpu.memory_space<vmem>>, %arg5: memref<1x128x128xbf16, #tpu.memory_space<vmem>>, %arg6: memref<1x1x128xf32, #tpu.memory_space<vmem>>, %arg7: memref<1x1x128xf32, #tpu.memory_space<vmem>>, %arg8: memref<1x1x128xf32, #tpu.memory_space<vmem>>, %arg9: memref<1x128x512xbf16, #tpu.memory_space<vmem>>, %arg10: memref<1x1x512xf32, #tpu.memory_space<vmem>>, %arg11: memref<1x512x128xbf16, #tpu.memory_space<vmem>>, %arg12: memref<1x1x128xf32, #tpu.memory_space<vmem>>, %arg13: memref<1x128xf32, #tpu.memory_space<vmem>>, %arg14: memref<1x128xf32, #tpu.memory_space<vmem>>, %arg15: memref<128x256xbf16, #tpu.memory_space<vmem>>, %arg16: memref<32x256xf32, #tpu.memory_space<vmem>>, %arg17: memref<32x128xf32, #tpu.memory_space<vmem>>) attributes {dimension_semantics = [#tpu.dimension_semantics<arbitrary>], iteration_bounds = array<i64: 2>, scalar_prefetch = 0 : i64, scratch_operands = 1 : i64, tpu.core_type = #tpu.core_type<tc>, window_params = [{pipeline_mode = #tpu.pipeline_mode<synchronous>, transform_indices = @transform_0, window_bounds = array<i64: 32, 128>}, {transform_indices = @transform_1, window_bounds = array<i64: 1, 1, 128>}, {transform_indices = @transform_2, window_bounds = array<i64: 1, 1, 128>}, {transform_indices = @transform_3, window_bounds = array<i64: 1, 128, 384>}, {transform_indices = @transform_4, window_bounds = array<i64: 1, 128, 128>}, {transform_indices = @transform_5, window_bounds = array<i64: 1, 1, 128>}, {transform_indices = @transform_6, window_bounds = array<i64: 1, 1, 128>}, {transform_indices = @transform_7, window_bounds = array<i64: 1, 1, 128>}, {transform_indices = @transform_8, window_bounds = array<i64: 1, 128, 512>}, {transform_indices = @transform_9, window_bounds = array<i64: 1, 1, 512>}, {transform_indices = @transform_10, window_bounds = array<i64: 1, 512, 128>}, {transform_indices = @transform_11, window_bounds = array<i64: 1, 1, 128>}, {pipeline_mode = #tpu.pipeline_mode<synchronous>, transform_indices = @transform_12, window_bounds = array<i64: 1, 128>}, {pipeline_mode = #tpu.pipeline_mode<synchronous>, transform_indices = @transform_13, window_bounds = array<i64: 1, 128>}, {pipeline_mode = #tpu.pipeline_mode<synchronous>, transform_indices = @transform_14, window_bounds = array<i64: 128, 256>}, {pipeline_mode = #tpu.pipeline_mode<synchronous>, transform_indices = @transform_15, window_bounds = array<i64: 32, 256>}]} {
    %c0_i32 = arith.constant 0 : i32
    %0 = arith.cmpi eq, %arg0, %c0_i32 : i32
    %1 = arith.extui %0 : i1 to i32
    %c0_i32_0 = arith.constant 0 : i32
    %2 = arith.cmpi ne, %1, %c0_i32_0 : i32
    scf.if %2 {
      %c0_79 = arith.constant 0 : index
      %c0_80 = arith.constant 0 : index
      %218 = vector.load %arg1[%c0_79, %c0_80] : memref<32x128xf32, #tpu.memory_space<vmem>>, vector<32x128xf32>
      %c0_81 = arith.constant 0 : index
      %c0_82 = arith.constant 0 : index
      %219 = vector.load %arg17[%c0_81, %c0_82] : memref<32x128xf32, #tpu.memory_space<vmem>>, vector<32x128xf32>
      tpu.vector_store %arg17[%c0_81, %c0_82], %218 {strides = array<i32>} : memref<32x128xf32, #tpu.memory_space<vmem>>, vector<32x128xf32>,
    } else {
    }
    %c0 = arith.constant 0 : index
    %c0_1 = arith.constant 0 : index
    %3 = vector.load %arg17[%c0, %c0_1] : memref<32x128xf32, #tpu.memory_space<vmem>>, vector<32x128xf32>
    %4 = tpu.iota {dimensions = array<i32: 1>} : vector<1x16x16xi32>
    %5 = tpu.iota {dimensions = array<i32: 2>} : vector<1x16x16xi32>
    %6 = arith.cmpi sgt, %5, %4 : vector<1x16x16xi32>
    %c0_2 = arith.constant 0 : index
    %c0_3 = arith.constant 0 : index
    %c0_4 = arith.constant 0 : index
    %7 = vector.load %arg2[%c0_2, %c0_3, %c0_4] : memref<1x1x128xf32, #tpu.memory_space<vmem>>, vector<1x1x128xf32>
    %8 = vector.shape_cast %7 : vector<1x1x128xf32> to vector<1x128xf32>
    %c0_5 = arith.constant 0 : index
    %c0_6 = arith.constant 0 : index
    %c0_7 = arith.constant 0 : index
    %9 = vector.load %arg3[%c0_5, %c0_6, %c0_7] : memref<1x1x128xf32, #tpu.memory_space<vmem>>, vector<1x1x128xf32>
    %10 = vector.shape_cast %9 : vector<1x1x128xf32> to vector<1x128xf32>
    %cst = arith.constant dense<0.000000e+00> : vector<32xf32>
    %11 = vector.multi_reduction <add>, %3, %cst [1] : vector<32x128xf32> to vector<32xf32>
    %12 = vector.shape_cast %11 : vector<32xf32> to vector<32x1xf32>
    %cst_8 = arith.constant 1.280000e+02 : f32
    %13 = vector.broadcast %cst_8 : f32 to vector<32x1xf32>
    %14 = arith.divf %12, %13 : vector<32x1xf32>
    %15 = vector.broadcast %14 : vector<32x1xf32> to vector<32x128xf32>
    %16 = arith.subf %3, %15 : vector<32x128xf32>
    %17 = arith.mulf %16, %16 : vector<32x128xf32>
    %cst_9 = arith.constant dense<0.000000e+00> : vector<32xf32>
    %18 = vector.multi_reduction <add>, %17, %cst_9 [1] : vector<32x128xf32> to vector<32xf32>
    %19 = vector.shape_cast %18 : vector<32xf32> to vector<32x1xf32>
    %cst_10 = arith.constant 1.280000e+02 : f32
    %20 = vector.broadcast %cst_10 : f32 to vector<32x1xf32>
    %21 = arith.divf %19, %20 : vector<32x1xf32>
    %cst_11 = arith.constant 9.99999974E-6 : f32
    %22 = vector.broadcast %cst_11 : f32 to vector<32x1xf32>
    %23 = arith.addf %21, %22 : vector<32x1xf32>
    %24 = math.rsqrt %23 : vector<32x1xf32>
    %25 = vector.broadcast %24 : vector<32x1xf32> to vector<32x128xf32>
    %26 = arith.mulf %16, %25 : vector<32x128xf32>
    %27 = vector.broadcast %8 : vector<1x128xf32> to vector<32x128xf32>
    %28 = arith.mulf %26, %27 : vector<32x128xf32>
    %29 = vector.broadcast %10 : vector<1x128xf32> to vector<32x128xf32>
    %30 = arith.addf %28, %29 : vector<32x128xf32>
    %31 = arith.truncf %30 : vector<32x128xf32> to vector<32x128xbf16>
    %c0_12 = arith.constant 0 : index
    %c0_13 = arith.constant 0 : index
    %c0_14 = arith.constant 0 : index
    %32 = vector.load %arg4[%c0_12, %c0_13, %c0_14] : memref<1x128x384xbf16, #tpu.memory_space<vmem>>, vector<1x128x384xbf16>
    %33 = vector.shape_cast %32 : vector<1x128x384xbf16> to vector<128x384xbf16>
    %cst_15 = arith.constant dense<0.000000e+00> : vector<32x384xf32>
    %34 = tpu.matmul %31, %33, %cst_15 {dimension_numbers = #tpu.dot_dimension_numbers<[1], [0], [0], [1], [0, 0, 1, 1], [], []>} : vector<32x128xbf16>, vector<128x384xbf16>, vector<32x384xf32> -> vector<32x384xf32>
    %35 = vector.extract_strided_slice %34 {offsets = [0, 0], sizes = [32, 128], strides = [1, 1]} : vector<32x384xf32> to vector<32x128xf32>
    %36 = vector.extract_strided_slice %34 {offsets = [0, 128], sizes = [32, 128], strides = [1, 1]} : vector<32x384xf32> to vector<32x128xf32>
    %37 = vector.extract_strided_slice %34 {offsets = [0, 256], sizes = [32, 128], strides = [1, 1]} : vector<32x384xf32> to vector<32x128xf32>
    %38 = vector.extract_strided_slice %35 {offsets = [0, 0], sizes = [32, 32], strides = [1, 1]} : vector<32x128xf32> to vector<32x32xf32>
    %39 = vector.shape_cast %38 : vector<32x32xf32> to vector<2x16x32xf32>
    %40 = arith.truncf %39 : vector<2x16x32xf32> to vector<2x16x32xbf16>
    %41 = vector.extract_strided_slice %36 {offsets = [0, 0], sizes = [32, 32], strides = [1, 1]} : vector<32x128xf32> to vector<32x32xf32>
    %42 = vector.shape_cast %41 : vector<32x32xf32> to vector<2x16x32xf32>
    %43 = arith.truncf %42 : vector<2x16x32xf32> to vector<2x16x32xbf16>
    %44 = vector.extract_strided_slice %37 {offsets = [0, 0], sizes = [32, 32], strides = [1, 1]} : vector<32x128xf32> to vector<32x32xf32>
    %45 = vector.shape_cast %44 : vector<32x32xf32> to vector<2x16x32xf32>
    %46 = arith.truncf %45 : vector<2x16x32xf32> to vector<2x16x32xbf16>
    "tpu.trace_start"() <{level = 10 : i32, message = "btd,bsd->bts"}> : () -> ()
    %cst_16 = arith.constant dense<0.000000e+00> : vector<2x16x16xf32>
    %47 = tpu.matmul %40, %43, %cst_16 {dimension_numbers = #tpu.dot_dimension_numbers<[2], [2], [1], [1], [0, 0, 0, 1, 1, 1], [0], [0]>} : vector<2x16x32xbf16>, vector<2x16x32xbf16>, vector<2x16x16xf32> -> vector<2x16x16xf32>
    "tpu.trace_stop"() : () -> ()
    %cst_17 = arith.constant 0.176776692 : f32
    %48 = vector.broadcast %cst_17 : f32 to vector<2x16x16xf32>
    %49 = arith.mulf %47, %48 : vector<2x16x16xf32>
    %cst_18 = arith.constant -1.000000e+30 : f32
    %50 = vector.shape_cast %6 : vector<1x16x16xi1> to vector<1x16x16xi1>
    %51 = vector.broadcast %50 : vector<1x16x16xi1> to vector<2x16x16xi1>
    %52 = vector.broadcast %cst_18 : f32 to vector<2x16x16xf32>
    %53 = arith.select %51, %52, %49 : vector<2x16x16xi1>, vector<2x16x16xf32>
    %cst_19 = arith.constant dense<0xFF800000> : vector<2x16xf32>
    %54 = vector.multi_reduction <maximumf>, %53, %cst_19 [2] : vector<2x16x16xf32> to vector<2x16xf32>
    %55 = vector.shape_cast %54 : vector<2x16xf32> to vector<2x16x1xf32>
    %56 = vector.broadcast %55 : vector<2x16x1xf32> to vector<2x16x16xf32>
    %57 = arith.subf %53, %56 : vector<2x16x16xf32>
    %58 = math.exp %57 : vector<2x16x16xf32>
    %cst_20 = arith.constant dense<0.000000e+00> : vector<2x16xf32>
    %59 = vector.multi_reduction <add>, %58, %cst_20 [2] : vector<2x16x16xf32> to vector<2x16xf32>
    %60 = vector.shape_cast %59 : vector<2x16xf32> to vector<2x16x1xf32>
    %61 = vector.broadcast %60 : vector<2x16x1xf32> to vector<2x16x16xf32>
    %62 = arith.divf %58, %61 : vector<2x16x16xf32>
    %63 = arith.truncf %62 : vector<2x16x16xf32> to vector<2x16x16xbf16>
    "tpu.trace_start"() <{level = 10 : i32, message = "bts,bsd->btd"}> : () -> ()
    %cst_21 = arith.constant dense<0.000000e+00> : vector<2x16x32xf32>
    %64 = tpu.matmul %63, %46, %cst_21 {dimension_numbers = #tpu.dot_dimension_numbers<[2], [1], [1], [2], [0, 0, 0, 1, 1, 2], [0], [0]>} : vector<2x16x16xbf16>, vector<2x16x32xbf16>, vector<2x16x32xf32> -> vector<2x16x32xf32>
    "tpu.trace_stop"() : () -> ()
    %65 = vector.shape_cast %64 : vector<2x16x32xf32> to vector<32x32xf32>
    %66 = vector.extract_strided_slice %35 {offsets = [0, 32], sizes = [32, 32], strides = [1, 1]} : vector<32x128xf32> to vector<32x32xf32>
    %67 = vector.shape_cast %66 : vector<32x32xf32> to vector<2x16x32xf32>
    %68 = arith.truncf %67 : vector<2x16x32xf32> to vector<2x16x32xbf16>
    %69 = vector.extract_strided_slice %36 {offsets = [0, 32], sizes = [32, 32], strides = [1, 1]} : vector<32x128xf32> to vector<32x32xf32>
    %70 = vector.shape_cast %69 : vector<32x32xf32> to vector<2x16x32xf32>
    %71 = arith.truncf %70 : vector<2x16x32xf32> to vector<2x16x32xbf16>
    %72 = vector.extract_strided_slice %37 {offsets = [0, 32], sizes = [32, 32], strides = [1, 1]} : vector<32x128xf32> to vector<32x32xf32>
    %73 = vector.shape_cast %72 : vector<32x32xf32> to vector<2x16x32xf32>
    %74 = arith.truncf %73 : vector<2x16x32xf32> to vector<2x16x32xbf16>
    "tpu.trace_start"() <{level = 10 : i32, message = "btd,bsd->bts"}> : () -> ()
    %cst_22 = arith.constant dense<0.000000e+00> : vector<2x16x16xf32>
    %75 = tpu.matmul %68, %71, %cst_22 {dimension_numbers = #tpu.dot_dimension_numbers<[2], [2], [1], [1], [0, 0, 0, 1, 1, 1], [0], [0]>} : vector<2x16x32xbf16>, vector<2x16x32xbf16>, vector<2x16x16xf32> -> vector<2x16x16xf32>
    "tpu.trace_stop"() : () -> ()
    %cst_23 = arith.constant 0.176776692 : f32
    %76 = vector.broadcast %cst_23 : f32 to vector<2x16x16xf32>
    %77 = arith.mulf %75, %76 : vector<2x16x16xf32>
    %cst_24 = arith.constant -1.000000e+30 : f32
    %78 = vector.shape_cast %6 : vector<1x16x16xi1> to vector<1x16x16xi1>
    %79 = vector.broadcast %78 : vector<1x16x16xi1> to vector<2x16x16xi1>
    %80 = vector.broadcast %cst_24 : f32 to vector<2x16x16xf32>
    %81 = arith.select %79, %80, %77 : vector<2x16x16xi1>, vector<2x16x16xf32>
    %cst_25 = arith.constant dense<0xFF800000> : vector<2x16xf32>
    %82 = vector.multi_reduction <maximumf>, %81, %cst_25 [2] : vector<2x16x16xf32> to vector<2x16xf32>
    %83 = vector.shape_cast %82 : vector<2x16xf32> to vector<2x16x1xf32>
    %84 = vector.broadcast %83 : vector<2x16x1xf32> to vector<2x16x16xf32>
    %85 = arith.subf %81, %84 : vector<2x16x16xf32>
    %86 = math.exp %85 : vector<2x16x16xf32>
    %cst_26 = arith.constant dense<0.000000e+00> : vector<2x16xf32>
    %87 = vector.multi_reduction <add>, %86, %cst_26 [2] : vector<2x16x16xf32> to vector<2x16xf32>
    %88 = vector.shape_cast %87 : vector<2x16xf32> to vector<2x16x1xf32>
    %89 = vector.broadcast %88 : vector<2x16x1xf32> to vector<2x16x16xf32>
    %90 = arith.divf %86, %89 : vector<2x16x16xf32>
    %91 = arith.truncf %90 : vector<2x16x16xf32> to vector<2x16x16xbf16>
    "tpu.trace_start"() <{level = 10 : i32, message = "bts,bsd->btd"}> : () -> ()
    %cst_27 = arith.constant dense<0.000000e+00> : vector<2x16x32xf32>
    %92 = tpu.matmul %91, %74, %cst_27 {dimension_numbers = #tpu.dot_dimension_numbers<[2], [1], [1], [2], [0, 0, 0, 1, 1, 2], [0], [0]>} : vector<2x16x16xbf16>, vector<2x16x32xbf16>, vector<2x16x32xf32> -> vector<2x16x32xf32>
    "tpu.trace_stop"() : () -> ()
    %93 = vector.shape_cast %92 : vector<2x16x32xf32> to vector<32x32xf32>
    %94 = vector.extract_strided_slice %35 {offsets = [0, 64], sizes = [32, 32], strides = [1, 1]} : vector<32x128xf32> to vector<32x32xf32>
    %95 = vector.shape_cast %94 : vector<32x32xf32> to vector<2x16x32xf32>
    %96 = arith.truncf %95 : vector<2x16x32xf32> to vector<2x16x32xbf16>
    %97 = vector.extract_strided_slice %36 {offsets = [0, 64], sizes = [32, 32], strides = [1, 1]} : vector<32x128xf32> to vector<32x32xf32>
    %98 = vector.shape_cast %97 : vector<32x32xf32> to vector<2x16x32xf32>
    %99 = arith.truncf %98 : vector<2x16x32xf32> to vector<2x16x32xbf16>
    %100 = vector.extract_strided_slice %37 {offsets = [0, 64], sizes = [32, 32], strides = [1, 1]} : vector<32x128xf32> to vector<32x32xf32>
    %101 = vector.shape_cast %100 : vector<32x32xf32> to vector<2x16x32xf32>
    %102 = arith.truncf %101 : vector<2x16x32xf32> to vector<2x16x32xbf16>
    "tpu.trace_start"() <{level = 10 : i32, message = "btd,bsd->bts"}> : () -> ()
    %cst_28 = arith.constant dense<0.000000e+00> : vector<2x16x16xf32>
    %103 = tpu.matmul %96, %99, %cst_28 {dimension_numbers = #tpu.dot_dimension_numbers<[2], [2], [1], [1], [0, 0, 0, 1, 1, 1], [0], [0]>} : vector<2x16x32xbf16>, vector<2x16x32xbf16>, vector<2x16x16xf32> -> vector<2x16x16xf32>
    "tpu.trace_stop"() : () -> ()
    %cst_29 = arith.constant 0.176776692 : f32
    %104 = vector.broadcast %cst_29 : f32 to vector<2x16x16xf32>
    %105 = arith.mulf %103, %104 : vector<2x16x16xf32>
    %cst_30 = arith.constant -1.000000e+30 : f32
    %106 = vector.shape_cast %6 : vector<1x16x16xi1> to vector<1x16x16xi1>
    %107 = vector.broadcast %106 : vector<1x16x16xi1> to vector<2x16x16xi1>
    %108 = vector.broadcast %cst_30 : f32 to vector<2x16x16xf32>
    %109 = arith.select %107, %108, %105 : vector<2x16x16xi1>, vector<2x16x16xf32>
    %cst_31 = arith.constant dense<0xFF800000> : vector<2x16xf32>
    %110 = vector.multi_reduction <maximumf>, %109, %cst_31 [2] : vector<2x16x16xf32> to vector<2x16xf32>
    %111 = vector.shape_cast %110 : vector<2x16xf32> to vector<2x16x1xf32>
    %112 = vector.broadcast %111 : vector<2x16x1xf32> to vector<2x16x16xf32>
    %113 = arith.subf %109, %112 : vector<2x16x16xf32>
    %114 = math.exp %113 : vector<2x16x16xf32>
    %cst_32 = arith.constant dense<0.000000e+00> : vector<2x16xf32>
    %115 = vector.multi_reduction <add>, %114, %cst_32 [2] : vector<2x16x16xf32> to vector<2x16xf32>
    %116 = vector.shape_cast %115 : vector<2x16xf32> to vector<2x16x1xf32>
    %117 = vector.broadcast %116 : vector<2x16x1xf32> to vector<2x16x16xf32>
    %118 = arith.divf %114, %117 : vector<2x16x16xf32>
    %119 = arith.truncf %118 : vector<2x16x16xf32> to vector<2x16x16xbf16>
    "tpu.trace_start"() <{level = 10 : i32, message = "bts,bsd->btd"}> : () -> ()
    %cst_33 = arith.constant dense<0.000000e+00> : vector<2x16x32xf32>
    %120 = tpu.matmul %119, %102, %cst_33 {dimension_numbers = #tpu.dot_dimension_numbers<[2], [1], [1], [2], [0, 0, 0, 1, 1, 2], [0], [0]>} : vector<2x16x16xbf16>, vector<2x16x32xbf16>, vector<2x16x32xf32> -> vector<2x16x32xf32>
    "tpu.trace_stop"() : () -> ()
    %121 = vector.shape_cast %120 : vector<2x16x32xf32> to vector<32x32xf32>
    %122 = vector.extract_strided_slice %35 {offsets = [0, 96], sizes = [32, 32], strides = [1, 1]} : vector<32x128xf32> to vector<32x32xf32>
    %123 = vector.shape_cast %122 : vector<32x32xf32> to vector<2x16x32xf32>
    %124 = arith.truncf %123 : vector<2x16x32xf32> to vector<2x16x32xbf16>
    %125 = vector.extract_strided_slice %36 {offsets = [0, 96], sizes = [32, 32], strides = [1, 1]} : vector<32x128xf32> to vector<32x32xf32>
    %126 = vector.shape_cast %125 : vector<32x32xf32> to vector<2x16x32xf32>
    %127 = arith.truncf %126 : vector<2x16x32xf32> to vector<2x16x32xbf16>
    %128 = vector.extract_strided_slice %37 {offsets = [0, 96], sizes = [32, 32], strides = [1, 1]} : vector<32x128xf32> to vector<32x32xf32>
    %129 = vector.shape_cast %128 : vector<32x32xf32> to vector<2x16x32xf32>
    %130 = arith.truncf %129 : vector<2x16x32xf32> to vector<2x16x32xbf16>
    "tpu.trace_start"() <{level = 10 : i32, message = "btd,bsd->bts"}> : () -> ()
    %cst_34 = arith.constant dense<0.000000e+00> : vector<2x16x16xf32>
    %131 = tpu.matmul %124, %127, %cst_34 {dimension_numbers = #tpu.dot_dimension_numbers<[2], [2], [1], [1], [0, 0, 0, 1, 1, 1], [0], [0]>} : vector<2x16x32xbf16>, vector<2x16x32xbf16>, vector<2x16x16xf32> -> vector<2x16x16xf32>
    "tpu.trace_stop"() : () -> ()
    %cst_35 = arith.constant 0.176776692 : f32
    %132 = vector.broadcast %cst_35 : f32 to vector<2x16x16xf32>
    %133 = arith.mulf %131, %132 : vector<2x16x16xf32>
    %cst_36 = arith.constant -1.000000e+30 : f32
    %134 = vector.shape_cast %6 : vector<1x16x16xi1> to vector<1x16x16xi1>
    %135 = vector.broadcast %134 : vector<1x16x16xi1> to vector<2x16x16xi1>
    %136 = vector.broadcast %cst_36 : f32 to vector<2x16x16xf32>
    %137 = arith.select %135, %136, %133 : vector<2x16x16xi1>, vector<2x16x16xf32>
    %cst_37 = arith.constant dense<0xFF800000> : vector<2x16xf32>
    %138 = vector.multi_reduction <maximumf>, %137, %cst_37 [2] : vector<2x16x16xf32> to vector<2x16xf32>
    %139 = vector.shape_cast %138 : vector<2x16xf32> to vector<2x16x1xf32>
    %140 = vector.broadcast %139 : vector<2x16x1xf32> to vector<2x16x16xf32>
    %141 = arith.subf %137, %140 : vector<2x16x16xf32>
    %142 = math.exp %141 : vector<2x16x16xf32>
    %cst_38 = arith.constant dense<0.000000e+00> : vector<2x16xf32>
    %143 = vector.multi_reduction <add>, %142, %cst_38 [2] : vector<2x16x16xf32> to vector<2x16xf32>
    %144 = vector.shape_cast %143 : vector<2x16xf32> to vector<2x16x1xf32>
    %145 = vector.broadcast %144 : vector<2x16x1xf32> to vector<2x16x16xf32>
    %146 = arith.divf %142, %145 : vector<2x16x16xf32>
    %147 = arith.truncf %146 : vector<2x16x16xf32> to vector<2x16x16xbf16>
    "tpu.trace_start"() <{level = 10 : i32, message = "bts,bsd->btd"}> : () -> ()
    %cst_39 = arith.constant dense<0.000000e+00> : vector<2x16x32xf32>
    %148 = tpu.matmul %147, %130, %cst_39 {dimension_numbers = #tpu.dot_dimension_numbers<[2], [1], [1], [2], [0, 0, 0, 1, 1, 2], [0], [0]>} : vector<2x16x16xbf16>, vector<2x16x32xbf16>, vector<2x16x32xf32> -> vector<2x16x32xf32>
    "tpu.trace_stop"() : () -> ()
    %149 = vector.shape_cast %148 : vector<2x16x32xf32> to vector<32x32xf32>
    %150 = tpu.concatenate %65, %93, %121, %149 in 1 : vector<32x32xf32>, vector<32x32xf32>, vector<32x32xf32>, vector<32x32xf32> -> vector<32x128xf32>
    %151 = arith.truncf %150 : vector<32x128xf32> to vector<32x128xbf16>
    %c0_40 = arith.constant 0 : index
    %c0_41 = arith.constant 0 : index
    %c0_42 = arith.constant 0 : index
    %152 = vector.load %arg5[%c0_40, %c0_41, %c0_42] : memref<1x128x128xbf16, #tpu.memory_space<vmem>>, vector<1x128x128xbf16>
    %153 = vector.shape_cast %152 : vector<1x128x128xbf16> to vector<128x128xbf16>
    %cst_43 = arith.constant dense<0.000000e+00> : vector<32x128xf32>
    %154 = tpu.matmul %151, %153, %cst_43 {dimension_numbers = #tpu.dot_dimension_numbers<[1], [0], [0], [1], [0, 0, 1, 1], [], []>} : vector<32x128xbf16>, vector<128x128xbf16>, vector<32x128xf32> -> vector<32x128xf32>
    %155 = arith.addf %3, %154 : vector<32x128xf32>
    %c0_44 = arith.constant 0 : index
    %c0_45 = arith.constant 0 : index
    %c0_46 = arith.constant 0 : index
    %156 = vector.load %arg6[%c0_44, %c0_45, %c0_46] : memref<1x1x128xf32, #tpu.memory_space<vmem>>, vector<1x1x128xf32>
    %157 = vector.shape_cast %156 : vector<1x1x128xf32> to vector<1x128xf32>
    %158 = vector.broadcast %157 : vector<1x128xf32> to vector<32x128xf32>
    %159 = arith.addf %155, %158 : vector<32x128xf32>
    %c0_47 = arith.constant 0 : index
    %c0_48 = arith.constant 0 : index
    %c0_49 = arith.constant 0 : index
    %160 = vector.load %arg7[%c0_47, %c0_48, %c0_49] : memref<1x1x128xf32, #tpu.memory_space<vmem>>, vector<1x1x128xf32>
    %161 = vector.shape_cast %160 : vector<1x1x128xf32> to vector<1x128xf32>
    %c0_50 = arith.constant 0 : index
    %c0_51 = arith.constant 0 : index
    %c0_52 = arith.constant 0 : index
    %162 = vector.load %arg8[%c0_50, %c0_51, %c0_52] : memref<1x1x128xf32, #tpu.memory_space<vmem>>, vector<1x1x128xf32>
    %163 = vector.shape_cast %162 : vector<1x1x128xf32> to vector<1x128xf32>
    %cst_53 = arith.constant dense<0.000000e+00> : vector<32xf32>
    %164 = vector.multi_reduction <add>, %159, %cst_53 [1] : vector<32x128xf32> to vector<32xf32>
    %165 = vector.shape_cast %164 : vector<32xf32> to vector<32x1xf32>
    %cst_54 = arith.constant 1.280000e+02 : f32
    %166 = vector.broadcast %cst_54 : f32 to vector<32x1xf32>
    %167 = arith.divf %165, %166 : vector<32x1xf32>
    %168 = vector.broadcast %167 : vector<32x1xf32> to vector<32x128xf32>
    %169 = arith.subf %159, %168 : vector<32x128xf32>
    %170 = arith.mulf %169, %169 : vector<32x128xf32>
    %cst_55 = arith.constant dense<0.000000e+00> : vector<32xf32>
    %171 = vector.multi_reduction <add>, %170, %cst_55 [1] : vector<32x128xf32> to vector<32xf32>
    %172 = vector.shape_cast %171 : vector<32xf32> to vector<32x1xf32>
    %cst_56 = arith.constant 1.280000e+02 : f32
    %173 = vector.broadcast %cst_56 : f32 to vector<32x1xf32>
    %174 = arith.divf %172, %173 : vector<32x1xf32>
    %cst_57 = arith.constant 9.99999974E-6 : f32
    %175 = vector.broadcast %cst_57 : f32 to vector<32x1xf32>
    %176 = arith.addf %174, %175 : vector<32x1xf32>
    %177 = math.rsqrt %176 : vector<32x1xf32>
    %178 = vector.broadcast %177 : vector<32x1xf32> to vector<32x128xf32>
    %179 = arith.mulf %169, %178 : vector<32x128xf32>
    %180 = vector.broadcast %161 : vector<1x128xf32> to vector<32x128xf32>
    %181 = arith.mulf %179, %180 : vector<32x128xf32>
    %182 = vector.broadcast %163 : vector<1x128xf32> to vector<32x128xf32>
    %183 = arith.addf %181, %182 : vector<32x128xf32>
    %184 = arith.truncf %183 : vector<32x128xf32> to vector<32x128xbf16>
    %c0_58 = arith.constant 0 : index
    %c0_59 = arith.constant 0 : index
    %c0_60 = arith.constant 0 : index
    %185 = vector.load %arg9[%c0_58, %c0_59, %c0_60] : memref<1x128x512xbf16, #tpu.memory_space<vmem>>, vector<1x128x512xbf16>
    %186 = vector.shape_cast %185 : vector<1x128x512xbf16> to vector<128x512xbf16>
    %cst_61 = arith.constant dense<0.000000e+00> : vector<32x512xf32>
    %187 = tpu.matmul %184, %186, %cst_61 {dimension_numbers = #tpu.dot_dimension_numbers<[1], [0], [0], [1], [0, 0, 1, 1], [], []>} : vector<32x128xbf16>, vector<128x512xbf16>, vector<32x512xf32> -> vector<32x512xf32>
    %c0_62 = arith.constant 0 : index
    %c0_63 = arith.constant 0 : index
    %c0_64 = arith.constant 0 : index
    %188 = vector.load %arg10[%c0_62, %c0_63, %c0_64] : memref<1x1x512xf32, #tpu.memory_space<vmem>>, vector<1x1x512xf32>
    %189 = vector.shape_cast %188 : vector<1x1x512xf32> to vector<1x512xf32>
    %190 = vector.broadcast %189 : vector<1x512xf32> to vector<32x512xf32>
    %191 = arith.addf %187, %190 : vector<32x512xf32>
    %cst_65 = arith.constant 5.000000e-01 : f32
    %192 = vector.broadcast %cst_65 : f32 to vector<32x512xf32>
    %193 = arith.mulf %192, %191 : vector<32x512xf32>
    %194 = arith.mulf %191, %191 : vector<32x512xf32>
    %195 = arith.mulf %191, %194 : vector<32x512xf32>
    %cst_66 = arith.constant 4.471500e-02 : f32
    %196 = vector.broadcast %cst_66 : f32 to vector<32x512xf32>
    %197 = arith.mulf %196, %195 : vector<32x512xf32>
    %198 = arith.addf %191, %197 : vector<32x512xf32>
    %cst_67 = arith.constant 0.797884583 : f32
    %199 = vector.broadcast %cst_67 : f32 to vector<32x512xf32>
    %200 = arith.mulf %199, %198 : vector<32x512xf32>
    %201 = math.tanh %200 : vector<32x512xf32>
    %cst_68 = arith.constant 1.000000e+00 : f32
    %202 = vector.broadcast %cst_68 : f32 to vector<32x512xf32>
    %203 = arith.addf %202, %201 : vector<32x512xf32>
    %204 = arith.mulf %193, %203 : vector<32x512xf32>
    %205 = arith.truncf %204 : vector<32x512xf32> to vector<32x512xbf16>
    %c0_69 = arith.constant 0 : index
    %c0_70 = arith.constant 0 : index
    %c0_71 = arith.constant 0 : index
    %206 = vector.load %arg11[%c0_69, %c0_70, %c0_71] : memref<1x512x128xbf16, #tpu.memory_space<vmem>>, vector<1x512x128xbf16>
    %207 = vector.shape_cast %206 : vector<1x512x128xbf16> to vector<512x128xbf16>
    %cst_72 = arith.constant dense<0.000000e+00> : vector<32x128xf32>
    %208 = tpu.matmul %205, %207, %cst_72 {dimension_numbers = #tpu.dot_dimension_numbers<[1], [0], [0], [1], [0, 0, 1, 1], [], []>} : vector<32x512xbf16>, vector<512x128xbf16>, vector<32x128xf32> -> vector<32x128xf32>
    %c0_73 = arith.constant 0 : index
    %c0_74 = arith.constant 0 : index
    %c0_75 = arith.constant 0 : index
    %209 = vector.load %arg12[%c0_73, %c0_74, %c0_75] : memref<1x1x128xf32, #tpu.memory_space<vmem>>, vector<1x1x128xf32>
    %210 = vector.shape_cast %209 : vector<1x1x128xf32> to vector<1x128xf32>
    %211 = vector.broadcast %210 : vector<1x128xf32> to vector<32x128xf32>
    %212 = arith.addf %208, %211 : vector<32x128xf32>
    %213 = arith.addf %159, %212 : vector<32x128xf32>
    %c0_76 = arith.constant 0 : index
    %c0_77 = arith.constant 0 : index
    %214 = vector.load %arg17[%c0_76, %c0_77] : memref<32x128xf32, #tpu.memory_space<vmem>>, vector<32x128xf32>
    tpu.vector_store %arg17[%c0_76, %c0_77], %213 {strides = array<i32>} : memref<32x128xf32, #tpu.memory_space<vmem>>, vector<32x128xf32>,
    %c1_i32 = arith.constant 1 : i32
    %215 = arith.cmpi eq, %arg0, %c1_i32 : i32
    %216 = arith.extui %215 : i1 to i32
    %c0_i32_78 = arith.constant 0 : i32
    %217 = arith.cmpi ne, %216, %c0_i32_78 : i32
    scf.if %217 {
      %c0_79 = arith.constant 0 : index
      %c0_80 = arith.constant 0 : index
      %218 = vector.load %arg13[%c0_79, %c0_80] : memref<1x128xf32, #tpu.memory_space<vmem>>, vector<1x128xf32>
      %c0_81 = arith.constant 0 : index
      %c0_82 = arith.constant 0 : index
      %219 = vector.load %arg14[%c0_81, %c0_82] : memref<1x128xf32, #tpu.memory_space<vmem>>, vector<1x128xf32>
      %cst_83 = arith.constant dense<0.000000e+00> : vector<32xf32>
      %220 = vector.multi_reduction <add>, %213, %cst_83 [1] : vector<32x128xf32> to vector<32xf32>
      %221 = vector.shape_cast %220 : vector<32xf32> to vector<32x1xf32>
      %cst_84 = arith.constant 1.280000e+02 : f32
      %222 = vector.broadcast %cst_84 : f32 to vector<32x1xf32>
      %223 = arith.divf %221, %222 : vector<32x1xf32>
      %224 = vector.broadcast %223 : vector<32x1xf32> to vector<32x128xf32>
      %225 = arith.subf %213, %224 : vector<32x128xf32>
      %226 = arith.mulf %225, %225 : vector<32x128xf32>
      %cst_85 = arith.constant dense<0.000000e+00> : vector<32xf32>
      %227 = vector.multi_reduction <add>, %226, %cst_85 [1] : vector<32x128xf32> to vector<32xf32>
      %228 = vector.shape_cast %227 : vector<32xf32> to vector<32x1xf32>
      %cst_86 = arith.constant 1.280000e+02 : f32
      %229 = vector.broadcast %cst_86 : f32 to vector<32x1xf32>
      %230 = arith.divf %228, %229 : vector<32x1xf32>
      %cst_87 = arith.constant 9.99999974E-6 : f32
      %231 = vector.broadcast %cst_87 : f32 to vector<32x1xf32>
      %232 = arith.addf %230, %231 : vector<32x1xf32>
      %233 = math.rsqrt %232 : vector<32x1xf32>
      %234 = vector.broadcast %233 : vector<32x1xf32> to vector<32x128xf32>
      %235 = arith.mulf %225, %234 : vector<32x128xf32>
      %236 = vector.broadcast %218 : vector<1x128xf32> to vector<32x128xf32>
      %237 = arith.mulf %235, %236 : vector<32x128xf32>
      %238 = vector.broadcast %219 : vector<1x128xf32> to vector<32x128xf32>
      %239 = arith.addf %237, %238 : vector<32x128xf32>
      %240 = arith.truncf %239 : vector<32x128xf32> to vector<32x128xbf16>
      %c0_88 = arith.constant 0 : index
      %c0_89 = arith.constant 0 : index
      %241 = vector.load %arg15[%c0_88, %c0_89] : memref<128x256xbf16, #tpu.memory_space<vmem>>, vector<128x256xbf16>
      %cst_90 = arith.constant dense<0.000000e+00> : vector<32x256xf32>
      %242 = tpu.matmul %240, %241, %cst_90 {dimension_numbers = #tpu.dot_dimension_numbers<[1], [0], [0], [1], [0, 0, 1, 1], [], []>} : vector<32x128xbf16>, vector<128x256xbf16>, vector<32x256xf32> -> vector<32x256xf32>
      %c0_91 = arith.constant 0 : index
      %c0_92 = arith.constant 0 : index
      %243 = vector.load %arg16[%c0_91, %c0_92] : memref<32x256xf32, #tpu.memory_space<vmem>>, vector<32x256xf32>
      tpu.vector_store %arg16[%c0_91, %c0_92], %242 {strides = array<i32>} : memref<32x256xf32, #tpu.memory_space<vmem>>, vector<32x256xf32>,
    } else {
    }
    return
  }
  func.func @transform_0(%arg0: i32) -> (i32, i32) {
    %c0_i32 = arith.constant 0 : i32
    %c0_i32_0 = arith.constant 0 : i32
    %c0_i32_1 = arith.constant 0 : i32
    return %c0_i32, %c0_i32_0 : i32, i32
  }
  func.func @transform_1(%arg0: i32) -> (i32, i32, i32) {
    %c0_i32 = arith.constant 0 : i32
    %c0_i32_0 = arith.constant 0 : i32
    %c0_i32_1 = arith.constant 0 : i32
    return %arg0, %c0_i32, %c0_i32_0 : i32, i32, i32
  }
  func.func @transform_2(%arg0: i32) -> (i32, i32, i32) {
    %c0_i32 = arith.constant 0 : i32
    %c0_i32_0 = arith.constant 0 : i32
    %c0_i32_1 = arith.constant 0 : i32
    return %arg0, %c0_i32, %c0_i32_0 : i32, i32, i32
  }
  func.func @transform_3(%arg0: i32) -> (i32, i32, i32) {
    %c0_i32 = arith.constant 0 : i32
    %c0_i32_0 = arith.constant 0 : i32
    %c0_i32_1 = arith.constant 0 : i32
    return %arg0, %c0_i32, %c0_i32_0 : i32, i32, i32
  }
  func.func @transform_4(%arg0: i32) -> (i32, i32, i32) {
    %c0_i32 = arith.constant 0 : i32
    %c0_i32_0 = arith.constant 0 : i32
    %c0_i32_1 = arith.constant 0 : i32
    return %arg0, %c0_i32, %c0_i32_0 : i32, i32, i32
  }
  func.func @transform_5(%arg0: i32) -> (i32, i32, i32) {
    %c0_i32 = arith.constant 0 : i32
    %c0_i32_0 = arith.constant 0 : i32
    %c0_i32_1 = arith.constant 0 : i32
    return %arg0, %c0_i32, %c0_i32_0 : i32, i32, i32
  }
  func.func @transform_6(%arg0: i32) -> (i32, i32, i32) {
    %c0_i32 = arith.constant 0 : i32
    %c0_i32_0 = arith.constant 0 : i32
    %c0_i32_1 = arith.constant 0 : i32
    return %arg0, %c0_i32, %c0_i32_0 : i32, i32, i32
  }
  func.func @transform_7(%arg0: i32) -> (i32, i32, i32) {
    %c0_i32 = arith.constant 0 : i32
    %c0_i32_0 = arith.constant 0 : i32
    %c0_i32_1 = arith.constant 0 : i32
    return %arg0, %c0_i32, %c0_i32_0 : i32, i32, i32
  }
  func.func @transform_8(%arg0: i32) -> (i32, i32, i32) {
    %c0_i32 = arith.constant 0 : i32
    %c0_i32_0 = arith.constant 0 : i32
    %c0_i32_1 = arith.constant 0 : i32
    return %arg0, %c0_i32, %c0_i32_0 : i32, i32, i32
  }
  func.func @transform_9(%arg0: i32) -> (i32, i32, i32) {
    %c0_i32 = arith.constant 0 : i32
    %c0_i32_0 = arith.constant 0 : i32
    %c0_i32_1 = arith.constant 0 : i32
    return %arg0, %c0_i32, %c0_i32_0 : i32, i32, i32
  }
  func.func @transform_10(%arg0: i32) -> (i32, i32, i32) {
    %c0_i32 = arith.constant 0 : i32
    %c0_i32_0 = arith.constant 0 : i32
    %c0_i32_1 = arith.constant 0 : i32
    return %arg0, %c0_i32, %c0_i32_0 : i32, i32, i32
  }
  func.func @transform_11(%arg0: i32) -> (i32, i32, i32) {
    %c0_i32 = arith.constant 0 : i32
    %c0_i32_0 = arith.constant 0 : i32
    %c0_i32_1 = arith.constant 0 : i32
    return %arg0, %c0_i32, %c0_i32_0 : i32, i32, i32
  }
  func.func @transform_12(%arg0: i32) -> (i32, i32) {
    %c0_i32 = arith.constant 0 : i32
    %c0_i32_0 = arith.constant 0 : i32
    %c0_i32_1 = arith.constant 0 : i32
    return %c0_i32, %c0_i32_0 : i32, i32
  }
  func.func @transform_13(%arg0: i32) -> (i32, i32) {
    %c0_i32 = arith.constant 0 : i32
    %c0_i32_0 = arith.constant 0 : i32
    %c0_i32_1 = arith.constant 0 : i32
    return %c0_i32, %c0_i32_0 : i32, i32
  }
  func.func @transform_14(%arg0: i32) -> (i32, i32) {
    %c0_i32 = arith.constant 0 : i32
    %c0_i32_0 = arith.constant 0 : i32
    %c0_i32_1 = arith.constant 0 : i32
    return %c0_i32, %c0_i32_0 : i32, i32
  }
  func.func @transform_15(%arg0: i32) -> (i32, i32) {
    %c0_i32 = arith.constant 0 : i32
    %c0_i32_0 = arith.constant 0 : i32
    %c0_i32_1 = arith.constant 0 : i32
    return %c0_i32, %c0_i32_0 : i32, i32
  }
}

</mosaic_0001>

<bundles_post_ra>
// kernel: gpt_forward.1
= control target key start
LH: loop header
LB: loop body
LE: loop exit
PB: predicated region body
PF: predicated region fallthrough
CT: control target
= control target key end

     0   :  { %s6631_s0 = inlined_call_operand.hbm [shape: f32[32,128], index: 0, kind: input, shape index: {}]   ;;  %s6632_s1 = inlined_call_operand.hbm [shape: f32[2,1,128], index: 1, kind: input, shape index: {}]   ;;  %s6633_s2 = inlined_call_operand.hbm [shape: f32[2,1,128], index: 2, kind: input, shape index: {}]   ;;  %s6634_s3 = inlined_call_operand.hbm [shape: bf16[2,128,384], index: 3, kind: input, shape index: {}]   ;;  %s6635_s4 = inlined_call_operand.hbm [shape: bf16[2,128,128], index: 4, kind: input, shape index: {}]   ;;  %s6636_s5 = inlined_call_operand.hbm [shape: f32[2,1,128], index: 5, kind: input, shape index: {}]   ;;  %s6637_s6 = inlined_call_operand.hbm [shape: f32[2,1,128], index: 6, kind: input, shape index: {}]   ;;  %s6638_s7 = inlined_call_operand.hbm [shape: f32[2,1,128], index: 7, kind: input, shape index: {}]   ;;  %s6639_s8 = inlined_call_operand.hbm [shape: bf16[2,128,512], index: 8, kind: input, shape index: {}]   ;;  %s6640_s9 = inlined_call_operand.hbm [shape: f32[2,1,512], index: 9, kind: input, shape index: {}]   ;;  %s6641_s10 = inlined_call_operand.hbm [shape: bf16[2,512,128], index: 10, kind: input, shape index: {}]   ;;  %s6642_s11 = inlined_call_operand.hbm [shape: f32[2,1,128], index: 11, kind: input, shape index: {}]   ;;  %s6643_s12 = inlined_call_operand.hbm [shape: f32[1,128], index: 12, kind: input, shape index: {}]   ;;  %s6644_s13 = inlined_call_operand.hbm [shape: f32[1,128], index: 13, kind: input, shape index: {}]   ;;  %s6645_s14 = inlined_call_operand.hbm [shape: bf16[128,256], index: 14, kind: input, shape index: {}]   ;;  %s6646_s15 = inlined_call_operand.hbm [shape: f32[32,256], index: 15, kind: output, shape index: {}]  }
   0x1   :  { %6677 = sst [smem:[#allocation45_spill]] %s6632_s1 }
   0x2   :  { %6678 = sst [smem:[#allocation46_spill]] %s6634_s3 }
   0x3   :  { %6679 = sst [smem:[#allocation47_spill]] %s6636_s5 }
   0x4   :  { %6680 = sst [smem:[#allocation48_spill]] %s6638_s7 }
   0x5   :  { %6681 = sst [smem:[#allocation49_spill]] %s6642_s11 }
   0x6   :  { %6682 = sst [smem:[#allocation50_spill]] %s6643_s12 }
   0x7   :  { %6683 = sst [smem:[#allocation51_spill]] %s6644_s13 }
   0x8   :  { %6684 = sst [smem:[#allocation52_spill]] %s6646_s15 }
   0x9   :  { %20 = vsyncpa [#allocation4], 0 }
   0xa   :  { %21 = vsyncpa [#allocation7], 0 }
   0xb   :  { %23 = vsyncpa [#allocation7 + $0x1], 0 }
   0xc   :  { %24 = vsyncpa [#allocation10], 0 }
   0xd   :  { %26 = vsyncpa [#allocation10 + $0x1], 0 }
   0xe   :  { %27 = vsyncpa [#allocation13], 0 }
   0xf   :  { %29 = vsyncpa [#allocation13 + $0x1], 0 }
  0x10   :  { %30 = vsyncpa [#allocation16], 0 }
  0x11   :  { %32 = vsyncpa [#allocation16 + $0x1], 0 }
  0x12   :  { %33 = vsyncpa [#allocation19], 0 }
  0x13   :  { %35 = vsyncpa [#allocation19 + $0x1], 0 }
  0x14   :  { %36 = vsyncpa [#allocation22], 0 }
  0x15   :  { %38 = vsyncpa [#allocation22 + $0x1], 0 }
  0x16   :  { %39 = vsyncpa [#allocation25], 0 }
  0x17   :  { %40 = vsyncpa [#allocation5], 0  ;;  %s5436_s18 = smov 0   ;;  %s5438_s19 = smov 0  }
  0x18   :  { %s5440_s20 = smov 0   ;;  %s5442_s21 = smov 0  }
  0x19 LB: > { %6685 = sst [smem:[#allocation38_spill]] %s5313_s19  ;;  %s5455_s22 = sadd.s32 4294967295, %s5321_s21   ;;  %s5321_s21 = sphi %s5442_s21, %s6741_s21   ;;  %s5317_s20 = sphi %s5440_s20, %s6744_s20   ;;  %s5313_s19 = sphi %s5438_s19, %s6743_s19   ;;  %s5309_s18 = sphi %s5436_s18, %s6742_s18  }
  0x1a   : > { %6686 = sst [smem:[#allocation39_spill]] %s5317_s20  ;;  %s5458_s23 = sadd.s32 1, %s5321_s21  }
  0x1b   : > { %6687 = sst [smem:[#allocation40_spill]] %s5455_s22  ;;  %s71_s24 = ssub.s32 %s5321_s21, %s5458_s23 }
  0x1c   : > { %6688 = sst [smem:[#allocation41_spill]] %s5458_s23  ;;  %s74_s25 = sadd.s32 1, %s5317_s20 }
  0x1d   : > { %p72_p0 = scmp.eq.s32.totalorder %s71_s24, 0  ;;  %p81_p1 = scmp.ne.s32.totalorder %s5317_s20, %s5313_s19 }
  0x1e   : > { %p82_p2 = scmp.eq.s32.totalorder %s5321_s21, 0  ;;  %p87_p3 = scmp.ne.s32.totalorder %s5313_s19, %s5309_s18 }
  0x1f   : > { %s5468_s26 = scalar_select %p72_p0, %s5317_s20, %s74_s25  }
  0x20   : > { %p5470_p4 = por %p82_p2, %p81_p1  ;;  %p6654_p5 = scmp.eq.s32.totalorder %s5455_s22, 0 }
  0x21   : > { %6689 = sst [smem:[#allocation42_spill]] %s5468_s26  ;;  %p3888_p6 = scmp.ge.s32.totalorder %s5321_s21, 1 }
  0x22   : > { %p442_p7 = scmp.lt.s32.totalorder %s5321_s21, 3  ;;  %p5479_p8 = por %p6654_p5, %p87_p3 }
  0x23   : > { %s5323_s30 = smov [#allocation23]   ;;  %p4424_p12 = scmp.lt.s32.totalorder %s5321_s21, 2 }
  0x24   : > { %s6691_s28 = scalar_select %p5479_p8, 1, 0 }
  0x25   : > { %p5484_p10 = pnand %p3888_p6, %p442_p7  ;;  %s468_s16 = sshll.u32 %s5323_s30, 4  ;;  %s469_s16 = int_to_ptr.vmem [resolvable:$true] %s468_s16 }
  0x26   : > { %6692 = sst [smem:[#allocation43_spill]] %s6691_s28  ;;  %s5492_s17 = sand.u32 1, %s5317_s20  }
  0x27   : > { %s6693_s29 = scalar_select %p5484_p10, 1, 0 }
  0x28   : > { %p4373_p11 = pneg %p5484_p10  ;;  %p5502_p0 = pnand %p4424_p12, %p5470_p4 }
  0x29   : > { %6694 = sst [smem:[#allocation44_spill]] %s6693_s29  ;;  %s5324_s25 = smov [#allocation24]  }
  0x2a   : > { %p5496_p13 = pnand %p4373_p11, %p6654_p5  ;;  %s479_s26 = sshll.u32 %s5324_s25, 4  ;;  %s5506_s26 = int_to_ptr.vmem [resolvable:$true] %s479_s26 }
  0x2b   : > { %s6696_s24 = scalar_select %p5502_p0, 1, 0 }
  0x2c   : > { %s6695_s18 = scalar_select %p5496_p13, 1, 0 }
  0x2d   : > { %s6697_s12 = sld [smem:[#allocation50_spill]]  ;;  %p5516_p2 = pneg %p5496_p13 }
  0x2f   : > { %s6698_s27 = scalar_select %p5516_p2, 1, 0 }
  0x33   : > { %s4783_s20 = scalar_lea.hbm %s6697_s12, 16 }
  0x34   : > { %p4784_p1 = scmp.ne.s32.totalorder %s6697_s12, %s4783_s20  ;;  %p4790_p6 = scmp.lt.u32.totalorder %s4783_s20, %s6697_s12 }
  0x36   : > { %p4786_p3 = pnand %p5516_p2, %p4784_p1 }
  0x38   : > { %p4787_p4 = pneg %p4786_p3 }
  0x3a   : > { %p4792_p7 = pnand %p4790_p6, %p4787_p4 }
  0x3c   : > { %4795 = shalt.err (!%p4792_p7)
}
  0x3d   : > { %s4796_s23 = scalar_lea.vmem %s469_s16, 16  ;;  %s4803_s15 = scalar_lea.vmem %s469_s16, 32 }
  0x3e   : > { %p4797_p11 = scmp.ne.s32.totalorder %s469_s16, %s4796_s23  ;;  %p4804_p5 = scmp.lt.s32.totalorder %s469_s16, %s469_s16 }
  0x3f   : > { %p4805_p8 = scmp.lt.s32.totalorder %s4803_s15, %s4796_s23 }
  0x40   : > { %p4799_p12 = pnand %p4797_p11, %p5516_p2 }
  0x41   : > { %p4806_p10 = por %p4805_p8, %p4804_p5 }
  0x42   : > { %p4800_p9 = pneg %p4799_p12 }
  0x44   : > { %p4807_p0 = pnand %p4806_p10, %p4800_p9 }
  0x46   : > { %4810 = shalt.err (!%p4807_p0)
}
  0x47   : > { %4379 = dma.hbm_to_vmem [thread:$0]  (!%p5496_p13), %s6697_s12, 16, %s469_s16, [#allocation22]  }
  0x48   : > { %s5533_s19 = sand.u32 1, %s5321_s21   ;;  %s6699_s13 = sld [smem:[#allocation51_spill]] }
  0x4e   : > { %s4811_s22 = scalar_lea.hbm %s6699_s13, 16 }
  0x4f   : > { %p4812_p5 = scmp.ne.s32.totalorder %s6699_s13, %s4811_s22  ;;  %p4818_p10 = scmp.lt.u32.totalorder %s4811_s22, %s6699_s13 }
  0x51   : > { %p4814_p8 = pnand %p4812_p5, %p5516_p2 }
  0x53   : > { %p4815_p9 = pneg %p4814_p8 }
  0x55   : > { %p4820_p0 = pnand %p4818_p10, %p4815_p9 }
  0x57   : > { %4823 = shalt.err (!%p4820_p0)
}
  0x58   : > { %s4824_s16 = scalar_lea.vmem %s5506_s26, 16  ;;  %s4831_s11 = scalar_lea.vmem %s5506_s26, 32 }
  0x59   : > { %p4825_p1 = scmp.ne.s32.totalorder %s5506_s26, %s4824_s16  ;;  %p4832_p6 = scmp.lt.s32.totalorder %s5506_s26, %s5506_s26 }
  0x5a   : > { %p4833_p7 = scmp.lt.s32.totalorder %s4831_s11, %s4824_s16 }
  0x5b   : > { %p4827_p3 = pnand %p4825_p1, %p5516_p2 }
  0x5c   : > { %p4834_p11 = por %p4833_p7, %p4832_p6 }
  0x5d   : > { %p4828_p4 = pneg %p4827_p3 }
  0x5f   : > { %p4835_p12 = pnand %p4834_p11, %p4828_p4 }
  0x61   : > { %4838 = shalt.err (!%p4835_p12)
}
  0x62   : > { %4382 = dma.hbm_to_vmem [thread:$0]  (!%p5496_p13), %s6699_s13, 16, %s5506_s26, [#allocation25]  }
  0x63   : > { %s5560_s28 = sshll.u32 %s5321_s21, 4  ;;  %s506_s30 = scalar_lea.vmem [#allocation6], %s5492_s17 }
  0x64   : > { %s513_s20 = sshll.u32 %s506_s30, 4  ;;  %s6700_s1 = sld [smem:[#allocation45_spill]]  ;;  %s5569_s20 = int_to_ptr.vmem [resolvable:$true] %s513_s20 }
  0x65   : > { %p6701_p8 = scmp.ne.s32.totalorder %s6696_s24, 0 }
  0x67   : > { %p5576_p9 = pneg %p6701_p8 }
  0x69   : > { %s6702_s26 = scalar_select %p5576_p9, 1, 0 }
  0x6a   : > { %s5567_s15 = scalar_lea.hbm %s6700_s1, %s5560_s28  ;;  %s4844_s30 = scalar_lea.hbm %s6700_s1, 32 }
  0x6b   : > { %s4839_s11 = scalar_lea.hbm %s5567_s15, 16  ;;  %p4845_p1 = scmp.lt.u32.totalorder %s5567_s15, %s6700_s1 }
  0x6c   : > { %p4840_p5 = scmp.ne.s32.totalorder %s5567_s15, %s4839_s11  ;;  %p4846_p3 = scmp.lt.u32.totalorder %s4844_s30, %s4839_s11 }
  0x6d   : > { %p4848_p6 = scmp.lt.u32.totalorder %s4839_s11, %s5567_s15 }
  0x6e   : > { %p4842_p10 = pnand %p5576_p9, %p4840_p5  ;;  %p4847_p4 = por %p4846_p3, %p4845_p1 }
  0x70   : > { %p4843_p0 = pneg %p4842_p10  ;;  %p4849_p7 = por %p4848_p6, %p4847_p4 }
  0x72   : > { %p4850_p11 = pnand %p4849_p7, %p4843_p0 }
  0x74   : > { %4853 = shalt.err (!%p4850_p11)
}
  0x75   : > { %s4854_s16 = scalar_lea.vmem %s5569_s20, 16  ;;  %s5325_s22 = smov [#allocation6]  }
  0x76   : > { %p4855_p12 = scmp.ne.s32.totalorder %s5569_s20, %s4854_s16  ;;  %s4859_s29 = sshll.u32 %s5325_s22, 4  ;;  %s4860_s29 = int_to_ptr.vmem [resolvable:$false] %s4859_s29 }
  0x77   : > { %s4861_s25 = scalar_lea.vmem %s4860_s29, 32  ;;  %p4862_p13 = scmp.lt.s32.totalorder %s5569_s20, %s4860_s29 }
  0x78   : > { %p4857_p5 = pnand %p4855_p12, %p5576_p9  ;;  %p4863_p2 = scmp.lt.s32.totalorder %s4861_s25, %s4854_s16 }
  0x7a   : > { %p4858_p10 = pneg %p4857_p5  ;;  %p4864_p1 = por %p4863_p2, %p4862_p13 }
  0x7c   : > { %p4865_p3 = pnand %p4864_p1, %p4858_p10 }
  0x7e   : > { %4868 = shalt.err (!%p4865_p3)
}
  0x7f   : > { %s6703_s11 = scalar_lea.sflag [#allocation7], %s5533_s19  ;;  %s4328_s30 = smul.u32 192, %s5492_s17 }
  0x80   : > { %4389 = dma.hbm_to_vmem [thread:$0]  (!%p6701_p8), %s5567_s15, 16, %s5569_s20, %s6703_s11  }
  0x81   : > { %s4329_s23 = smul.u32 3072, %s5321_s21  ;;  %s6704_s3 = sld [smem:[#allocation46_spill]] }
  0x82   : > { %s541_s29 = scalar_lea.vmem [#allocation9], %s4328_s30  ;;  %s6669_s12 = scalar_lea.sflag [#allocation10], %s5533_s19 }
  0x83   : > { %s548_s25 = sshll.u32 %s541_s29, 4  ;;  %s5608_s25 = int_to_ptr.vmem [resolvable:$true] %s548_s25 }
  0x87   : > { %s5606_s16 = scalar_lea.hbm %s6704_s3, %s4329_s23  ;;  %s4874_s1 = scalar_lea.hbm %s6704_s3, 6144 }
  0x88   : > { %s4869_s13 = scalar_lea.hbm %s5606_s16, 3072  ;;  %p4875_p4 = scmp.lt.u32.totalorder %s5606_s16, %s6704_s3 }
  0x89   : > { %p4870_p13 = scmp.ne.s32.totalorder %s5606_s16, %s4869_s13  ;;  %p4876_p6 = scmp.lt.u32.totalorder %s4874_s1, %s4869_s13 }
  0x8a   : > { %p4878_p11 = scmp.lt.u32.totalorder %s4869_s13, %s5606_s16 }
  0x8b   : > { %p4872_p2 = pnand %p4870_p13, %p5576_p9  ;;  %p4877_p7 = por %p4876_p6, %p4875_p4 }
  0x8d   : > { %p4873_p0 = pneg %p4872_p2  ;;  %p4879_p12 = por %p4878_p11, %p4877_p7 }
  0x8f   : > { %p4880_p5 = pnand %p4879_p12, %p4873_p0 }
  0x91   : > { %4883 = shalt.err (!%p4880_p5)
}
  0x92   : > { %s4884_s30 = scalar_lea.vmem %s5608_s25, 3072  ;;  %s5326_s22 = smov [#allocation9]  }
  0x93   : > { %p4885_p10 = scmp.ne.s32.totalorder %s5608_s25, %s4884_s30  ;;  %s4889_s29 = sshll.u32 %s5326_s22, 4  ;;  %s4890_s29 = int_to_ptr.vmem [resolvable:$false] %s4889_s29 }
  0x94   : > { %s4891_s20 = scalar_lea.vmem %s4890_s29, 6144  ;;  %p4892_p13 = scmp.lt.s32.totalorder %s5608_s25, %s4890_s29 }
  0x95   : > { %p4887_p1 = pnand %p4885_p10, %p5576_p9  ;;  %p4893_p2 = scmp.lt.s32.totalorder %s4891_s20, %s4884_s30 }
  0x97   : > { %p4888_p3 = pneg %p4887_p1  ;;  %p4894_p4 = por %p4893_p2, %p4892_p13 }
  0x99   : > { %p4895_p6 = pnand %p4894_p4, %p4888_p3 }
  0x9b   : > { %4898 = shalt.err (!%p4895_p6)
}
  0x9c   : > { %s5327_s13 = smov 192   ;;  %s5328_s15 = smov 12  }
  0x9d   : > { %4395 = dma.hbm_to_vmem [thread:$0]  (!%p6701_p8), %s5606_s16, 3072, %s5608_s25, %s6669_s12, %s5327_s13, %s5327_s13, %s5328_s15  }
  0x9e   : > { %s6705_s5 = sld [smem:[#allocation47_spill]]  ;;  %s582_s30 = scalar_lea.vmem [#allocation12], %s5492_s17 }
  0x9f   : > { %s589_s22 = sshll.u32 %s582_s30, 4  ;;  %s6668_s29 = scalar_lea.sflag [#allocation13], %s5533_s19  ;;  %s590_s22 = int_to_ptr.vmem [resolvable:$true] %s589_s22 }
  0xa4   : > { %s5638_s23 = scalar_lea.hbm %s6705_s5, %s5560_s28  ;;  %s4904_s25 = scalar_lea.hbm %s6705_s5, 32 }
  0xa5   : > { %s4899_s20 = scalar_lea.hbm %s5638_s23, 16  ;;  %p4905_p12 = scmp.lt.u32.totalorder %s5638_s23, %s6705_s5 }
  0xa6   : > { %p4900_p0 = scmp.ne.s32.totalorder %s5638_s23, %s4899_s20  ;;  %p4906_p5 = scmp.lt.u32.totalorder %s4904_s25, %s4899_s20 }
  0xa7   : > { %p4908_p1 = scmp.lt.u32.totalorder %s4899_s20, %s5638_s23 }
  0xa8   : > { %p4902_p7 = pnand %p4900_p0, %p5576_p9  ;;  %p4907_p10 = por %p4906_p5, %p4905_p12 }
  0xaa   : > { %p4903_p11 = pneg %p4902_p7  ;;  %p4909_p3 = por %p4908_p1, %p4907_p10 }
  0xac   : > { %p4910_p13 = pnand %p4909_p3, %p4903_p11 }
  0xae   : > { %4913 = shalt.err (!%p4910_p13)
}
  0xaf   : > { %s4914_s1 = scalar_lea.vmem %s590_s22, 16  ;;  %s5329_s11 = smov [#allocation12]  }
  0xb0   : > { %p4915_p2 = scmp.ne.s32.totalorder %s590_s22, %s4914_s1  ;;  %s4919_s30 = sshll.u32 %s5329_s11, 4  ;;  %s4920_s30 = int_to_ptr.vmem [resolvable:$false] %s4919_s30 }
  0xb1   : > { %s4921_s3 = scalar_lea.vmem %s4920_s30, 32  ;;  %p4922_p0 = scmp.lt.s32.totalorder %s590_s22, %s4920_s30 }
  0xb2   : > { %p4917_p4 = pnand %p4915_p2, %p5576_p9  ;;  %p4923_p7 = scmp.lt.s32.totalorder %s4921_s3, %s4914_s1 }
  0xb4   : > { %p4918_p6 = pneg %p4917_p4  ;;  %p4924_p8 = por %p4923_p7, %p4922_p0 }
  0xb6   : > { %p4925_p5 = pnand %p4924_p8, %p4918_p6 }
  0xb8   : > { %4928 = shalt.err (!%p4925_p5)
}
  0xb9   : > { %p6706_p12 = scmp.ne.s32.totalorder %s6696_s24, 0  ;;  %s6707_s7 = sld [smem:[#allocation48_spill]] }
  0xba   : > { %s616_s13 = scalar_lea.vmem [#allocation15], %s5492_s17  ;;  %s6670_s1 = scalar_lea.sflag [#allocation16], %s5533_s19 }
  0xbb   : > { %4401 = dma.hbm_to_vmem [thread:$0]  (!%p6706_p12), %s5638_s23, 16, %s590_s22, %s6668_s29  }
  0xbc   : > { %s623_s15 = sshll.u32 %s616_s13, 4  ;;  %s624_s15 = int_to_ptr.vmem [resolvable:$true] %s623_s15 }
  0xbf   : > { %s5665_s25 = scalar_lea.hbm %s6707_s7, %s5560_s28  ;;  %s4934_s22 = scalar_lea.hbm %s6707_s7, 32 }
  0xc0   : > { %s4929_s11 = scalar_lea.hbm %s5665_s25, 16  ;;  %p4935_p1 = scmp.lt.u32.totalorder %s5665_s25, %s6707_s7 }
  0xc1   : > { %p4930_p8 = scmp.ne.s32.totalorder %s5665_s25, %s4929_s11  ;;  %p4936_p3 = scmp.lt.u32.totalorder %s4934_s22, %s4929_s11 }
  0xc2   : > { %p4938_p2 = scmp.lt.u32.totalorder %s4929_s11, %s5665_s25 }
  0xc3   : > { %p4932_p11 = pnand %p4930_p8, %p5576_p9  ;;  %p4937_p13 = por %p4936_p3, %p4935_p1 }
  0xc5   : > { %p4933_p10 = pneg %p4932_p11  ;;  %p4939_p4 = por %p4938_p2, %p4937_p13 }
  0xc7   : > { %p4940_p6 = pnand %p4939_p4, %p4933_p10 }
  0xc9   : > { %4943 = shalt.err (!%p4940_p6)
}
  0xca   : > { %s4944_s16 = scalar_lea.vmem %s624_s15, 16  ;;  %s5330_s13 = smov [#allocation15]  }
  0xcb   : > { %p4945_p0 = scmp.ne.s32.totalorder %s624_s15, %s4944_s16  ;;  %s4949_s29 = sshll.u32 %s5330_s13, 4  ;;  %s4950_s29 = int_to_ptr.vmem [resolvable:$false] %s4949_s29 }
  0xcc   : > { %s4951_s30 = scalar_lea.vmem %s4950_s29, 32  ;;  %p4952_p8 = scmp.lt.s32.totalorder %s624_s15, %s4950_s29 }
  0xcd   : > { %p4947_p7 = pnand %p4945_p0, %p5576_p9  ;;  %p4953_p11 = scmp.lt.s32.totalorder %s4951_s30, %s4944_s16 }
  0xcf   : > { %p4948_p5 = pneg %p4947_p7  ;;  %p4954_p12 = por %p4953_p11, %p4952_p8 }
  0xd1   : > { %p4955_p1 = pnand %p4954_p12, %p4948_p5 }
  0xd3   : > { %4958 = shalt.err (!%p4955_p1)
}
  0xd4   : > { %p6708_p3 = scmp.ne.s32.totalorder %s6696_s24, 0  ;;  %s3906_s11 = sshll.u32 %s5492_s17, 2 }
  0xd5   : > { %s4066_s23 = sshll.u32 %s5321_s21, 6  ;;  %s655_s20 = scalar_lea.vmem [#allocation18], %s3906_s11 }
  0xd6   : > { %4407 = dma.hbm_to_vmem [thread:$0]  (!%p6708_p3), %s5665_s25, 16, %s624_s15, %s6670_s1  }
  0xd7   : > { %s5693_s29 = scalar_lea.hbm %s6640_s9, %s4066_s23  ;;  %s663_s16 = sshll.u32 %s655_s20, 4  ;;  %s5695_s16 = int_to_ptr.vmem [resolvable:$true] %s663_s16 }
  0xd8   : > { %s5331_s13 = smov [#allocation3]   ;;  %s6672_s12 = scalar_lea.sflag [#allocation19], %s5533_s19 }
  0xd9   : > { %s5697_s30 = sshll.u32 %s5331_s13, 4  ;;  %s4959_s25 = scalar_lea.hbm %s5693_s29, 64  ;;  %s455_s30 = int_to_ptr.vmem [resolvable:$true] %s5697_s30 }
  0xda   : > { %p4960_p12 = scmp.ne.s32.totalorder %s5693_s29, %s4959_s25  ;;  %s4964_s22 = scalar_lea.hbm %s6640_s9, 128 }
  0xdb   : > { %p4965_p2 = scmp.lt.u32.totalorder %s5693_s29, %s6640_s9  ;;  %p4966_p4 = scmp.lt.u32.totalorder %s4964_s22, %s4959_s25 }
  0xdc   : > { %p4962_p10 = pnand %p4960_p12, %p5576_p9  ;;  %p4968_p0 = scmp.lt.u32.totalorder %s4959_s25, %s5693_s29 }
  0xdd   : > { %p4967_p6 = por %p4966_p4, %p4965_p2 }
  0xde   : > { %p4963_p13 = pneg %p4962_p10 }
  0xdf   : > { %p4969_p7 = por %p4968_p0, %p4967_p6 }
  0xe1   : > { %p4970_p5 = pnand %p4969_p7, %p4963_p13 }
  0xe3   : > { %4973 = shalt.err (!%p4970_p5)
}
  0xe4   : > { %s4974_s11 = scalar_lea.vmem %s5695_s16, 64  ;;  %s5332_s20 = smov [#allocation18]  }
  0xe5   : > { %p4975_p8 = scmp.ne.s32.totalorder %s5695_s16, %s4974_s11  ;;  %s4979_s13 = sshll.u32 %s5332_s20, 4  ;;  %s4980_s13 = int_to_ptr.vmem [resolvable:$false] %s4979_s13 }
  0xe6   : > { %s4981_s1 = scalar_lea.vmem %s4980_s13, 128  ;;  %p4982_p12 = scmp.lt.s32.totalorder %s5695_s16, %s4980_s13 }
  0xe7   : > { %p4977_p11 = pnand %p4975_p8, %p5576_p9  ;;  %p4983_p10 = scmp.lt.s32.totalorder %s4981_s1, %s4974_s11 }
  0xe9   : > { %p4978_p1 = pneg %p4977_p11  ;;  %p4984_p2 = por %p4983_p10, %p4982_p12 }
  0xeb   : > { %p4985_p4 = pnand %p4984_p2, %p4978_p1 }
  0xed   : > { %4988 = shalt.err (!%p4985_p4)
}
  0xee   : > { %4413 = dma.hbm_to_vmem [thread:$0]  (!%p6708_p3), %s5693_s29, 64, %s5695_s16, %s6672_s12  }
  0xef   : > { %s4989_s23 = scalar_lea.hbm %s6631_s0, 512  ;;  %p6709_p6 = scmp.ne.s32.totalorder %s6698_s27, 0 }
  0xf0   : > { %p4990_p13 = scmp.ne.s32.totalorder %s6631_s0, %s4989_s23  ;;  %p4996_p5 = scmp.lt.u32.totalorder %s4989_s23, %s6631_s0 }
  0xf2   : > { %p4992_p0 = pnand %p4990_p13, %p6709_p6 }
  0xf4   : > { %p4993_p7 = pneg %p4992_p0 }
  0xf6   : > { %p4998_p8 = pnand %p4996_p5, %p4993_p7 }
  0xf8   : > { %5001 = shalt.err (!%p4998_p8)
}
  0xf9   : > { %s5002_s13 = scalar_lea.vmem %s455_s30, 512  ;;  %p5010_p10 = scmp.lt.s32.totalorder %s455_s30, %s455_s30 }
  0xfa   : > { %p5003_p11 = scmp.ne.s32.totalorder %s455_s30, %s5002_s13  ;;  %p5011_p2 = scmp.lt.s32.totalorder %s5002_s13, %s5002_s13 }
  0xfc   : > { %p5005_p1 = pnand %p5003_p11, %p6709_p6  ;;  %p5012_p4 = por %p5011_p2, %p5010_p10 }
  0xfe   : > { %p5006_p12 = pneg %p5005_p1 }
 0x100   : > { %p5013_p3 = pnand %p5012_p4, %p5006_p12 }
 0x102   : > { %5016 = shalt.err (!%p5013_p3)
}
 0x103   : > { %s5333_s29 = smov 128   ;;  %s5334_s16 = smov 8  }
 0x104   : > { %p6710_p13 = scmp.ne.s32.totalorder %s6695_s18, 0  ;;  %s5335_s15 = smov [#allocation26]  }
 0x105   : > { %s489_s23 = sshll.u32 %s5335_s15, 4  ;;  %s5746_s11 = scalar_lea.hbm %s6633_s2, %s5560_s28  ;;  %s490_s23 = int_to_ptr.vmem [resolvable:$true] %s489_s23 }
 0x106   : > { %4376 = dma.hbm_to_vmem [thread:$0]  (!%p6710_p13), %s6631_s0, 512, %s455_s30, [#allocation4], %s5333_s29, %s5333_s29, %s5334_s16  }
 0x107   : > { %s5017_s12 = scalar_lea.hbm %s6645_s14, 2048 }
 0x108   : > { %p5018_p3 = scmp.ne.s32.totalorder %s6645_s14, %s5017_s12  ;;  %p5024_p5 = scmp.lt.u32.totalorder %s5017_s12, %s6645_s14 }
 0x10a   : > { %p5020_p0 = pnand %p5018_p3, %p6709_p6 }
 0x10c   : > { %p5021_p7 = pneg %p5020_p0 }
 0x10e   : > { %p5026_p8 = pnand %p5024_p5, %p5021_p7 }
 0x110   : > { %5029 = shalt.err (!%p5026_p8)
}
 0x111   : > { %s5030_s25 = scalar_lea.vmem %s490_s23, 2048  ;;  %p5038_p10 = scmp.lt.s32.totalorder %s490_s23, %s490_s23 }
 0x112   : > { %p5031_p11 = scmp.ne.s32.totalorder %s490_s23, %s5030_s25  ;;  %p5039_p2 = scmp.lt.s32.totalorder %s5030_s25, %s5030_s25 }
 0x114   : > { %p5033_p1 = pnand %p5031_p11, %p6709_p6  ;;  %p5040_p4 = por %p5039_p2, %p5038_p10 }
 0x116   : > { %p5034_p12 = pneg %p5033_p1 }
 0x118   : > { %p5041_p9 = pnand %p5040_p4, %p5034_p12 }
 0x11a   : > { %5044 = shalt.err (!%p5041_p9)
}
 0x11b   : > { %4385 = dma.hbm_to_vmem [thread:$0]  (!%p6710_p13), %s6645_s14, 2048, %s490_s23, [#allocation25], %s5333_s29, %s5333_s29, %s5334_s16  }
 0x11c   : > { %s523_s12 = scalar_lea.vmem [#allocation8], %s5492_s17  ;;  %s3897_s15 = sshll.u32 %s5492_s17, 6 }
 0x11d   : > { %s530_s27 = sshll.u32 %s523_s12, 4  ;;  %s5045_s22 = scalar_lea.hbm %s5746_s11, 16  ;;  %s531_s27 = int_to_ptr.vmem [resolvable:$true] %s530_s27 }
 0x11e   : > { %p5046_p6 = scmp.ne.s32.totalorder %s5746_s11, %s5045_s22  ;;  %p6711_p9 = scmp.ne.s32.totalorder %s6702_s26, 0 }
 0x11f   : > { %s5050_s20 = scalar_lea.hbm %s6633_s2, 32  ;;  %p5051_p7 = scmp.lt.u32.totalorder %s5746_s11, %s6633_s2 }
 0x120   : > { %p5048_p3 = pnand %p5046_p6, %p6711_p9  ;;  %p5052_p5 = scmp.lt.u32.totalorder %s5050_s20, %s5045_s22 }
 0x121   : > { %p5054_p13 = scmp.lt.u32.totalorder %s5045_s22, %s5746_s11 }
 0x122   : > { %p5049_p0 = pneg %p5048_p3  ;;  %p5053_p8 = por %p5052_p5, %p5051_p7 }
 0x124   : > { %p5055_p11 = por %p5054_p13, %p5053_p8 }
 0x126   : > { %p5056_p1 = pnand %p5055_p11, %p5049_p0 }
 0x128   : > { %5059 = shalt.err (!%p5056_p1)
}
 0x129   : > { %s5060_s29 = scalar_lea.vmem %s531_s27, 16  ;;  %s5336_s16 = smov [#allocation8]  }
 0x12a   : > { %p5061_p12 = scmp.ne.s32.totalorder %s531_s27, %s5060_s29  ;;  %s5065_s23 = sshll.u32 %s5336_s16, 4  ;;  %s5066_s23 = int_to_ptr.vmem [resolvable:$false] %s5065_s23 }
 0x12b   : > { %s5067_s1 = scalar_lea.vmem %s5066_s23, 32  ;;  %p5068_p4 = scmp.lt.s32.totalorder %s531_s27, %s5066_s23 }
 0x12c   : > { %p5063_p10 = pnand %p5061_p12, %p6711_p9  ;;  %p5069_p6 = scmp.lt.s32.totalorder %s5067_s1, %s5060_s29 }
 0x12e   : > { %p5064_p2 = pneg %p5063_p10  ;;  %p5070_p3 = por %p5069_p6, %p5068_p4 }
 0x130   : > { %p5071_p5 = pnand %p5070_p3, %p5064_p2 }
 0x132   : > { %5074 = shalt.err (!%p5071_p5)
}
 0x133   : > { %p6712_p7 = scmp.ne.s32.totalorder %s6696_s24, 0  ;;  %s6713_s25 = scalar_lea.sflag [#allocation7], %s5533_s19 }
 0x134   : > { %s4064_s5 = sshll.u32 %s5321_s21, 10  ;;  %s562_s7 = scalar_lea.vmem [#allocation11], %s3897_s15 }
 0x135   : > { %4392 = dma.hbm_to_vmem [thread:$0]  (!%p6712_p7), %s5746_s11, 16, %s531_s27, %s6713_s25  }
 0x136   : > { %s569_s12 = sshll.u32 %s562_s7, 4  ;;  %s5793_s3 = scalar_lea.hbm %s6635_s4, %s4064_s5  ;;  %s5795_s12 = int_to_ptr.vmem [resolvable:$true] %s569_s12 }
 0x137   : > { %s5075_s20 = scalar_lea.hbm %s5793_s3, 1024  ;;  %s5080_s15 = scalar_lea.hbm %s6635_s4, 2048 }
 0x138   : > { %p5076_p0 = scmp.ne.s32.totalorder %s5793_s3, %s5075_s20  ;;  %p5081_p11 = scmp.lt.u32.totalorder %s5793_s3, %s6635_s4 }
 0x139   : > { %p5082_p1 = scmp.lt.u32.totalorder %s5080_s15, %s5075_s20  ;;  %p5084_p10 = scmp.lt.u32.totalorder %s5075_s20, %s5793_s3 }
 0x13a   : > { %p5078_p8 = pnand %p5076_p0, %p6711_p9 }
 0x13b   : > { %p5083_p12 = por %p5082_p1, %p5081_p11 }
 0x13c   : > { %p5079_p13 = pneg %p5078_p8 }
 0x13d   : > { %p5085_p2 = por %p5084_p10, %p5083_p12 }
 0x13f   : > { %p5086_p4 = pnand %p5085_p2, %p5079_p13 }
 0x141   : > { %5089 = shalt.err (!%p5086_p4)
}
 0x142   : > { %s5090_s29 = scalar_lea.vmem %s5795_s12, 1024  ;;  %s5337_s16 = smov [#allocation11]  }
 0x143   : > { %p5091_p6 = scmp.ne.s32.totalorder %s5795_s12, %s5090_s29  ;;  %s5095_s23 = sshll.u32 %s5337_s16, 4  ;;  %s5096_s23 = int_to_ptr.vmem [resolvable:$false] %s5095_s23 }
 0x144   : > { %s5097_s1 = scalar_lea.vmem %s5096_s23, 2048  ;;  %p5098_p0 = scmp.lt.s32.totalorder %s5795_s12, %s5096_s23 }
 0x145   : > { %p5093_p3 = pnand %p5091_p6, %p6711_p9  ;;  %p5099_p8 = scmp.lt.s32.totalorder %s5097_s1, %s5090_s29 }
 0x147   : > { %p5094_p5 = pneg %p5093_p3  ;;  %p5100_p11 = por %p5099_p8, %p5098_p0 }
 0x149   : > { %p5101_p1 = pnand %p5100_p11, %p5094_p5 }
 0x14b   : > { %5104 = shalt.err (!%p5101_p1)
}
 0x14c   : > { %s5338_s25 = smov 64   ;;  %s5339_s5 = smov 4  }
 0x14d   : > { %s6714_s7 = scalar_lea.sflag [#allocation10], %s5533_s19  ;;  %s5827_s20 = scalar_lea.hbm %s6637_s6, %s5560_s28 }
 0x14e   : > { %4398 = dma.hbm_to_vmem [thread:$0]  (!%p6712_p7), %s5793_s3, 1024, %s5795_s12, %s6714_s7, %s5338_s25, %s5338_s25, %s5339_s5  }
 0x14f   : > { %s599_s11 = scalar_lea.vmem [#allocation14], %s5492_s17  ;;  %s3903_s15 = sshll.u32 %s5492_s17, 8 }
 0x150   : > { %s606_s27 = sshll.u32 %s599_s11, 4  ;;  %s5105_s13 = scalar_lea.hbm %s5827_s20, 16  ;;  %s607_s27 = int_to_ptr.vmem [resolvable:$true] %s606_s27 }
 0x151   : > { %p5106_p13 = scmp.ne.s32.totalorder %s5827_s20, %s5105_s13  ;;  %s5110_s3 = scalar_lea.hbm %s6637_s6, 32 }
 0x152   : > { %p5111_p2 = scmp.lt.u32.totalorder %s5827_s20, %s6637_s6  ;;  %p5112_p4 = scmp.lt.u32.totalorder %s5110_s3, %s5105_s13 }
 0x153   : > { %p5108_p12 = pnand %p5106_p13, %p6711_p9  ;;  %p5114_p3 = scmp.lt.u32.totalorder %s5105_s13, %s5827_s20 }
 0x154   : > { %p5113_p6 = por %p5112_p4, %p5111_p2 }
 0x155   : > { %p5109_p10 = pneg %p5108_p12 }
 0x156   : > { %p5115_p5 = por %p5114_p3, %p5113_p6 }
 0x158   : > { %p5116_p0 = pnand %p5115_p5, %p5109_p10 }
 0x15a   : > { %5119 = shalt.err (!%p5116_p0)
}
 0x15b   : > { %s5120_s23 = scalar_lea.vmem %s607_s27, 16  ;;  %s5340_s1 = smov [#allocation14]  }
 0x15c   : > { %p5121_p8 = scmp.ne.s32.totalorder %s607_s27, %s5120_s23  ;;  %s5125_s7 = sshll.u32 %s5340_s1, 4  ;;  %s5126_s7 = int_to_ptr.vmem [resolvable:$false] %s5125_s7 }
 0x15d   : > { %s5127_s22 = scalar_lea.vmem %s5126_s7, 32  ;;  %p5128_p13 = scmp.lt.s32.totalorder %s607_s27, %s5126_s7 }
 0x15e   : > { %p5123_p11 = pnand %p5121_p8, %p6711_p9  ;;  %p5129_p12 = scmp.lt.s32.totalorder %s5127_s22, %s5120_s23 }
 0x160   : > { %p5124_p1 = pneg %p5123_p11  ;;  %p5130_p7 = por %p5129_p12, %p5128_p13 }
 0x162   : > { %p5131_p2 = pnand %p5130_p7, %p5124_p1 }
 0x164   : > { %5134 = shalt.err (!%p5131_p2)
}
 0x165   : > { %p6715_p4 = scmp.ne.s32.totalorder %s6696_s24, 0  ;;  %s6716_s18 = scalar_lea.sflag [#allocation13], %s5533_s19 }
 0x166   : > { %s4065_s11 = sshll.u32 %s5321_s21, 12  ;;  %s634_s13 = scalar_lea.vmem [#allocation17], %s3903_s15 }
 0x167   : > { %4404 = dma.hbm_to_vmem [thread:$0]  (!%p6715_p4), %s5827_s20, 16, %s607_s27, %s6716_s18  }
 0x168   : > { %s641_s30 = sshll.u32 %s634_s13, 4  ;;  %s5858_s29 = scalar_lea.hbm %s6639_s8, %s4065_s11  ;;  %s5860_s30 = int_to_ptr.vmem [resolvable:$true] %s641_s30 }
 0x169   : > { %s5135_s16 = scalar_lea.hbm %s5858_s29, 4096  ;;  %s5140_s23 = scalar_lea.hbm %s6639_s8, 8192 }
 0x16a   : > { %p5136_p7 = scmp.ne.s32.totalorder %s5858_s29, %s5135_s16  ;;  %p5141_p3 = scmp.lt.u32.totalorder %s5858_s29, %s6639_s8 }
 0x16b   : > { %p5142_p5 = scmp.lt.u32.totalorder %s5140_s23, %s5135_s16  ;;  %p5144_p8 = scmp.lt.u32.totalorder %s5135_s16, %s5858_s29 }
 0x16c   : > { %p5138_p10 = pnand %p5136_p7, %p6711_p9 }
 0x16d   : > { %p5143_p0 = por %p5142_p5, %p5141_p3 }
 0x16e   : > { %p5139_p6 = pneg %p5138_p10 }
 0x16f   : > { %p5145_p11 = por %p5144_p8, %p5143_p0 }
 0x171   : > { %p5146_p1 = pnand %p5145_p11, %p5139_p6 }
 0x173   : > { %5149 = shalt.err (!%p5146_p1)
}
 0x174   : > { %s5150_s22 = scalar_lea.vmem %s5860_s30, 4096  ;;  %s5341_s18 = smov [#allocation17]  }
 0x175   : > { %p5151_p13 = scmp.ne.s32.totalorder %s5860_s30, %s5150_s22  ;;  %s5155_s13 = sshll.u32 %s5341_s18, 4  ;;  %s5156_s13 = int_to_ptr.vmem [resolvable:$false] %s5155_s13 }
 0x176   : > { %s5157_s12 = scalar_lea.vmem %s5156_s13, 8192  ;;  %p5158_p7 = scmp.lt.s32.totalorder %s5860_s30, %s5156_s13 }
 0x177   : > { %p5153_p12 = pnand %p5151_p13, %p6711_p9  ;;  %p5159_p10 = scmp.lt.s32.totalorder %s5157_s12, %s5150_s22 }
 0x179   : > { %p5154_p2 = pneg %p5153_p12  ;;  %p5160_p3 = por %p5159_p10, %p5158_p7 }
 0x17b   : > { %p5161_p5 = pnand %p5160_p3, %p5154_p2 }
 0x17d   : > { %5164 = shalt.err (!%p5161_p5)
}
 0x17e   : > { %s5342_s3 = smov 256   ;;  %s5343_s16 = smov 16  }
 0x17f   : > { %s6717_s20 = scalar_lea.sflag [#allocation16], %s5533_s19  ;;  %s5890_s1 = scalar_lea.hbm %s6641_s10, %s4065_s11 }
 0x180   : > { %4410 = dma.hbm_to_vmem [thread:$0]  (!%p6715_p4), %s5858_s29, 4096, %s5860_s30, %s6717_s20, %s5342_s3, %s5342_s3, %s5343_s16  }
 0x181   : > { %s674_s7 = scalar_lea.vmem [#allocation20], %s3903_s15  ;;  %s5165_s18 = scalar_lea.hbm %s5890_s1, 4096 }
 0x182   : > { %s681_s22 = sshll.u32 %s674_s7, 4  ;;  %p5166_p6 = scmp.ne.s32.totalorder %s5890_s1, %s5165_s18  ;;  %s5894_s22 = int_to_ptr.vmem [resolvable:$true] %s681_s22 }
 0x183   : > { %s5170_s29 = scalar_lea.hbm %s6641_s10, 8192  ;;  %p5171_p11 = scmp.lt.u32.totalorder %s5890_s1, %s6641_s10 }
 0x184   : > { %p5168_p0 = pnand %p5166_p6, %p6711_p9  ;;  %p5172_p1 = scmp.lt.u32.totalorder %s5170_s29, %s5165_s18 }
 0x185   : > { %p5174_p12 = scmp.lt.u32.totalorder %s5165_s18, %s5890_s1 }
 0x186   : > { %p5169_p8 = pneg %p5168_p0  ;;  %p5173_p13 = por %p5172_p1, %p5171_p11 }
 0x188   : > { %p5175_p2 = por %p5174_p12, %p5173_p13 }
 0x18a   : > { %p5176_p7 = pnand %p5175_p2, %p5169_p8 }
 0x18c   : > { %5179 = shalt.err (!%p5176_p7)
}
 0x18d   : > { %s5180_s15 = scalar_lea.vmem %s5894_s22, 4096  ;;  %s5344_s12 = smov [#allocation20]  }
 0x18e   : > { %p5181_p10 = scmp.ne.s32.totalorder %s5894_s22, %s5180_s15  ;;  %s5185_s3 = sshll.u32 %s5344_s12, 4  ;;  %s5186_s3 = int_to_ptr.vmem [resolvable:$false] %s5185_s3 }
 0x18f   : > { %s5187_s16 = scalar_lea.vmem %s5186_s3, 8192  ;;  %p5188_p6 = scmp.lt.s32.totalorder %s5894_s22, %s5186_s3 }
 0x190   : > { %p5183_p3 = pnand %p5181_p10, %p6711_p9  ;;  %p5189_p0 = scmp.lt.s32.totalorder %s5187_s16, %s5180_s15 }
 0x192   : > { %p5184_p5 = pneg %p5183_p3  ;;  %p5190_p11 = por %p5189_p0, %p5188_p6 }
 0x194   : > { %p5191_p1 = pnand %p5190_p11, %p5184_p5 }
 0x196   : > { %5194 = shalt.err (!%p5191_p1)
}
 0x197   : > { %s6718_s20 = scalar_lea.sflag [#allocation19], %s5533_s19  ;;  %s6719_s7 = sld [smem:[#allocation49_spill]] }
 0x198   : > { %4416 = dma.hbm_to_vmem [thread:$0]  (!%p6715_p4), %s5890_s1, 4096, %s5894_s22, %s6718_s20, %s5338_s25, %s5338_s25, %s5339_s5  }
 0x199   : > { %s694_s21 = scalar_lea.vmem [#allocation21], %s5492_s17  ;;  %s692_s29 = scalar_lea.sflag [#allocation22], %s5533_s19 }
 0x19a   : > { %s701_s30 = sshll.u32 %s694_s21, 4  ;;  %s702_s30 = int_to_ptr.vmem [resolvable:$true] %s701_s30 }
 0x19d   : > { %s5926_s18 = scalar_lea.hbm %s6719_s7, %s5560_s28  ;;  %s5200_s5 = scalar_lea.hbm %s6719_s7, 32 }
 0x19e   : > { %s5195_s11 = scalar_lea.hbm %s5926_s18, 16  ;;  %p5201_p2 = scmp.lt.u32.totalorder %s5926_s18, %s6719_s7 }
 0x19f   : > { %p5196_p8 = scmp.ne.s32.totalorder %s5926_s18, %s5195_s11  ;;  %p5202_p7 = scmp.lt.u32.totalorder %s5200_s5, %s5195_s11 }
 0x1a0   : > { %p5204_p3 = scmp.lt.u32.totalorder %s5195_s11, %s5926_s18 }
 0x1a1   : > { %p5198_p13 = pnand %p5196_p8, %p6711_p9  ;;  %p5203_p10 = por %p5202_p7, %p5201_p2 }
 0x1a3   : > { %p5199_p12 = pneg %p5198_p13  ;;  %p5205_p5 = por %p5204_p3, %p5203_p10 }
 0x1a5   : > { %p5206_p6 = pnand %p5205_p5, %p5199_p12 }
 0x1a7   : > { %5209 = shalt.err (!%p5206_p6)
}
 0x1a8   : > { %s5210_s17 = scalar_lea.vmem %s702_s30, 16  ;;  %s5345_s19 = smov [#allocation21]  }
 0x1a9   : > { %p5211_p0 = scmp.ne.s32.totalorder %s702_s30, %s5210_s17  ;;  %s5215_s22 = sshll.u32 %s5345_s19, 4  ;;  %s5216_s22 = int_to_ptr.vmem [resolvable:$false] %s5215_s22 }
 0x1aa   : > { %s5217_s15 = scalar_lea.vmem %s5216_s22, 32  ;;  %p5218_p8 = scmp.lt.s32.totalorder %s702_s30, %s5216_s22 }
 0x1ab   : > { %p5213_p11 = pnand %p5211_p0, %p6711_p9  ;;  %p5219_p13 = scmp.lt.s32.totalorder %s5217_s15, %s5210_s17 }
 0x1ad   : > { %p5214_p1 = pneg %p5213_p11  ;;  %p5220_p4 = por %p5219_p13, %p5218_p8 }
 0x1af   : > { %p5221_p2 = pnand %p5220_p4, %p5214_p1 }
 0x1b1   : > { %5224 = shalt.err (!%p5221_p2)
}
 0x1b2   : > { %p6720_p7 = scmp.ne.s32.totalorder %s6696_s24, 0  ;;  %s6721_s12 = sld [smem:[#allocation44_spill]] }
 0x1b4   : > { %4419 = dma.hbm_to_vmem [thread:$0]  (!%p6720_p7), %s5926_s18, 16, %s702_s30, %s692_s29  }
 0x1b8   : > { %p6722_p12 = scmp.ne.s32.totalorder %s6721_s12, 0 }
 0x1b9   : > { %s6723_s3 = sld [smem:[#allocation40_spill]] (!%p6722_p12) }
 0x1ba   : > { %710 = sbr.rel (%p6722_p12) target bundleno = 5219 (0x1463), region = 80 }
 0x1bf   : > { %p6724_p10 = scmp.eq.s32.totalorder (!%p6722_p12), %s6723_s3, 0 }
 0x1c1   : > { %5268 = dma.done.wait (%p6724_p10), [#allocation4], 512   ;;  %p6725_p9 = pmov %p6724_p10 }
 0x1c2   : > { %s6726_s26 = sld [smem:[#allocation38_spill]]  ;;  %s6727_s16 = sld [smem:[#allocation43_spill]] }
 0x1c3   : > { %5270 = vsyncadd (%p6725_p9), [#allocation4], 4294966784  ;;  %s5954_s20 = sand.u32 1, %s6723_s3  }
 0x1c4   : > { %s717_s24 = scalar_lea.sflag [#allocation7], %s5954_s20 }
 0x1c8   : > { %s5957_s27 = sand.u32 1, %s6726_s26   ;;  %p6728_p4 = scmp.ne.s32.totalorder %s6727_s16, 0 }
 0x1c9   : > { %s719_s23 = scalar_lea.vmem [#allocation6], %s5957_s27 }
 0x1ca   : > { %5272 = dma.done.wait (%p6728_p4), %s717_s24, 32  }
 0x1cb   : > { %5274 = vsyncadd (%p6728_p4), %s717_s24, 4294967264  ;;  %s4330_s18 = smul.u32 192, %s5957_s27  ;;  %s727_s21 = scalar_lea.vmem [#allocation8], %s5957_s27 }
 0x1cc   : > { %s733_s30 = scalar_lea.sflag [#allocation10], %s5954_s20 }
 0x1cd   : > { %s5968_s29 = scalar_lea.vmem [#allocation9], %s4330_s18 }
 0x1ce   : > { %5276 = dma.done.wait (%p6728_p4), %s733_s30, 4096  }
 0x1cf   : > { %5278 = vsyncadd (%p6728_p4), %s733_s30, 4294963200  ;;  %s3915_s11 = sshll.u32 %s5957_s27, 6  ;;  %s751_s25 = scalar_lea.sflag [#allocation13], %s5954_s20 }
 0x1d0   : > { %s5975_s13 = scalar_lea.vmem [#allocation11], %s3915_s11  ;;  %s753_s5 = scalar_lea.vmem [#allocation12], %s5957_s27 }
 0x1d1   : > { %5280 = dma.done.wait (%p6728_p4), %s751_s25, 32  }
 0x1d2   : > { %5282 = vsyncadd (%p6728_p4), %s751_s25, 4294967264  ;;  %s761_s1 = scalar_lea.vmem [#allocation14], %s5957_s27  ;;  %s767_s28 = scalar_lea.sflag [#allocation16], %s5954_s20 }
 0x1d3   : > { %s769_s17 = scalar_lea.vmem [#allocation15], %s5957_s27 }
 0x1d4   : > { %5284 = dma.done.wait (%p6728_p4), %s767_s28, 4112  }
 0x1d5   : > { %5286 = vsyncadd (%p6728_p4), %s767_s28, 4294963184  ;;  %s3916_s19 = sshll.u32 %s5957_s27, 8  ;;  %s3917_s22 = sshll.u32 %s5957_s27, 2 }
 0x1d6   : > { %s5992_s15 = scalar_lea.vmem [#allocation17], %s3916_s19  ;;  %s784_s12 = scalar_lea.sflag [#allocation19], %s5954_s20 }
 0x1d7   : > { %s5995_s26 = scalar_lea.vmem [#allocation18], %s3917_s22 }
 0x1d8   : > { %5288 = dma.done.wait (%p6728_p4), %s784_s12, 4160  }
 0x1d9   : > { %5290 = vsyncadd (%p6728_p4), %s784_s12, 4294963136  ;;  %s6001_s24 = scalar_lea.vmem [#allocation20], %s3916_s19  ;;  %s802_s18 = scalar_lea.sflag [#allocation22], %s5954_s20 }
 0x1da   : > { %s804_s30 = scalar_lea.vmem [#allocation21], %s5957_s27 }
 0x1db   : > { %5292 = dma.done.wait (%p6728_p4), %s802_s18, 16  }
 0x1dc   : > { %5294 = vsyncadd (%p6728_p4), %s802_s18, 4294967280  ;;  %p6729_p3 = pmov %p6725_p9 }
 0x1de   : > { %5296 = dma.done.wait (%p6729_p3), [#allocation22], 16   ;;  %p6730_p5 = pmov %p6729_p3 }
 0x1df   : > { %p6731_p6 = pmov %p6729_p3 }
 0x1e0   : > { %5298 = vsyncadd (%p6730_p5), [#allocation22], 4294967280 }
 0x1e1   : > { %5300 = dma.done.wait (%p6731_p6), [#allocation25], 2064   ;;  %p6732_p0 = pmov %p6729_p3 }
 0x1e2   : > { %p6733_p11 = scmp.ne.s32.totalorder %s6723_s3, 0 }
 0x1e3   : > { %5302 = vsyncadd (%p6732_p0), [#allocation25], 4294965232  ;;  %v907_v0 = vld [vmem:[#allocation3] sm:$0xff] (!%p6733_p11)  ;;  %v908_v1 = vld [vmem:[#allocation3 + $0x8] sm:$0xff] (!%p6733_p11) }
 0x1e4   : > { %906 = sbr.rel (%p6733_p11) target bundleno = 491 (0x1eb), region = 144  ;;  %v909_v2 = vld [vmem:[#allocation3 + $0x10] sm:$0xff] (!%p6733_p11)  ;;  %911 = vst [vmem:[#allocation2] sm:$0xff] (!%p6733_p11), %v907_v0  ;;  %912 = vst [vmem:[#allocation2 + $0x8] sm:$0xff] (!%p6733_p11), %v908_v1  ;;  %v910_v3 = vld [vmem:[#allocation3 + $0x18] sm:$0xff] (!%p6733_p11) }
 0x1e5   : > { %913 = vst [vmem:[#allocation2 + $0x10] sm:$0xff] (!%p6733_p11), %v909_v2  ;;  %914 = vst [vmem:[#allocation2 + $0x18] sm:$0xff] (!%p6733_p11), %v910_v3 }
 0x1eb PF: > { %v915_v4 = vld [vmem:[#allocation2] sm:$0xff]  ;;  %v916_v6 = vld [vmem:[#allocation2 + $0x8] sm:$0xff]  ;;  %v4526_v32 = vld [vmem:[%s5968_s29 + $0x4c] ss:$12 sps:$4 sm:$0xff]   ;;  %v5346_v43 = vmov 0   ;;  %vm5348_vm0 = vmmov 0  }
 0x1ec   : > { %v917_v5 = vld [vmem:[#allocation2 + $0x10] sm:$0xff]  ;;  %928 = vadd.xlane.f32.xlu0 %v915_v4  ;;  %v918_v7 = vld [vmem:[#allocation2 + $0x18] sm:$0xff]  ;;  %v4518_v10 = vld [vmem:[%s5968_s29 + $0x1c] ss:$12 sps:$4 sm:$0xff]   ;;  %1187 = vmatprep.mubr.bf16.mxu0 %v5346_v43  ;;  %vm1263_vm1 = vcmask 261120   ;;  %vm1370_vm3 = vcmask 130048  }
 0x1ed   : > { %932 = vadd.xlane.f32.xlu1 %v917_v5  ;;  %v4515_v8 = vld [vmem:[%s5968_s29 + $0x4] ss:$12 sps:$4 sm:$0xff]   ;;  %v4517_v9 = vld [vmem:[%s5968_s29] ss:$12 sps:$4 sm:$0xff]   ;;  %v4520_v11 = vld [vmem:[%s5968_s29 + $0x8] ss:$12 sps:$4 sm:$0xff]  }
 0x1ee   : > { %1155 = vmatprep.subr.bf16.mxu0 %v4515_v8  ;;  %4176 = vmatprep.subr.bf16.mxu1 %v4520_v11  ;;  %v4521_v28 = vld [vmem:[%s5968_s29 + $0x18] ss:$12 sps:$4 sm:$0xff]   ;;  %v4522_v29 = vld [vmem:[%s5968_s29 + $0x34] ss:$12 sps:$4 sm:$0xff]   ;;  %v4525_v31 = vld [vmem:[%s5968_s29 + $0x30] ss:$12 sps:$4 sm:$0xff]  }
 0x1ef   : > { %1156 = vmatpush1.bf16.msra.mxu0 %v4517_v9  ;;  %4177 = vmatpush3.bf16.msra.mxu1 %v4520_v11  ;;  %v4524_v30 = vld [vmem:[%s5968_s29 + $0x20] ss:$12 sps:$4 sm:$0xff]   ;;  %v4528_v33 = vld [vmem:[%s5968_s29 + $0x38] ss:$12 sps:$4 sm:$0xff]   ;;  %v4529_v34 = vld [vmem:[%s5968_s29 + $0x48] ss:$12 sps:$4 sm:$0xff]  }
 0x1f0   : > { %930 = vadd.xlane.f32.xlu0 %v916_v6  ;;  %1157 = vmatprep.subr.bf16.mxu0 %v4518_v10  ;;  %v4530_v35 = vld [vmem:[%s5968_s29 + $0x64] ss:$12 sps:$4 sm:$0xff]   ;;  %v4533_v37 = vld [vmem:[%s5968_s29 + $0x60] ss:$12 sps:$4 sm:$0xff]   ;;  %v4534_v38 = vld [vmem:[%s5968_s29 + $0x7c] ss:$12 sps:$4 sm:$0xff]  }
 0x1f1   : > { %934 = vadd.xlane.f32.xlu1 %v918_v7  ;;  %4178 = vmatprep.subr.bf16.mxu1 %v4524_v30  ;;  %v4532_v36 = vld [vmem:[%s5968_s29 + $0x50] ss:$12 sps:$4 sm:$0xff]   ;;  %v4536_v39 = vld [vmem:[%s5968_s29 + $0x68] ss:$12 sps:$4 sm:$0xff]   ;;  %v4537_v40 = vld [vmem:[%s5968_s29 + $0x78] ss:$12 sps:$4 sm:$0xff]  }
 0x1f2   : > { %v4538_v41 = vld [vmem:[%s5968_s29 + $0x94] ss:$12 sps:$4 sm:$0xff]   ;;  %v4541_v44 = vld [vmem:[%s5968_s29 + $0x90] ss:$12 sps:$4 sm:$0xff]   ;;  %v4542_v45 = vld [vmem:[%s5968_s29 + $0xac] ss:$12 sps:$4 sm:$0xff]  }
 0x1f3   : > { %1158 = vmatpush1.bf16.msra.mxu0 %v4521_v28  ;;  %4179 = vmatpush3.bf16.msra.mxu1 %v4524_v30  ;;  %v4540_v42 = vld [vmem:[%s5968_s29 + $0x80] ss:$12 sps:$4 sm:$0xff]   ;;  %v4544_v46 = vld [vmem:[%s5968_s29 + $0x98] ss:$12 sps:$4 sm:$0xff]   ;;  %v4545_v47 = vld [vmem:[%s5968_s29 + $0xa8] ss:$12 sps:$4 sm:$0xff]  }
 0x1f4   : > { %1159 = vmatprep.subr.bf16.mxu0 %v4522_v29  ;;  %4180 = vmatprep.subr.bf16.mxu1 %v4528_v33  ;;  %v4546_v48 = vld [vmem:[%s5968_s29 + $0xb0] ss:$12 sps:$4 sm:$0xff]   ;;  %s5349_s3 = smov 96   ;;  %s5350_s16 = smov 64   ;;  %vm2313_vm5 = vcmask 523264   ;;  %vm2318_vm6 = vcmask 785408  }
 0x1f5   : > { %v3923_v63 = vld [vmem:[%s719_s23] ss:$0 sm:$0xff]  ;;  %s5351_s20 = smov 32   ;;  %s6738_s27 = sld [smem:[#allocation40_spill]] }
 0x1f7   : > { %1160 = vmatpush1.bf16.msra.mxu0 %v4525_v31  ;;  %4181 = vmatpush3.bf16.msra.mxu1 %v4528_v33 }
 0x1f8   : > { %1161 = vmatprep.subr.bf16.mxu0 %v4526_v32  ;;  %4182 = vmatprep.subr.bf16.mxu1 %v4532_v36 }
 0x1fb   : > { %1162 = vmatpush1.bf16.msra.mxu0 %v4529_v34  ;;  %4183 = vmatpush3.bf16.msra.mxu1 %v4532_v36  ;;  %p4041_p1 = scmp.ne.s32.totalorder %s6738_s27, 1 }
 0x1fc   : > { %1163 = vmatprep.subr.bf16.mxu0 %v4530_v35  ;;  %4184 = vmatprep.subr.bf16.mxu1 %v4536_v39 }
 0x1ff   : > { %1164 = vmatpush1.bf16.msra.mxu0 %v4533_v37  ;;  %4185 = vmatpush3.bf16.msra.mxu1 %v4536_v39 }
 0x200   : > { %1165 = vmatprep.subr.bf16.mxu0 %v4534_v38  ;;  %4186 = vmatprep.subr.bf16.mxu1 %v4540_v42  ;;  %v919_v38 = vlaneseq }
 0x202   : > { %v6105_v39 = vshrl.u32 %v919_v38, 7 }
 0x203   : > { %1166 = vmatpush1.bf16.msra.mxu0 %v4537_v40  ;;  %4187 = vmatpush3.bf16.msra.mxu1 %v4540_v42  ;;  %v923_v40 = vand.u32 127, %v919_v38 }
 0x204   : > { %1167 = vmatprep.subr.bf16.mxu0 %v4538_v41  ;;  %4188 = vmatprep.subr.bf16.mxu1 %v4544_v46  ;;  %v921_v41 = vadd.s32 8, %v6105_v39 }
 0x205   : > { %vm6109_vm2 = vcmp.gt.s32.totalorder %v923_v40, %v6105_v39 }
 0x206   : > { %vm6113_vm4 = vcmp.gt.s32.totalorder %v923_v40, %v921_v41 }
 0x207   : > { %1168 = vmatpush1.bf16.msra.mxu0 %v4541_v44  ;;  %4189 = vmatpush3.bf16.msra.mxu1 %v4544_v46 }
 0x208   : > { %1169 = vmatprep.subr.bf16.mxu0 %v4542_v45  ;;  %4190 = vmatprep.subr.bf16.mxu1 %v4546_v48 }
 0x20b   : > { %1170 = vmatpush1.bf16.msra.mxu0 %v4545_v47  ;;  %4191 = vmatpush3.bf16.msra.mxu1 %v4546_v48 }
 0x279   : > { %v929_v12 = vpop.xlane.xlu0 %928 }
 0x27a   : > { %v933_v13 = vpop.xlane.xlu1 %932  ;;  %v937_v14 = vmul.f32 0.0078125, %v929_v12 }
 0x27b   : > { %v939_v15 = vmul.f32 0.0078125, %v933_v13 }
 0x27c   : > { %v6023_v16 = vsub.f32 %v915_v4, %v937_v14  ;;  %v3924_v4 = vld [vmem:[%s727_s21] ss:$0 sm:$0xff] }
 0x27d   : > { %v6025_v17 = vsub.f32 %v917_v5, %v939_v15  ;;  %v931_v18 = vpop.xlane.xlu0 %930 }
 0x27e   : > { %v935_v19 = vpop.xlane.xlu1 %934  ;;  %v938_v20 = vmul.f32 0.0078125, %v931_v18  ;;  %v945_v21 = vmul.f32 %v6023_v16, %v6023_v16  ;;  %v5347_v18 = vmov 0.0  }
 0x27f   : > { %v940_v22 = vmul.f32 0.0078125, %v935_v19  ;;  %v947_v25 = vmul.f32 %v6025_v17, %v6025_v17  ;;  %4196 = vmatprep.subr.bf16.mxu0 %v5347_v18  ;;  %4208 = vmatprep.subr.bf16.mxu1 %v5347_v18 }
 0x280   : > { %v6029_v23 = vsub.f32 %v916_v6, %v938_v20  ;;  %949 = vadd.xlane.f32.xlu0 %v945_v21 }
 0x281   : > { %v6031_v24 = vsub.f32 %v918_v7, %v940_v22 }
 0x282   : > { %v946_v26 = vmul.f32 %v6029_v23, %v6029_v23 }
 0x283   : > { %v948_v27 = vmul.f32 %v6031_v24, %v6031_v24 }
 0x284   : > { %953 = vadd.xlane.f32.xlu0 %v947_v25  ;;  %951 = vadd.xlane.f32.xlu1 %v946_v26 }
 0x288   : > { %955 = vadd.xlane.f32.xlu1 %v948_v27 }
 0x30d   : > { %v950_v49 = vpop.xlane.xlu0 %949 }
 0x30e   : > { %v957_v50 = vmul.f32 0.0078125, %v950_v49 }
 0x310   : > { %v961_v51 = vadd.f32 1e-05, %v957_v50 }
 0x311   : > { %v952_v52 = vpop.xlane.xlu1 %951  ;;  %v954_v53 = vpop.xlane.xlu0 %953 }
 0x312   : > { %4635 = vrsqrt.f32 %v961_v51  ;;  %v958_v54 = vmul.f32 0.0078125, %v952_v52  ;;  %v959_v55 = vmul.f32 0.0078125, %v954_v53 }
 0x314   : > { %v962_v56 = vadd.f32 1e-05, %v958_v54  ;;  %v963_v57 = vadd.f32 1e-05, %v959_v55 }
 0x315   : > { %v956_v58 = vpop.xlane.xlu1 %955 }
 0x316   : > { %4637 = vrsqrt.f32 %v962_v56  ;;  %v960_v59 = vmul.f32 0.0078125, %v956_v58 }
 0x317   : > { %4639 = vrsqrt.f32 %v963_v57 }
 0x318   : > { %v964_v60 = vadd.f32 1e-05, %v960_v59 }
 0x31a   : > { %4641 = vrsqrt.f32 %v964_v60 }
 0x31c   : > { %v4636_v61 = vpop.eup %4635 }
 0x31d   : > { %v969_v62 = vmul.f32 %v4636_v61, %v6023_v16 }
 0x31f   : > { %v979_v3 = vmul.f32 %v3923_v63, %v969_v62 }
 0x320   : > { %v4638_v0 = vpop.eup %4637 }
 0x321   : > { %v4640_v1 = vpop.eup %4639  ;;  %v970_v2 = vmul.f32 %v4638_v0, %v6029_v23  ;;  %v989_v8 = vadd.f32 %v3924_v4, %v979_v3 }
 0x322   : > { %v971_v5 = vmul.f32 %v4640_v1, %v6025_v17 }
 0x323   : > { %v980_v6 = vmul.f32 %v3923_v63, %v970_v2 }
 0x324   : > { %v4642_v7 = vpop.eup %4641  ;;  %v981_v11 = vmul.f32 %v3923_v63, %v971_v5 }
 0x325   : > { %v990_v9 = vadd.f32 %v3924_v4, %v980_v6  ;;  %v972_v10 = vmul.f32 %v4642_v7, %v6031_v24 }
 0x326   : > { %v991_v14 = vadd.f32 %v3924_v4, %v981_v11 }
 0x327   : > { %v993_v12 = vpack.c.bf16 %v990_v9, %v989_v8  ;;  %v982_v13 = vmul.f32 %v3923_v63, %v972_v10 }
 0x329   : > { %1188 = vmatmul.mubr.bf16.vlgmr.msra.gmra.mrb[0].mxu0 %v993_v12  ;;  %4192 = vmatprep.mubr.bf16.mxu1 %v993_v12  ;;  %v992_v15 = vadd.f32 %v3924_v4, %v982_v13 }
 0x32a   : > { %1197 = vmatprep.mubr.bf16.mxu0 %v5346_v43 }
 0x32b   : > { %v994_v16 = vpack.c.bf16 %v992_v15, %v991_v14 }
 0x32d   : > { %4193 = vmatmul.mubr.bf16.vlgmr.msra.gmra.mrb[0].mxu1 %v994_v16 }
 0x32e   : > { %4210 = vmatprep.mubr.msk.bf16.mxu1 %vm5348_vm0, %v5347_v18 }
 0x331   : > { %1198 = vmatmul.mubr.bf16.gmra.mrb[4].mxu0 %v994_v16 }
 0x332   : > { %4198 = vmatprep.mubr.msk.bf16.mxu0 %vm5348_vm0, %v5347_v18 }
 0x3fc   : > { %v1189_v17 = vpop.f32.mrb[0].mxu0 }
 0x3fd   : > { %v1191_v19 = vpop.f32.mrb[1].mxu0 }
 0x3fe   : > { %v1193_v20 = vpop.f32.mrb[2].mxu0 }
 0x3ff   : > { %v6075_v21 = vpack.c.bf16 %v1193_v20, %v1189_v17  ;;  %v1195_v22 = vpop.f32.mrb[3].mxu0 }
 0x400   : > { %v6077_v23 = vpack.c.bf16 %v1195_v22, %v1191_v19  ;;  %v4194_v24 = vpop.f32.mrb[0].mxu1 }
 0x401   : > { %v1242_v25 = vpop.f32.mrb[1].mxu1 }
 0x402   : > { %v4195_v26 = vpop.f32.mrb[2].mxu1  ;;  %v1268_v27 = vsel %vm1263_vm1, %v6077_v23, 0 }
 0x403   : > { %v6081_v28 = vpack.c.bf16 %v4195_v26, %v4194_v24  ;;  %v1245_v29 = vpop.f32.mrb[3].mxu1  ;;  %4197 = vmatpush3.bf16.xpose.msra.mxu0 %v1268_v27 }
 0x404   : > { %v6083_v30 = vpack.c.bf16 %v1245_v29, %v1242_v25  ;;  %v1199_v31 = vpop.f32.mrb[4].mxu0  ;;  %4202 = vmatprep.subr.bf16.mxu0 %v5347_v18 }
 0x405   : > { %v1201_v32 = vpop.f32.mrb[5].mxu0 }
 0x406   : > { %v1203_v33 = vpop.f32.mrb[6].mxu0  ;;  %4209 = vmatpush3.bf16.msra.mxu1 %v6083_v30 }
 0x407   : > { %v6087_v34 = vpack.c.bf16 %v1203_v33, %v1199_v31  ;;  %v1205_v35 = vpop.f32.mrb[7].mxu0  ;;  %4220 = vmatprep.subr.bf16.mxu1 %v5347_v18 }
 0x408   : > { %v6090_v36 = vpack.c.bf16 %v1205_v35, %v1201_v32 }
 0x40a   : > { %4199 = vmatmul.mubr.msk.bf16.vlgmr.msra.gmra.mrb[8].mxu0 %vm1263_vm1, %v6075_v21  ;;  %v1315_v37 = vsel %vm1263_vm1, %v6090_v36, 0 }
 0x40b   : > { %4203 = vmatpush3.bf16.xpose.msra.mxu0 %v1315_v37  ;;  %4204 = vmatprep.mubr.msk.bf16.mxu0 %vm5348_vm0, %v5347_v18 }
 0x40c   : > { %4214 = vmatprep.subr.bf16.mxu0 %v5347_v18 }
 0x412   : > { %4205 = vmatmul.mubr.msk.bf16.vlgmr.msra.gmra.mrb[12].mxu0 %vm1263_vm1, %v6087_v34 }
 0x413   : > { %4215 = vmatpush3.bf16.msra.mxu0 %v6081_v28  ;;  %4216 = vmatprep.mubr.msk.bf16.mxu0 %vm5348_vm0, %v5347_v18 }
 0x414   : > { %4226 = vmatprep.subr.bf16.mxu0 %v5347_v18 }
 0x4dd   : > { %v1304_v42 = vpop.f32.mrb[8].mxu0 }
 0x4de   : > { %v1358_v45 = vmul.f32 0.17677669, %v1304_v42  ;;  %v4200_v46 = vpop.f32.mrb[9].mxu0 }
 0x4df   : > { %v1307_v47 = vpop.f32.mrb[10].mxu0 }
 0x4e0   : > { %v1359_v49 = vmul.f32 0.17677669, %v1307_v47  ;;  %v4201_v50 = vpop.f32.mrb[11].mxu0  ;;  %v1366_v51 = vsel %vm6109_vm2, -1e+30, %v1358_v45 }
 0x4e1   : > { %v1371_v52 = vsel %vm1370_vm3, %v1366_v51, -inf }
 0x4e2   : > { %1372 = vmax.xlane.f32.xlu0 %v1371_v52  ;;  %v1367_v53 = vsel %vm6113_vm4, -1e+30, %v1359_v49 }
 0x4e3   : > { %v1374_v54 = vsel %vm1370_vm3, %v1367_v53, -inf }
 0x4e4   : > { %1375 = vmax.xlane.f32.xlu1 %v1374_v54 }
 0x4e5   : > { %v1351_v55 = vpop.f32.mrb[12].mxu0 }
 0x4e6   : > { %v1360_v56 = vmul.f32 0.17677669, %v1351_v55  ;;  %v4206_v57 = vpop.f32.mrb[13].mxu0 }
 0x4e7   : > { %v1354_v58 = vpop.f32.mrb[14].mxu0 }
 0x4e8   : > { %v1361_v59 = vmul.f32 0.17677669, %v1354_v58  ;;  %v4207_v60 = vpop.f32.mrb[15].mxu0  ;;  %v1368_v61 = vsel %vm6109_vm2, -1e+30, %v1360_v56 }
 0x4e9   : > { %v1377_v62 = vsel %vm1370_vm3, %v1368_v61, -inf }
 0x4ea   : > { %1378 = vmax.xlane.f32.xlu0 %v1377_v62  ;;  %v1369_v63 = vsel %vm6113_vm4, -1e+30, %v1361_v59 }
 0x4eb   : > { %v1380_v0 = vsel %vm1370_vm3, %v1369_v63, -inf }
 0x4ec   : > { %1381 = vmax.xlane.f32.xlu1 %v1380_v0 }
 0x56f   : > { %v1373_v1 = vpop.xlane.xlu0 %1372 }
 0x570   : > { %v1383_v2 = vsub.f32 %v1366_v51, %v1373_v1 }
 0x571   : > { %v1376_v3 = vpop.xlane.xlu1 %1375 }
 0x572   : > { %v1387_v4 = vmul.f32 1.442695, %v1383_v2  ;;  %v1384_v5 = vsub.f32 %v1367_v53, %v1376_v3 }
 0x574   : > { %4643 = vpow2.f32 %v1387_v4  ;;  %v1389_v6 = vmul.f32 1.442695, %v1384_v5 }
 0x576   : > { %4645 = vpow2.f32 %v1389_v6 }
 0x577   : > { %v1379_v7 = vpop.xlane.xlu0 %1378 }
 0x578   : > { %v1385_v8 = vsub.f32 %v1368_v61, %v1379_v7 }
 0x579   : > { %v1382_v16 = vpop.xlane.xlu1 %1381 }
 0x57a   : > { %v1391_v9 = vmul.f32 1.442695, %v1385_v8  ;;  %v1386_v17 = vsub.f32 %v1369_v63, %v1382_v16 }
 0x57c   : > { %4647 = vpow2.f32 %v1391_v9  ;;  %v1393_v19 = vmul.f32 1.442695, %v1386_v17 }
 0x57e   : > { %v4644_v10 = vpop.eup %4643  ;;  %4649 = vpow2.f32 %v1393_v19 }
 0x57f   : > { %v1395_v11 = vsel %vm1370_vm3, %v4644_v10, 0.0 }
 0x580   : > { %v4646_v12 = vpop.eup %4645  ;;  %1396 = vadd.xlane.f32.xlu0 %v1395_v11 }
 0x581   : > { %v1398_v13 = vsel %vm1370_vm3, %v4646_v12, 0.0 }
 0x582   : > { %1399 = vadd.xlane.f32.xlu1 %v1398_v13 }
 0x586   : > { %v4648_v14 = vpop.eup %4647 }
 0x587   : > { %v1401_v15 = vsel %vm1370_vm3, %v4648_v14, 0.0 }
 0x588   : > { %1402 = vadd.xlane.f32.xlu0 %v1401_v15  ;;  %v4650_v20 = vpop.eup %4649 }
 0x589   : > { %v1404_v22 = vsel %vm1370_vm3, %v4650_v20, 0.0 }
 0x593   : > { %1562 = vrot.lane.b32.xlu1 %v6090_v36, %s5349_s3 }
 0x59e   : > { %1509 = vrot.lane.b32.xlu0 %v6077_v23, %s5349_s3 }
 0x5b7   : > { %1405 = vadd.xlane.f32.xlu1 %v1404_v22 }
 0x5c8   : > { %1506 = vrot.lane.b32.xlu1 %v6075_v21, %s5349_s3 }
 0x5cc   : > { %1559 = vrot.lane.b32.xlu1 %v6087_v34, %s5349_s3 }
 0x60d   : > { %v1397_v24 = vpop.xlane.xlu0 %1396 }
 0x60e   : > { %4651 = vrcp.f32 %v1397_v24 }
 0x60f   : > { %v1400_v25 = vpop.xlane.xlu1 %1399 }
 0x610   : > { %4653 = vrcp.f32 %v1400_v25 }
 0x613   : > { %v1563_v38 = vpop.permute.xlu1 %1562 }
 0x614   : > { %v1568_v50 = vsel %vm1263_vm1, %v1563_v38, 0 }
 0x615   : > { %v1403_v26 = vpop.xlane.xlu0 %1402 }
 0x616   : > { %4655 = vrcp.f32 %v1403_v26 }
 0x618   : > { %v4652_v27 = vpop.eup %4651 }
 0x619   : > { %v1408_v31 = vmul.f32 %v4652_v27, %v4644_v10  ;;  %v1510_v33 = vpop.permute.xlu0 %1509 }
 0x61a   : > { %v4654_v29 = vpop.eup %4653  ;;  %v1515_v37 = vsel %vm1263_vm1, %v1510_v33, 0 }
 0x61b   : > { %v1410_v32 = vmul.f32 %v4654_v29, %v4646_v12 }
 0x61d   : > { %v1415_v35 = vpack.c.bf16 %v1410_v32, %v1408_v31 }
 0x61f   : > { %4211 = vmatmul.mubr.msk.bf16.vlgmr.msra.gmra.mrb[4].mxu1 %vm1370_vm3, %v1415_v35 }
 0x620   : > { %4221 = vmatpush3.bf16.xpose.msra.mxu1 %v1515_v37  ;;  %4222 = vmatprep.mubr.msk.bf16.mxu1 %vm5348_vm0, %v5347_v18  ;;  %v4656_v42 = vpop.eup %4655 }
 0x621   : > { %4232 = vmatprep.subr.bf16.mxu1 %v5347_v18  ;;  %v1412_v46 = vmul.f32 %v4656_v42, %v4648_v14 }
 0x644   : > { %v1406_v40 = vpop.xlane.xlu1 %1405 }
 0x645   : > { %4657 = vrcp.f32 %v1406_v40 }
 0x648   : > { %v1507_v41 = vpop.permute.xlu1 %1506 }
 0x649   : > { %4223 = vmatmul.mubr.msk.bf16.vlgmr.msra.gmra.mrb[8].mxu1 %vm1263_vm1, %v1507_v41 }
 0x64a   : > { %4234 = vmatprep.mubr.msk.bf16.mxu1 %vm5348_vm0, %v5347_v18 }
 0x64c   : > { %v1560_v51 = vpop.permute.xlu1 %1559 }
 0x64f   : > { %v4658_v45 = vpop.eup %4657 }
 0x650   : > { %v1414_v47 = vmul.f32 %v4658_v45, %v4650_v20 }
 0x652   : > { %v1416_v49 = vpack.c.bf16 %v1414_v47, %v1412_v46 }
 0x654   : > { %4217 = vmatmul.mubr.msk.bf16.vlgmr.msra.gmra.mrb[16].mxu0 %vm1370_vm3, %v1416_v49 }
 0x655   : > { %4227 = vmatpush3.bf16.xpose.msra.mxu0 %v1568_v50  ;;  %4228 = vmatprep.mubr.msk.bf16.mxu0 %vm5348_vm0, %v5347_v18 }
 0x656   : > { %4238 = vmatprep.subr.bf16.mxu0 %v5347_v18 }
 0x65c   : > { %4229 = vmatmul.mubr.msk.bf16.vlgmr.msra.gmra.mrb[20].mxu0 %vm1263_vm1, %v1560_v51 }
 0x65d   : > { %4240 = vmatprep.mubr.msk.bf16.mxu0 %vm5348_vm0, %v5347_v18 }
 0x6f2   : > { %v6157_v52 = vpop.f32.mrb[4].mxu1 }
 0x6f3   : > { %v4212_v53 = vpop.f32.mrb[5].mxu1 }
 0x6f4   : > { %v6159_v54 = vpop.f32.mrb[6].mxu1 }
 0x6f5   : > { %v4213_v55 = vpop.f32.mrb[7].mxu1 }
 0x71c   : > { %v1551_v56 = vpop.f32.mrb[8].mxu1 }
 0x71d   : > { %v1611_v57 = vmul.f32 0.17677669, %v1551_v56  ;;  %v4224_v58 = vpop.f32.mrb[9].mxu1 }
 0x71e   : > { %v1554_v59 = vpop.f32.mrb[10].mxu1 }
 0x71f   : > { %v1612_v60 = vmul.f32 0.17677669, %v1554_v59  ;;  %v4225_v61 = vpop.f32.mrb[11].mxu1  ;;  %v1615_v62 = vsel %vm6109_vm2, -1e+30, %v1611_v57 }
 0x720   : > { %v1619_v63 = vsel %vm1370_vm3, %v1615_v62, -inf }
 0x721   : > { %1620 = vmax.xlane.f32.xlu0 %v1619_v63  ;;  %v1616_v0 = vsel %vm6113_vm4, -1e+30, %v1612_v60 }
 0x722   : > { %v1622_v1 = vsel %vm1370_vm3, %v1616_v0, -inf }
 0x723   : > { %1623 = vmax.xlane.f32.xlu1 %v1622_v1 }
 0x727   : > { %v6167_v2 = vpop.f32.mrb[16].mxu0 }
 0x728   : > { %v4218_v3 = vpop.f32.mrb[17].mxu0 }
 0x729   : > { %v6169_v4 = vpop.f32.mrb[18].mxu0 }
 0x72a   : > { %v4219_v5 = vpop.f32.mrb[19].mxu0 }
 0x72f   : > { %v1604_v6 = vpop.f32.mrb[20].mxu0 }
 0x730   : > { %v1613_v7 = vmul.f32 0.17677669, %v1604_v6  ;;  %v4230_v8 = vpop.f32.mrb[21].mxu0 }
 0x731   : > { %v1607_v9 = vpop.f32.mrb[22].mxu0 }
 0x732   : > { %v1614_v10 = vmul.f32 0.17677669, %v1607_v9  ;;  %v4231_v11 = vpop.f32.mrb[23].mxu0  ;;  %v1617_v12 = vsel %vm6109_vm2, -1e+30, %v1613_v7 }
 0x733   : > { %v1625_v13 = vsel %vm1370_vm3, %v1617_v12, -inf }
 0x734   : > { %1626 = vmax.xlane.f32.xlu0 %v1625_v13  ;;  %v1618_v14 = vsel %vm6113_vm4, -1e+30, %v1614_v10 }
 0x735   : > { %v1628_v15 = vsel %vm1370_vm3, %v1618_v14, -inf }
 0x738   : > { %1629 = vmax.xlane.f32.xlu0 %v1628_v15 }
 0x7ae   : > { %v1621_v16 = vpop.xlane.xlu0 %1620 }
 0x7af   : > { %v1631_v17 = vsub.f32 %v1615_v62, %v1621_v16 }
 0x7b0   : > { %v1624_v19 = vpop.xlane.xlu1 %1623 }
 0x7b1   : > { %v1635_v20 = vmul.f32 1.442695, %v1631_v17  ;;  %v1632_v22 = vsub.f32 %v1616_v0, %v1624_v19 }
 0x7b3   : > { %4659 = vpow2.f32 %v1635_v20  ;;  %v1637_v24 = vmul.f32 1.442695, %v1632_v22 }
 0x7b5   : > { %4661 = vpow2.f32 %v1637_v24 }
 0x7bd   : > { %v4660_v25 = vpop.eup %4659 }
 0x7be   : > { %v1643_v26 = vsel %vm1370_vm3, %v4660_v25, 0.0 }
 0x7bf   : > { %v4662_v27 = vpop.eup %4661  ;;  %1644 = vadd.xlane.f32.xlu0 %v1643_v26 }
 0x7c0   : > { %v1646_v29 = vsel %vm1370_vm3, %v4662_v27, 0.0 }
 0x7c1   : > { %1647 = vadd.xlane.f32.xlu1 %v1646_v29  ;;  %v1627_v31 = vpop.xlane.xlu0 %1626 }
 0x7c2   : > { %v1633_v32 = vsub.f32 %v1617_v12, %v1627_v31 }
 0x7c4   : > { %v1639_v33 = vmul.f32 1.442695, %v1633_v32 }
 0x7c5   : > { %v1630_v38 = vpop.xlane.xlu0 %1629 }
 0x7c6   : > { %4663 = vpow2.f32 %v1639_v33  ;;  %v1634_v40 = vsub.f32 %v1618_v14, %v1630_v38 }
 0x7c8   : > { %v1641_v41 = vmul.f32 1.442695, %v1634_v40 }
 0x7ca   : > { %4665 = vpow2.f32 %v1641_v41 }
 0x7d0   : > { %v4664_v35 = vpop.eup %4663 }
 0x7d1   : > { %v1649_v37 = vsel %vm1370_vm3, %v4664_v35, 0.0 }
 0x7d2   : > { %1714 = vrot.lane.b32.xlu1 %v6081_v28, %s5349_s3  ;;  %1650 = vadd.xlane.f32.xlu0 %v1649_v37 }
 0x7d4   : > { %v4666_v42 = vpop.eup %4665 }
 0x7d5   : > { %v1652_v45 = vsel %vm1370_vm3, %v4666_v42, 0.0 }
 0x7d6   : > { %1763 = vrot.lane.b32.xlu1 %v6077_v23, %s5350_s16 }
 0x7e8   : > { %1666 = vrot.lane.b32.xlu0 %v6083_v30, %s5349_s3 }
 0x7ec   : > { %1761 = vrot.lane.b32.xlu0 %v6075_v21, %s5350_s16 }
 0x7fa   : > { %1653 = vadd.xlane.f32.xlu1 %v1652_v45 }
 0x80b   : > { %1814 = vrot.lane.b32.xlu1 %v6090_v36, %s5350_s16 }
 0x80f   : > { %1812 = vrot.lane.b32.xlu1 %v6087_v34, %s5350_s16 }
 0x84c   : > { %v1645_v49 = vpop.xlane.xlu0 %1644 }
 0x84e   : > { %v1648_v46 = vpop.xlane.xlu1 %1647 }
 0x84f   : > { %4667 = vrcp.f32 %v1648_v46 }
 0x850   : > { %4669 = vrcp.f32 %v1645_v49 }
 0x852   : > { %v1715_v47 = vpop.permute.xlu1 %1714 }
 0x853   : > { %4239 = vmatpush3.bf16.msra.mxu0 %v1715_v47 }
 0x854   : > { %4250 = vmatprep.subr.bf16.mxu0 %v5347_v18 }
 0x856   : > { %v1764_v59 = vpop.permute.xlu1 %1763 }
 0x857   : > { %v1769_v60 = vsel %vm1263_vm1, %v1764_v59, 0 }
 0x859   : > { %v4668_v50 = vpop.eup %4667 }
 0x85a   : > { %v4670_v53 = vpop.eup %4669  ;;  %v1658_v55 = vmul.f32 %v4668_v50, %v4662_v27 }
 0x85b   : > { %v1656_v56 = vmul.f32 %v4670_v53, %v4660_v25 }
 0x85d   : > { %v1663_v58 = vpack.c.bf16 %v1658_v55, %v1656_v56 }
 0x85f   : > { %v1651_v51 = vpop.xlane.xlu0 %1650 }
 0x860   : > { %4671 = vrcp.f32 %v1651_v51 }
 0x863   : > { %v1667_v57 = vpop.permute.xlu0 %1666 }
 0x864   : > { %4233 = vmatpush3.bf16.msra.mxu1 %v1667_v57 }
 0x865   : > { %4244 = vmatprep.subr.bf16.mxu1 %v5347_v18 }
 0x867   : > { %4235 = vmatmul.mubr.msk.bf16.vlgmr.msra.gmra.mrb[12].mxu1 %vm1370_vm3, %v1663_v58  ;;  %v1762_v61 = vpop.permute.xlu0 %1761 }
 0x868   : > { %4246 = vmatprep.mubr.msk.bf16.mxu1 %vm5348_vm0, %v5347_v18 }
 0x86a   : > { %v4672_v63 = vpop.eup %4671 }
 0x86b   : > { %v1660_v1 = vmul.f32 %v4672_v63, %v4664_v35 }
 0x86d   : > { %4245 = vmatpush3.bf16.xpose.msra.mxu1 %v1769_v60 }
 0x86e   : > { %4256 = vmatprep.subr.bf16.mxu1 %v5347_v18 }
 0x874   : > { %4247 = vmatmul.mubr.msk.bf16.vlgmr.msra.gmra.mrb[16].mxu1 %vm1263_vm1, %v1762_v61 }
 0x875   : > { %4258 = vmatprep.mubr.msk.bf16.mxu1 %vm5348_vm0, %v5347_v18 }
 0x887   : > { %v1654_v62 = vpop.xlane.xlu1 %1653 }
 0x888   : > { %4673 = vrcp.f32 %v1654_v62 }
 0x88b   : > { %v1815_v5 = vpop.permute.xlu1 %1814 }
 0x88c   : > { %v1820_v7 = vsel %vm1263_vm1, %v1815_v5, 0 }
 0x88f   : > { %v1813_v8 = vpop.permute.xlu1 %1812 }
 0x892   : > { %v4674_v0 = vpop.eup %4673 }
 0x893   : > { %v1662_v3 = vmul.f32 %v4674_v0, %v4666_v42 }
 0x895   : > { %v1664_v6 = vpack.c.bf16 %v1662_v3, %v1660_v1 }
 0x897   : > { %4241 = vmatmul.mubr.msk.bf16.vlgmr.msra.gmra.mrb[24].mxu0 %vm1370_vm3, %v1664_v6 }
 0x898   : > { %4251 = vmatpush3.bf16.xpose.msra.mxu0 %v1820_v7  ;;  %4252 = vmatprep.mubr.msk.bf16.mxu0 %vm5348_vm0, %v5347_v18 }
 0x899   : > { %4262 = vmatprep.subr.bf16.mxu0 %v5347_v18 }
 0x89f   : > { %4253 = vmatmul.mubr.msk.bf16.vlgmr.msra.gmra.mrb[28].mxu0 %vm1263_vm1, %v1813_v8 }
 0x8a0   : > { %4264 = vmatprep.mubr.msk.bf16.mxu0 %vm5348_vm0, %v5347_v18 }
 0x93a   : > { %v6211_v9 = vpop.f32.mrb[12].mxu1 }
 0x93b   : > { %v4236_v10 = vpop.f32.mrb[13].mxu1 }
 0x93c   : > { %v6213_v11 = vpop.f32.mrb[14].mxu1 }
 0x93d   : > { %v4485_v12 = vpack.i.bf16 %v6213_v11, %v6211_v9  ;;  %v4237_v13 = vpop.f32.mrb[15].mxu1 }
 0x947   : > { %v1805_v14 = vpop.f32.mrb[16].mxu1 }
 0x948   : > { %v1863_v15 = vmul.f32 0.17677669, %v1805_v14  ;;  %v4248_v16 = vpop.f32.mrb[17].mxu1 }
 0x949   : > { %v1808_v17 = vpop.f32.mrb[18].mxu1 }
 0x94a   : > { %v1864_v19 = vmul.f32 0.17677669, %v1808_v17  ;;  %v4249_v20 = vpop.f32.mrb[19].mxu1  ;;  %v1867_v22 = vsel %vm6109_vm2, -1e+30, %v1863_v15 }
 0x94b   : > { %v1871_v24 = vsel %vm1370_vm3, %v1867_v22, -inf }
 0x94c   : > { %1872 = vmax.xlane.f32.xlu0 %v1871_v24  ;;  %v1868_v25 = vsel %vm6113_vm4, -1e+30, %v1864_v19 }
 0x94d   : > { %v1874_v26 = vsel %vm1370_vm3, %v1868_v25, -inf }
 0x94e   : > { %1875 = vmax.xlane.f32.xlu1 %v1874_v26 }
 0x96a   : > { %v6223_v27 = vpop.f32.mrb[24].mxu0 }
 0x96b   : > { %v4242_v29 = vpop.f32.mrb[25].mxu0 }
 0x96c   : > { %v6225_v31 = vpop.f32.mrb[26].mxu0 }
 0x96d   : > { %v4490_v32 = vpack.i.bf16 %v6225_v31, %v6223_v27  ;;  %v4243_v33 = vpop.f32.mrb[27].mxu0 }
 0x972   : > { %v1856_v35 = vpop.f32.mrb[28].mxu0 }
 0x973   : > { %v1865_v37 = vmul.f32 0.17677669, %v1856_v35  ;;  %v4254_v38 = vpop.f32.mrb[29].mxu0 }
 0x974   : > { %v1859_v40 = vpop.f32.mrb[30].mxu0 }
 0x975   : > { %v1866_v41 = vmul.f32 0.17677669, %v1859_v40  ;;  %v4255_v42 = vpop.f32.mrb[31].mxu0  ;;  %v1869_v45 = vsel %vm6109_vm2, -1e+30, %v1865_v37 }
 0x976   : > { %v1877_v46 = vsel %vm1370_vm3, %v1869_v45, -inf }
 0x977   : > { %1878 = vmax.xlane.f32.xlu0 %v1877_v46  ;;  %v1870_v47 = vsel %vm6113_vm4, -1e+30, %v1866_v41 }
 0x978   : > { %v1880_v49 = vsel %vm1370_vm3, %v1870_v47, -inf }
 0x97b   : > { %1881 = vmax.xlane.f32.xlu0 %v1880_v49 }
 0x9d9   : > { %v1873_v50 = vpop.xlane.xlu0 %1872 }
 0x9da   : > { %v1883_v51 = vsub.f32 %v1867_v22, %v1873_v50 }
 0x9db   : > { %v1876_v53 = vpop.xlane.xlu1 %1875 }
 0x9dc   : > { %v1887_v55 = vmul.f32 1.442695, %v1883_v51  ;;  %v1884_v56 = vsub.f32 %v1868_v25, %v1876_v53 }
 0x9de   : > { %4675 = vpow2.f32 %v1887_v55  ;;  %v1889_v57 = vmul.f32 1.442695, %v1884_v56 }
 0x9e0   : > { %4677 = vpow2.f32 %v1889_v57 }
 0x9e8   : > { %v4676_v58 = vpop.eup %4675 }
 0x9e9   : > { %v1895_v59 = vsel %vm1370_vm3, %v4676_v58, 0.0 }
 0x9ea   : > { %v4678_v60 = vpop.eup %4677  ;;  %1896 = vadd.xlane.f32.xlu0 %v1895_v59 }
 0x9eb   : > { %v1898_v61 = vsel %vm1370_vm3, %v4678_v60, 0.0 }
 0x9ec   : > { %1899 = vadd.xlane.f32.xlu1 %v1898_v61 }
 0x9fd   : > { %1964 = vrot.lane.b32.xlu1 %v6081_v28, %s5350_s16 }
 0xa01   : > { %2013 = vrot.lane.b32.xlu1 %v6077_v23, %s5351_s20 }
 0xa04   : > { %v1879_v62 = vpop.xlane.xlu0 %1878 }
 0xa05   : > { %v1885_v63 = vsub.f32 %v1869_v45, %v1879_v62 }
 0xa07   : > { %v1891_v0 = vmul.f32 1.442695, %v1885_v63 }
 0xa08   : > { %v1882_v1 = vpop.xlane.xlu0 %1881 }
 0xa09   : > { %4679 = vpow2.f32 %v1891_v0  ;;  %v1886_v3 = vsub.f32 %v1870_v47, %v1882_v1 }
 0xa0b   : > { %v1893_v6 = vmul.f32 1.442695, %v1886_v3 }
 0xa0d   : > { %4681 = vpow2.f32 %v1893_v6 }
 0xa13   : > { %v4680_v5 = vpop.eup %4679 }
 0xa14   : > { %v1901_v7 = vsel %vm1370_vm3, %v4680_v5, 0.0 }
 0xa15   : > { %1902 = vadd.xlane.f32.xlu0 %v1901_v7 }
 0xa17   : > { %v4682_v8 = vpop.eup %4681 }
 0xa18   : > { %v1904_v10 = vsel %vm1370_vm3, %v4682_v8, 0.0 }
 0xa25   : > { %1905 = vadd.xlane.f32.xlu1 %v1904_v10 }
 0xa2b   : > { %1917 = vrot.lane.b32.xlu0 %v6083_v30, %s5350_s16 }
 0xa2f   : > { %2011 = vrot.lane.b32.xlu0 %v6075_v21, %s5351_s20 }
 0xa36   : > { %2064 = vrot.lane.b32.xlu1 %v6090_v36, %s5351_s20 }
 0xa3a   : > { %2062 = vrot.lane.b32.xlu1 %v6087_v34, %s5351_s20 }
 0xa77   : > { %v1897_v14 = vpop.xlane.xlu0 %1896 }
 0xa79   : > { %v1900_v23 = vpop.xlane.xlu1 %1899 }
 0xa7a   : > { %4683 = vrcp.f32 %v1900_v23 }
 0xa7b   : > { %4685 = vrcp.f32 %v1897_v14 }
 0xa7d   : > { %v1965_v13 = vpop.permute.xlu1 %1964 }
 0xa7e   : > { %4263 = vmatpush3.bf16.msra.mxu0 %v1965_v13 }
 0xa7f   : > { %4274 = vmatprep.subr.bf16.mxu0 %v5347_v18 }
 0xa81   : > { %v2014_v34 = vpop.permute.xlu1 %2013 }
 0xa82   : > { %v2019_v36 = vsel %vm1263_vm1, %v2014_v34, 0 }
 0xa84   : > { %v4684_v15 = vpop.eup %4683 }
 0xa85   : > { %v4686_v17 = vpop.eup %4685  ;;  %v1910_v19 = vmul.f32 %v4684_v15, %v4678_v60 }
 0xa86   : > { %v1908_v20 = vmul.f32 %v4686_v17, %v4676_v58 }
 0xa88   : > { %v1915_v22 = vpack.c.bf16 %v1910_v19, %v1908_v20 }
 0xaa2   : > { %v1903_v16 = vpop.xlane.xlu0 %1902 }
 0xaa3   : > { %4687 = vrcp.f32 %v1903_v16 }
 0xaa6   : > { %v1918_v21 = vpop.permute.xlu0 %1917 }
 0xaa7   : > { %4257 = vmatpush3.bf16.msra.mxu1 %v1918_v21 }
 0xaa8   : > { %4268 = vmatprep.subr.bf16.mxu1 %v5347_v18 }
 0xaaa   : > { %4259 = vmatmul.mubr.msk.bf16.vlgmr.msra.gmra.mrb[20].mxu1 %vm1370_vm3, %v1915_v22  ;;  %v2012_v25 = vpop.permute.xlu0 %2011 }
 0xaab   : > { %4270 = vmatprep.mubr.msk.bf16.mxu1 %vm5348_vm0, %v5347_v18 }
 0xaad   : > { %v4688_v26 = vpop.eup %4687 }
 0xaae   : > { %v1912_v33 = vmul.f32 %v4688_v26, %v4680_v5 }
 0xab0   : > { %4269 = vmatpush3.bf16.xpose.msra.mxu1 %v2019_v36 }
 0xab1   : > { %4280 = vmatprep.subr.bf16.mxu1 %v5347_v18 }
 0xab2   : > { %v1906_v24 = vpop.xlane.xlu1 %1905 }
 0xab3   : > { %4689 = vrcp.f32 %v1906_v24 }
 0xab6   : > { %v2065_v37 = vpop.permute.xlu1 %2064 }
 0xab7   : > { %4271 = vmatmul.mubr.msk.bf16.vlgmr.msra.gmra.mrb[24].mxu1 %vm1263_vm1, %v2012_v25  ;;  %v2070_v40 = vsel %vm1263_vm1, %v2065_v37, 0 }
 0xab8   : > { %4282 = vmatprep.mubr.msk.bf16.mxu1 %vm5348_vm0, %v5347_v18 }
 0xaba   : > { %v2063_v41 = vpop.permute.xlu1 %2062 }
 0xabd   : > { %v4690_v29 = vpop.eup %4689 }
 0xabe   : > { %v1914_v35 = vmul.f32 %v4690_v29, %v4682_v8 }
 0xac0   : > { %v1916_v38 = vpack.c.bf16 %v1914_v35, %v1912_v33 }
 0xac2   : > { %4265 = vmatmul.mubr.msk.bf16.vlgmr.msra.gmra.mrb[32].mxu0 %vm1370_vm3, %v1916_v38 }
 0xac3   : > { %4275 = vmatpush3.bf16.xpose.msra.mxu0 %v2070_v40  ;;  %4276 = vmatprep.mubr.msk.bf16.mxu0 %vm5348_vm0, %v5347_v18 }
 0xac4   : > { %4286 = vmatprep.subr.bf16.mxu0 %v5347_v18 }
 0xaca   : > { %4277 = vmatmul.mubr.msk.bf16.vlgmr.msra.gmra.mrb[36].mxu0 %vm1263_vm1, %v2063_v41 }
 0xacb   : > { %4288 = vmatprep.mubr.msk.bf16.mxu0 %vm5348_vm0, %v5347_v18 }
 0xb7d   : > { %v6269_v42 = vpop.f32.mrb[20].mxu1 }
 0xb7e   : > { %v4260_v45 = vpop.f32.mrb[21].mxu1 }
 0xb7f   : > { %v6271_v46 = vpop.f32.mrb[22].mxu1 }
 0xb80   : > { %v4495_v47 = vpack.i.bf16 %v6271_v46, %v6269_v42  ;;  %v4261_v49 = vpop.f32.mrb[23].mxu1 }
 0xb8a   : > { %v2055_v50 = vpop.f32.mrb[24].mxu1 }
 0xb8b   : > { %v2113_v51 = vmul.f32 0.17677669, %v2055_v50  ;;  %v4272_v53 = vpop.f32.mrb[25].mxu1 }
 0xb8c   : > { %v2058_v55 = vpop.f32.mrb[26].mxu1 }
 0xb8d   : > { %v2114_v56 = vmul.f32 0.17677669, %v2058_v55  ;;  %v4273_v57 = vpop.f32.mrb[27].mxu1  ;;  %v2117_v58 = vsel %vm6109_vm2, -1e+30, %v2113_v51  ;;  %v4547_v55 = vld [vmem:[%s5975_s13] sm:$0xff]  }
 0xb8e   : > { %v2121_v18 = vsel %vm1370_vm3, %v2117_v58, -inf  ;;  %v4549_v57 = vld [vmem:[%s5975_s13 + $0x10] sm:$0xff]  }
 0xb8f   : > { %2122 = vmax.xlane.f32.xlu0 %v2121_v18  ;;  %v2118_v59 = vsel %vm6113_vm4, -1e+30, %v2114_v56  ;;  %v4548_v56 = vld [vmem:[%s5975_s13 + $0x8] sm:$0xff]   ;;  %v4551_v18 = vld [vmem:[%s5975_s13 + $0x20] sm:$0xff]  }
 0xb90   : > { %v2124_v60 = vsel %vm1370_vm3, %v2118_v59, -inf }
 0xb91   : > { %2125 = vmax.xlane.f32.xlu1 %v2124_v60  ;;  %v4553_v60 = vld [vmem:[%s5975_s13 + $0x30] sm:$0xff]  }
 0xb95   : > { %v2004_v61 = vpop.f32.mrb[32].mxu0 }
 0xb96   : > { %v4266_v62 = vpop.f32.mrb[33].mxu0 }
 0xb97   : > { %v2007_v63 = vpop.f32.mrb[34].mxu0 }
 0xb98   : > { %v4500_v0 = vpack.i.bf16 %v2007_v63, %v2004_v61  ;;  %v4267_v1 = vpop.f32.mrb[35].mxu0 }
 0xb9d   : > { %v2106_v3 = vpop.f32.mrb[36].mxu0 }
 0xb9e   : > { %v2115_v5 = vmul.f32 0.17677669, %v2106_v3  ;;  %v4278_v6 = vpop.f32.mrb[37].mxu0  ;;  %v4554_v3 = vld [vmem:[%s5975_s13 + $0x38] sm:$0xff]  }
 0xb9f   : > { %v2109_v7 = vpop.f32.mrb[38].mxu0 }
 0xba0   : > { %v2116_v8 = vmul.f32 0.17677669, %v2109_v7  ;;  %v4279_v10 = vpop.f32.mrb[39].mxu0  ;;  %v2119_v23 = vsel %vm6109_vm2, -1e+30, %v2115_v5 }
 0xba1   : > { %v2127_v13 = vsel %vm1370_vm3, %v2119_v23, -inf }
 0xba2   : > { %2128 = vmax.xlane.f32.xlu0 %v2127_v13  ;;  %v2120_v14 = vsel %vm6113_vm4, -1e+30, %v2116_v8 }
 0xba3   : > { %v2130_v15 = vsel %vm1370_vm3, %v2120_v14, -inf }
 0xba6   : > { %2131 = vmax.xlane.f32.xlu0 %v2130_v15 }
 0xc1c   : > { %v2123_v16 = vpop.xlane.xlu0 %2122 }
 0xc1d   : > { %v2133_v17 = vsub.f32 %v2117_v58, %v2123_v16  ;;  %v4550_v58 = vld [vmem:[%s5975_s13 + $0x18] sm:$0xff]  }
 0xc1e   : > { %v2126_v19 = vpop.xlane.xlu1 %2125 }
 0xc1f   : > { %v2137_v20 = vmul.f32 1.442695, %v2133_v17  ;;  %v2134_v21 = vsub.f32 %v2118_v59, %v2126_v19  ;;  %v4552_v59 = vld [vmem:[%s5975_s13 + $0x28] sm:$0xff]  }
 0xc21   : > { %4691 = vpow2.f32 %v2137_v20  ;;  %v2139_v22 = vmul.f32 1.442695, %v2134_v21 }
 0xc23   : > { %4693 = vpow2.f32 %v2139_v22 }
 0xc2b   : > { %v4692_v34 = vpop.eup %4691 }
 0xc2c   : > { %v2145_v44 = vsel %vm1370_vm3, %v4692_v34, 0.0 }
 0xc2d   : > { %v4694_v36 = vpop.eup %4693  ;;  %2146 = vadd.xlane.f32.xlu0 %v2145_v44 }
 0xc2e   : > { %v2148_v24 = vsel %vm1370_vm3, %v4694_v36, 0.0 }
 0xc2f   : > { %2149 = vadd.xlane.f32.xlu1 %v2148_v24  ;;  %v2129_v48 = vpop.xlane.xlu0 %2128 }
 0xc30   : > { %v2135_v25 = vsub.f32 %v2119_v23, %v2129_v48 }
 0xc32   : > { %v2141_v26 = vmul.f32 1.442695, %v2135_v25 }
 0xc33   : > { %v2132_v29 = vpop.xlane.xlu0 %2131 }
 0xc34   : > { %4695 = vpow2.f32 %v2141_v26  ;;  %v2136_v33 = vsub.f32 %v2120_v14, %v2132_v29 }
 0xc36   : > { %v2143_v35 = vmul.f32 1.442695, %v2136_v33 }
 0xc38   : > { %4697 = vpow2.f32 %v2143_v35 }
 0xc3e   : > { %v4696_v37 = vpop.eup %4695 }
 0xc3f   : > { %v2151_v38 = vsel %vm1370_vm3, %v4696_v37, 0.0 }
 0xc40   : > { %2152 = vadd.xlane.f32.xlu0 %v2151_v38 }
 0xc42   : > { %v4698_v40 = vpop.eup %4697 }
 0xc43   : > { %v2154_v41 = vsel %vm1370_vm3, %v4698_v40, 0.0 }
 0xc44   : > { %2155 = vadd.xlane.f32.xlu1 %v2154_v41 }
 0xc55   : > { %2214 = vrot.lane.b32.xlu1 %v6081_v28, %s5351_s20 }
 0xc56   : > { %2167 = vrot.lane.b32.xlu0 %v6083_v30, %s5351_s20 }
 0xc59   : > { %4486 = vrot.lane.b32.xlu1 %v4485_v12, %s5351_s20 }
 0xc5a   : > { %4496 = vrot.lane.b32.xlu0 %v4495_v47, %s5350_s16 }
 0xc5d   : > { %4491 = vrot.lane.b32.xlu1 %v4490_v32, %s5351_s20 }
 0xc61   : > { %4501 = vrot.lane.b32.xlu1 %v4500_v0, %s5350_s16 }
 0xcba   : > { %v2147_v45 = vpop.xlane.xlu0 %2146 }
 0xcbc   : > { %v2150_v42 = vpop.xlane.xlu1 %2149 }
 0xcbd   : > { %4699 = vrcp.f32 %v2150_v42 }
 0xcbe   : > { %4701 = vrcp.f32 %v2147_v45 }
 0xcc7   : > { %v4700_v28 = vpop.eup %4699 }
 0xcc8   : > { %v4702_v46 = vpop.eup %4701  ;;  %v2160_v49 = vmul.f32 %v4700_v28, %v4694_v36 }
 0xcc9   : > { %v2158_v9 = vmul.f32 %v4702_v46, %v4692_v34 }
 0xccb   : > { %v2165_v27 = vpack.c.bf16 %v2160_v49, %v2158_v9 }
 0xccd   : > { %v2153_v30 = vpop.xlane.xlu0 %2152 }
 0xcce   : > { %4703 = vrcp.f32 %v2153_v30 }
 0xcd1   : > { %v2156_v11 = vpop.xlane.xlu1 %2155  ;;  %v2168_v12 = vpop.permute.xlu0 %2167 }
 0xcd2   : > { %4705 = vrcp.f32 %v2156_v11  ;;  %4281 = vmatpush3.bf16.msra.mxu1 %v2168_v12  ;;  %v4747_v12 = vld [vmem:[#allocation2] sm:$0xff] }
 0xcd3   : > { %4292 = vmatprep.subr.bf16.mxu1 %v4547_v55 }
 0xcd5   : > { %v2215_v31 = vpop.permute.xlu1 %2214  ;;  %4283 = vmatmul.mubr.msk.bf16.vlgmr.msra.gmra.mrb[28].mxu1 %vm1370_vm3, %v2165_v27  ;;  %v4497_v15 = vpop.permute.xlu0 %4496 }
 0xcd6   : > { %4287 = vmatpush3.bf16.msra.mxu0 %v2215_v31  ;;  %4293 = vmatpush3.bf16.msra.mxu1 %v4547_v55  ;;  %v4499_v19 = vunpack.i.h.bf16 %v4497_v15  ;;  %v4498_v20 = vunpack.i.l.bf16 %v4497_v15 }
 0xcd7   : > { %4294 = vmatprep.subr.bf16.mxu1 %v4548_v56 }
 0xcd8   : > { %v4704_v32 = vpop.eup %4703 }
 0xcd9   : > { %v2162_v50 = vmul.f32 %v4704_v32, %v4696_v37  ;;  %v4487_v23 = vpop.permute.xlu1 %4486  ;;  %v4748_v32 = vld [vmem:[#allocation2 + $0x10] sm:$0xff] }
 0xcda   : > { %4295 = vmatpush3.bf16.msra.mxu1 %v4548_v56  ;;  %v4489_v13 = vunpack.i.h.bf16 %v4487_v23  ;;  %v4488_v14 = vunpack.i.l.bf16 %v4487_v23 }
 0xcdb   : > { %4296 = vmatprep.subr.bf16.mxu1 %v4549_v57 }
 0xcdc   : > { %v4706_v47 = vpop.eup %4705  ;;  %v2310_v16 = vsel %vm1263_vm1, %v6159_v54, %v4489_v13  ;;  %v2309_v17 = vsel %vm1263_vm1, %v6157_v52, %v4488_v14 }
 0xcdd   : > { %v2164_v51 = vmul.f32 %v4706_v47, %v4698_v40  ;;  %v4492_v22 = vpop.permute.xlu1 %4491  ;;  %v2314_v36 = vsel %vm2313_vm5, %v2309_v17, %v4498_v20  ;;  %v2315_v24 = vsel %vm2313_vm5, %v2310_v16, %v4499_v19 }
 0xcde   : > { %4297 = vmatpush3.bf16.msra.mxu1 %v4549_v57  ;;  %v4494_v52 = vunpack.i.h.bf16 %v4492_v22  ;;  %v4493_v29 = vunpack.i.l.bf16 %v4492_v22  ;;  %v4750_v57 = vld [vmem:[#allocation2 + $0x18] sm:$0xff] }
 0xcdf   : > { %v2166_v53 = vpack.c.bf16 %v2164_v51, %v2162_v50  ;;  %4298 = vmatprep.subr.bf16.mxu1 %v4550_v58  ;;  %v4749_v51 = vld [vmem:[#allocation2 + $0x8] sm:$0xff] }
 0xce0   : > { %v2312_v38 = vsel %vm1263_vm1, %v6169_v4, %v4494_v52  ;;  %v2311_v40 = vsel %vm1263_vm1, %v6167_v2, %v4493_v29  ;;  %v3973_v4 = vld [vmem:[%s753_s5] ss:$0 sm:$0xff]  ;;  %v4576_v52 = vld [vmem:[%s5992_s15 + $0x68] ss:$16 sps:$4 sm:$0xff]  }
 0xce1   : > { %4289 = vmatmul.mubr.msk.bf16.vlgmr.msra.gmra.mrb[40].mxu0 %vm1370_vm3, %v2166_v53  ;;  %v4502_v26 = vpop.permute.xlu1 %4501  ;;  %v4581_v29 = vld [vmem:[%s5992_s15 + $0x84] ss:$16 sps:$4 sm:$0xff]  }
 0xce2   : > { %2767 = vmatprep.mubr.bf16.mxu0 %v5346_v43  ;;  %4299 = vmatpush3.bf16.msra.mxu1 %v4550_v58  ;;  %v4504_v33 = vunpack.i.h.bf16 %v4502_v26  ;;  %v4503_v35 = vunpack.i.l.bf16 %v4502_v26  ;;  %v4573_v26 = vld [vmem:[%s5992_s15 + $0x60] ss:$16 sps:$4 sm:$0xff]  }
 0xce3   : > { %4300 = vmatprep.subr.bf16.mxu1 %v4551_v18 }
 0xce4   : > { %v2316_v45 = vsel %vm2313_vm5, %v2311_v40, %v4503_v35  ;;  %v2317_v28 = vsel %vm2313_vm5, %v2312_v38, %v4504_v33  ;;  %v4584_v33 = vld [vmem:[%s5992_s15 + $0x8c] ss:$16 sps:$4 sm:$0xff]   ;;  %v4579_v35 = vld [vmem:[%s5992_s15 + $0x80] ss:$16 sps:$4 sm:$0xff]   ;;  %v4587_v38 = vld [vmem:[%s5992_s15 + $0xa4] ss:$16 sps:$4 sm:$0xff]  }
 0xce5   : > { %v4590_v40 = vld [vmem:[%s5992_s15 + $0xac] ss:$16 sps:$4 sm:$0xff]  }
 0xce6   : > { %4301 = vmatpush3.bf16.msra.mxu1 %v4551_v18 }
 0xce7   : > { %4302 = vmatprep.subr.bf16.mxu1 %v4552_v59 }
 0xcea   : > { %4303 = vmatpush3.bf16.msra.mxu1 %v4552_v59  ;;  %v4555_v59 = vld [vmem:[%s5992_s15] ss:$16 sps:$4 sm:$0xff]  }
 0xceb   : > { %4304 = vmatprep.subr.bf16.mxu1 %v4553_v60 }
 0xcee   : > { %4305 = vmatpush3.bf16.msra.mxu1 %v4553_v60  ;;  %v4557_v60 = vld [vmem:[%s5992_s15 + $0x4] ss:$16 sps:$4 sm:$0xff]  }
 0xcef   : > { %4306 = vmatprep.subr.bf16.mxu1 %v4554_v3  ;;  %2735 = vmatprep.subr.bf16.mxu0 %v4557_v60 }
 0xcf0   : > { %2736 = vmatpush1.bf16.msra.mxu0 %v4555_v59 }
 0xcf2   : > { %4307 = vmatpush3.bf16.msra.mxu1 %v4554_v3  ;;  %v4564_v3 = vld [vmem:[%s5992_s15 + $0x28] ss:$16 sps:$4 sm:$0xff]  }
 0xda8   : > { %v2207_v61 = vpop.f32.mrb[28].mxu1 }
 0xda9   : > { %v4284_v62 = vpop.f32.mrb[29].mxu1 }
 0xdaa   : > { %v2210_v63 = vpop.f32.mrb[30].mxu1  ;;  %v4560_v62 = vld [vmem:[%s5992_s15 + $0xc] ss:$16 sps:$4 sm:$0xff]  }
 0xdab   : > { %v4505_v0 = vpack.i.bf16 %v2210_v63, %v2207_v61  ;;  %v4285_v1 = vpop.f32.mrb[31].mxu1  ;;  %v4558_v61 = vld [vmem:[%s5992_s15 + $0x8] ss:$16 sps:$4 sm:$0xff]   ;;  %v4563_v63 = vld [vmem:[%s5992_s15 + $0x24] ss:$16 sps:$4 sm:$0xff]   ;;  %2788 = vmatprep.subr.bf16.mxu1 %v4560_v62 }
 0xdac   : > { %v4561_v1 = vld [vmem:[%s5992_s15 + $0x20] ss:$16 sps:$4 sm:$0xff]   ;;  %2737 = vmatprep.subr.bf16.mxu0 %v4563_v63  ;;  %v3974_v62 = vld [vmem:[%s761_s1] ss:$0 sm:$0xff] }
 0xdad   : > { %4506 = vrot.lane.b32.xlu0 %v4505_v0, %s5349_s3  ;;  %v4566_v0 = vld [vmem:[%s5992_s15 + $0x2c] ss:$16 sps:$4 sm:$0xff]   ;;  %2738 = vmatpush1.bf16.msra.mxu0 %v4561_v1 }
 0xdb4   : > { %v2254_v5 = vpop.f32.mrb[40].mxu0 }
 0xdb5   : > { %v4290_v6 = vpop.f32.mrb[41].mxu0 }
 0xdb6   : > { %v2257_v7 = vpop.f32.mrb[42].mxu0 }
 0xdb7   : > { %v4510_v8 = vpack.i.bf16 %v2257_v7, %v2254_v5  ;;  %v4291_v10 = vpop.f32.mrb[43].mxu0 }
 0xdb9   : > { %4511 = vrot.lane.b32.xlu1 %v4510_v8, %s5349_s3 }
 0xe1f   : > { %v4507_v21 = vpop.permute.xlu0 %4506 }
 0xe20   : > { %v4509_v34 = vunpack.i.h.bf16 %v4507_v21  ;;  %v4508_v44 = vunpack.i.l.bf16 %v4507_v21 }
 0xe22   : > { %v2319_v48 = vsel %vm2318_vm6, %v2314_v36, %v4508_v44  ;;  %v2320_v25 = vsel %vm2318_vm6, %v2315_v24, %v4509_v34  ;;  %v4569_v44 = vld [vmem:[%s5992_s15 + $0x44] ss:$16 sps:$4 sm:$0xff]   ;;  %v4572_v36 = vld [vmem:[%s5992_s15 + $0x4c] ss:$16 sps:$4 sm:$0xff]   ;;  %v4567_v24 = vld [vmem:[%s5992_s15 + $0x40] ss:$16 sps:$4 sm:$0xff]  }
 0xe23   : > { %v2323_v54 = vpack.c.bf16 %v2320_v25, %v2319_v48  ;;  %v4570_v48 = vld [vmem:[%s5992_s15 + $0x48] ss:$16 sps:$4 sm:$0xff]   ;;  %2739 = vmatprep.subr.bf16.mxu0 %v4569_v44  ;;  %v4575_v25 = vld [vmem:[%s5992_s15 + $0x64] ss:$16 sps:$4 sm:$0xff]  }
 0xe24   : > { %2740 = vmatpush1.bf16.msra.mxu0 %v4567_v24  ;;  %v4605_v44 = vld [vmem:[%s6001_s24] sm:$0xff]   ;;  %v4608_v24 = vld [vmem:[%s6001_s24 + $0xc8] sm:$0xff]  }
 0xe25   : > { %4308 = vmatprep.mubr.bf16.mxu1 %v2323_v54  ;;  %v4578_v54 = vld [vmem:[%s5992_s15 + $0x6c] ss:$16 sps:$4 sm:$0xff]   ;;  %2741 = vmatprep.subr.bf16.mxu0 %v4575_v25  ;;  %v4610_v25 = vld [vmem:[%s6001_s24 + $0x88] sm:$0xff]  }
 0xe28   : > { %2742 = vmatpush1.bf16.msra.mxu0 %v4573_v26  ;;  %v4612_v26 = vld [vmem:[%s6001_s24 + $0xd0] sm:$0xff]  }
 0xe29   : > { %2743 = vmatprep.subr.bf16.mxu0 %v4581_v29  ;;  %v4614_v29 = vld [vmem:[%s6001_s24 + $0x90] sm:$0xff]  }
 0xe2b   : > { %v4512_v37 = vpop.permute.xlu1 %4511 }
 0xe2c   : > { %v4514_v41 = vunpack.i.h.bf16 %v4512_v37  ;;  %v4513_v42 = vunpack.i.l.bf16 %v4512_v37  ;;  %v4582_v37 = vld [vmem:[%s5992_s15 + $0x88] ss:$16 sps:$4 sm:$0xff]   ;;  %2744 = vmatpush1.bf16.msra.mxu0 %v4579_v35  ;;  %v4616_v35 = vld [vmem:[%s6001_s24 + $0xd8] sm:$0xff]  }
 0xe2d   : > { %2745 = vmatprep.subr.bf16.mxu0 %v4587_v38  ;;  %v4618_v38 = vld [vmem:[%s6001_s24 + $0x98] sm:$0xff]  }
 0xe2e   : > { %v2322_v30 = vsel %vm2318_vm6, %v2317_v28, %v4514_v41  ;;  %v2321_v46 = vsel %vm2318_vm6, %v2316_v45, %v4513_v42  ;;  %v4585_v41 = vld [vmem:[%s5992_s15 + $0xa0] ss:$16 sps:$4 sm:$0xff]   ;;  %v4588_v42 = vld [vmem:[%s5992_s15 + $0xa8] ss:$16 sps:$4 sm:$0xff]   ;;  %v4593_v45 = vld [vmem:[%s5992_s15 + $0xc4] ss:$16 sps:$4 sm:$0xff]  }
 0xe2f   : > { %v2324_v49 = vpack.c.bf16 %v2322_v30, %v2321_v46  ;;  %v4596_v28 = vld [vmem:[%s5992_s15 + $0xcc] ss:$16 sps:$4 sm:$0xff]   ;;  %v4591_v30 = vld [vmem:[%s5992_s15 + $0xc0] ss:$16 sps:$4 sm:$0xff]   ;;  %v4594_v46 = vld [vmem:[%s5992_s15 + $0xc8] ss:$16 sps:$4 sm:$0xff]  }
 0xe30   : > { %2746 = vmatpush1.bf16.msra.mxu0 %v4585_v41  ;;  %v4620_v41 = vld [vmem:[%s6001_s24 + $0xe0] sm:$0xff]  }
 0xe31   : > { %4309 = vmatmul.mubr.bf16.vlgmr.msra.gmra.mrb[32].mxu1 %v2324_v49  ;;  %2747 = vmatprep.subr.bf16.mxu0 %v4593_v45  ;;  %v4599_v49 = vld [vmem:[%s5992_s15 + $0xe4] ss:$16 sps:$4 sm:$0xff]   ;;  %v4622_v45 = vld [vmem:[%s6001_s24 + $0xa0] sm:$0xff]  }
 0xe32   : > { %2820 = vmatprep.mubr.bf16.mxu1 %v5346_v43  ;;  %2789 = vmatpush1.bf16.msra.mxu1 %v4558_v61 }
 0xe33   : > { %2790 = vmatprep.subr.bf16.mxu1 %v4566_v0 }
 0xe34   : > { %2748 = vmatpush1.bf16.msra.mxu0 %v4591_v30  ;;  %v4624_v30 = vld [vmem:[%s6001_s24 + $0xe8] sm:$0xff]  }
 0xe35   : > { %2749 = vmatprep.subr.bf16.mxu0 %v4599_v49  ;;  %v4626_v49 = vld [vmem:[%s6001_s24 + $0xa8] sm:$0xff]  }
 0xe36   : > { %2791 = vmatpush1.bf16.msra.mxu1 %v4564_v3 }
 0xe37   : > { %2792 = vmatprep.subr.bf16.mxu1 %v4572_v36  ;;  %v4606_v36 = vld [vmem:[%s6001_s24 + $0x80] sm:$0xff]  }
 0xe3a   : > { %2793 = vmatpush1.bf16.msra.mxu1 %v4570_v48  ;;  %v4609_v48 = vld [vmem:[%s6001_s24 + $0x8] sm:$0xff]  }
 0xe3b   : > { %2794 = vmatprep.subr.bf16.mxu1 %v4578_v54  ;;  %v4611_v54 = vld [vmem:[%s6001_s24 + $0x50] sm:$0xff]  }
 0xe3e   : > { %2795 = vmatpush1.bf16.msra.mxu1 %v4576_v52  ;;  %v4613_v52 = vld [vmem:[%s6001_s24 + $0x10] sm:$0xff]  }
 0xe3f   : > { %2796 = vmatprep.subr.bf16.mxu1 %v4584_v33  ;;  %v4615_v33 = vld [vmem:[%s6001_s24 + $0x58] sm:$0xff]  }
 0xe42   : > { %2797 = vmatpush1.bf16.msra.mxu1 %v4582_v37  ;;  %v4617_v37 = vld [vmem:[%s6001_s24 + $0x18] sm:$0xff]  }
 0xe43   : > { %2798 = vmatprep.subr.bf16.mxu1 %v4590_v40  ;;  %v4619_v40 = vld [vmem:[%s6001_s24 + $0x60] sm:$0xff]  }
 0xe46   : > { %2799 = vmatpush1.bf16.msra.mxu1 %v4588_v42  ;;  %v4621_v42 = vld [vmem:[%s6001_s24 + $0x20] sm:$0xff]  }
 0xe47   : > { %2800 = vmatprep.subr.bf16.mxu1 %v4596_v28  ;;  %v4623_v28 = vld [vmem:[%s6001_s24 + $0x68] sm:$0xff]  }
 0xe4a   : > { %2801 = vmatpush1.bf16.msra.mxu1 %v4594_v46  ;;  %v4625_v46 = vld [vmem:[%s6001_s24 + $0x28] sm:$0xff]  }
 0xf04   : > { %v4310_v9 = vpop.f32.mrb[32].mxu1 }
 0xf05   : > { %v2423_v11 = vpop.f32.mrb[33].mxu1  ;;  %v2440_v47 = vadd.f32 %v4748_v32, %v4310_v9  ;;  %v4602_v9 = vld [vmem:[%s5992_s15 + $0xec] ss:$16 sps:$4 sm:$0xff]  }
 0xf06   : > { %v2438_v2 = vadd.f32 %v4747_v12, %v2423_v11  ;;  %v4311_v27 = vpop.f32.mrb[34].mxu1  ;;  %v4600_v11 = vld [vmem:[%s5992_s15 + $0xe8] ss:$16 sps:$4 sm:$0xff]   ;;  %2802 = vmatprep.subr.bf16.mxu1 %v4602_v9 }
 0xf07   : > { %v2426_v31 = vpop.f32.mrb[35].mxu1  ;;  %v6342_v56 = vadd.f32 %v3973_v4, %v2440_v47  ;;  %v2441_v58 = vadd.f32 %v4750_v57, %v4311_v27  ;;  %2803 = vmatpush1.bf16.msra.mxu1 %v4600_v11  ;;  %v4627_v9 = vld [vmem:[%s6001_s24 + $0x70] sm:$0xff]  }
 0xf08   : > { %v6337_v50 = vadd.f32 %v3973_v4, %v2438_v2  ;;  %v2439_v53 = vadd.f32 %v4749_v51, %v2426_v31  ;;  %v4629_v11 = vld [vmem:[%s6001_s24 + $0x30] sm:$0xff]  }
 0xf09   : > { %v6346_v18 = vadd.f32 %v3973_v4, %v2441_v58 }
 0xf0a   : > { %v6339_v55 = vadd.f32 %v3973_v4, %v2439_v53  ;;  %2455 = vadd.xlane.f32.xlu0 %v6337_v50  ;;  %v4597_v4 = vld [vmem:[%s5992_s15 + $0xe0] ss:$16 sps:$4 sm:$0xff]  }
 0xf0b   : > { %2750 = vmatpush1.bf16.msra.mxu0 %v4597_v4  ;;  %v4628_v4 = vld [vmem:[%s6001_s24 + $0xf0] sm:$0xff]  }
 0xf0c   : > { %2457 = vadd.xlane.f32.xlu1 %v6339_v55 }
 0xf0e   : > { %2459 = vadd.xlane.f32.xlu0 %v6342_v56 }
 0xf12   : > { %2461 = vadd.xlane.f32.xlu0 %v6346_v18 }
 0xf97   : > { %v2456_v5 = vpop.xlane.xlu0 %2455 }
 0xf98   : > { %v2463_v6 = vmul.f32 0.0078125, %v2456_v5 }
 0xf99   : > { %v2458_v7 = vpop.xlane.xlu1 %2457 }
 0xf9a   : > { %v6358_v8 = vsub.f32 %v6337_v50, %v2463_v6  ;;  %v2464_v10 = vmul.f32 0.0078125, %v2458_v7  ;;  %v3975_v6 = vld [vmem:[%s769_s17] ss:$0 sm:$0xff] }
 0xf9b   : > { %v2460_v23 = vpop.xlane.xlu0 %2459 }
 0xf9c   : > { %v6361_v13 = vsub.f32 %v6339_v55, %v2464_v10  ;;  %v2465_v14 = vmul.f32 0.0078125, %v2460_v23  ;;  %v2471_v15 = vmul.f32 %v6358_v8, %v6358_v8 }
 0xf9e   : > { %v6366_v16 = vsub.f32 %v6342_v56, %v2465_v14  ;;  %2475 = vadd.xlane.f32.xlu0 %v2471_v15  ;;  %v2472_v17 = vmul.f32 %v6361_v13, %v6361_v13 }
 0xf9f   : > { %v2462_v19 = vpop.xlane.xlu0 %2461 }
 0xfa0   : > { %v2466_v20 = vmul.f32 0.0078125, %v2462_v19  ;;  %2477 = vadd.xlane.f32.xlu1 %v2472_v17  ;;  %v2473_v21 = vmul.f32 %v6366_v16, %v6366_v16 }
 0xfa2   : > { %v6373_v22 = vsub.f32 %v6346_v18, %v2466_v20  ;;  %2479 = vadd.xlane.f32.xlu0 %v2473_v21 }
 0xfa4   : > { %v2474_v34 = vmul.f32 %v6373_v22, %v6373_v22 }
 0xfa6   : > { %2481 = vadd.xlane.f32.xlu1 %v2474_v34  ;;  %v4604_v34 = vld [vmem:[%s6001_s24 + $0xc0] sm:$0xff]  }
 0xfa7   : > { %4148 = vmatprep.subr.bf16.mxu1 %v4604_v34 }
0x102b   : > { %v2476_v12 = vpop.xlane.xlu0 %2475 }
0x102c   : > { %v2483_v2 = vmul.f32 0.0078125, %v2476_v12  ;;  %v4630_v12 = vld [vmem:[%s6001_s24 + $0xb0] sm:$0xff]  }
0x102d   : > { %v2478_v27 = vpop.xlane.xlu1 %2477 }
0x102e   : > { %v2487_v31 = vadd.f32 1e-05, %v2483_v2  ;;  %v2484_v32 = vmul.f32 0.0078125, %v2478_v27  ;;  %v4631_v2 = vld [vmem:[%s6001_s24 + $0x78] sm:$0xff]  }
0x102f   : > { %v2480_v47 = vpop.xlane.xlu0 %2479  ;;  %v4632_v27 = vld [vmem:[%s6001_s24 + $0xf8] sm:$0xff]  }
0x1030   : > { %4707 = vrsqrt.f32 %v2487_v31  ;;  %v2488_v51 = vadd.f32 1e-05, %v2484_v32  ;;  %v2485_v53 = vmul.f32 0.0078125, %v2480_v47  ;;  %v4633_v31 = vld [vmem:[%s6001_s24 + $0x38] sm:$0xff]   ;;  %v2557_v47 = vsub.s32 0, %v6105_v39 }
0x1031   : > { %v4634_v32 = vld [vmem:[%s6001_s24 + $0xb8] sm:$0xff]  }
0x1032   : > { %4709 = vrsqrt.f32 %v2488_v51  ;;  %v2489_v57 = vadd.f32 1e-05, %v2485_v53  ;;  %v2565_v51 = vsub.s32 2, %v6105_v39  ;;  %v2553_v53 = vld [vmem:[%s5995_s26] sm:$0xf] }
0x1033   : > { %v2482_v58 = vpop.xlane.xlu1 %2481 }
0x1034   : > { %4711 = vrsqrt.f32 %v2489_v57  ;;  %v2486_v59 = vmul.f32 0.0078125, %v2482_v58  ;;  %v2561_v57 = vsub.s32 1, %v6105_v39  ;;  %v2569_v58 = vsub.s32 3, %v6105_v39 }
0x1036   : > { %v2490_v60 = vadd.f32 1e-05, %v2486_v59  ;;  %v6448_v59 = vrot.slane %v2553_v53, %v2557_v47 }
0x1038   : > { %4713 = vrsqrt.f32 %v2490_v60  ;;  %v6450_v60 = vrot.slane %v2553_v53, %v2565_v51 }
0x103a   : > { %v4708_v61 = vpop.eup %4707 }
0x103b   : > { %v2495_v63 = vmul.f32 %v4708_v61, %v6358_v8  ;;  %v6452_v61 = vrot.slane %v2553_v53, %v2561_v57 }
0x103c   : > { %v4710_v0 = vpop.eup %4709 }
0x103d   : > { %v2496_v1 = vmul.f32 %v4710_v0, %v6361_v13  ;;  %v2505_v3 = vmul.f32 %v3974_v62, %v2495_v63 }
0x103e   : > { %v4712_v5 = vpop.eup %4711 }
0x103f   : > { %v2506_v7 = vmul.f32 %v3974_v62, %v2496_v1  ;;  %v2515_v10 = vadd.f32 %v3975_v6, %v2505_v3  ;;  %v2497_v14 = vmul.f32 %v4712_v5, %v6366_v16 }
0x1041   : > { %v2516_v23 = vadd.f32 %v3975_v6, %v2506_v7  ;;  %v2507_v8 = vmul.f32 %v3974_v62, %v2497_v14 }
0x1042   : > { %v4714_v15 = vpop.eup %4713 }
0x1043   : > { %v2519_v17 = vpack.c.bf16 %v2516_v23, %v2515_v10  ;;  %v2498_v19 = vmul.f32 %v4714_v15, %v6373_v22  ;;  %v2517_v16 = vadd.f32 %v3975_v6, %v2507_v8  ;;  %v4603_v22 = vld [vmem:[%s6001_s24 + $0x40] sm:$0xff]  }
0x1044   : > { %4120 = vmatprep.subr.bf16.mxu0 %v4603_v22 }
0x1045   : > { %2768 = vmatmul.mubr.bf16.vlgmr.msra.gmra.mrb[44].mxu0 %v2519_v17  ;;  %2821 = vmatmul.mubr.bf16.vlgmr.msra.gmra.mrb[36].mxu1 %v2519_v17  ;;  %v2508_v13 = vmul.f32 %v3974_v62, %v2498_v19  ;;  %v6454_v62 = vrot.slane %v2553_v53, %v2569_v58 }
0x1046   : > { %2777 = vmatprep.mubr.bf16.mxu0 %v5346_v43  ;;  %2830 = vmatprep.mubr.bf16.mxu1 %v5346_v43  ;;  %v4607_v43 = vld [vmem:[%s6001_s24 + $0x48] sm:$0xff]  }
0x1047   : > { %v2518_v20 = vadd.f32 %v3975_v6, %v2508_v13  ;;  %4121 = vmatpush3.bf16.msra.mxu0 %v4605_v44  ;;  %4149 = vmatpush3.bf16.msra.mxu1 %v4606_v36 }
0x1048   : > { %4122 = vmatprep.subr.bf16.mxu0 %v4607_v43  ;;  %4150 = vmatprep.subr.bf16.mxu1 %v4608_v24 }
0x1049   : > { %v2520_v21 = vpack.c.bf16 %v2518_v20, %v2517_v16 }
0x104b   : > { %4123 = vmatpush3.bf16.msra.mxu0 %v4609_v48  ;;  %4151 = vmatpush3.bf16.msra.mxu1 %v4610_v25 }
0x104c   : > { %4124 = vmatprep.subr.bf16.mxu0 %v4611_v54  ;;  %4152 = vmatprep.subr.bf16.mxu1 %v4612_v26 }
0x104d   : > { %2778 = vmatmul.mubr.bf16.gmra.mrb[48].mxu0 %v2520_v21  ;;  %2831 = vmatmul.mubr.bf16.gmra.mrb[40].mxu1 %v2520_v21 }
0x104f   : > { %4125 = vmatpush3.bf16.msra.mxu0 %v4613_v52  ;;  %4153 = vmatpush3.bf16.msra.mxu1 %v4614_v29 }
0x1050   : > { %4126 = vmatprep.subr.bf16.mxu0 %v4615_v33  ;;  %4154 = vmatprep.subr.bf16.mxu1 %v4616_v35 }
0x1053   : > { %4127 = vmatpush3.bf16.msra.mxu0 %v4617_v37  ;;  %4155 = vmatpush3.bf16.msra.mxu1 %v4618_v38 }
0x1054   : > { %4128 = vmatprep.subr.bf16.mxu0 %v4619_v40  ;;  %4156 = vmatprep.subr.bf16.mxu1 %v4620_v41 }
0x1057   : > { %4129 = vmatpush3.bf16.msra.mxu0 %v4621_v42  ;;  %4157 = vmatpush3.bf16.msra.mxu1 %v4622_v45 }
0x1058   : > { %4130 = vmatprep.subr.bf16.mxu0 %v4623_v28  ;;  %4158 = vmatprep.subr.bf16.mxu1 %v4624_v30 }
0x105b   : > { %4131 = vmatpush3.bf16.msra.mxu0 %v4625_v46  ;;  %4159 = vmatpush3.bf16.msra.mxu1 %v4626_v49 }
0x105c   : > { %4132 = vmatprep.subr.bf16.mxu0 %v4627_v9  ;;  %4160 = vmatprep.subr.bf16.mxu1 %v4628_v4 }
0x105f   : > { %4133 = vmatpush3.bf16.msra.mxu0 %v4629_v11  ;;  %4161 = vmatpush3.bf16.msra.mxu1 %v4630_v12 }
0x1060   : > { %4134 = vmatprep.subr.bf16.mxu0 %v4631_v2  ;;  %4162 = vmatprep.subr.bf16.mxu1 %v4632_v27 }
0x1063   : > { %4135 = vmatpush3.bf16.msra.mxu0 %v4633_v31  ;;  %4163 = vmatpush3.bf16.msra.mxu1 %v4634_v32 }
0x1118   : > { %v2769_v63 = vpop.f32.mrb[44].mxu0  ;;  %v2822_v0 = vpop.f32.mrb[36].mxu1 }
0x1119   : > { %v2770_v1 = vadd.f32 %v2769_v63, %v6448_v59  ;;  %v2823_v3 = vadd.f32 %v2822_v0, %v6450_v60  ;;  %v2771_v5 = vpop.f32.mrb[45].mxu0  ;;  %v2824_v6 = vpop.f32.mrb[37].mxu1 }
0x111a   : > { %v6459_v7 = vadd.f32 %v2771_v5, %v6452_v61  ;;  %v6462_v39 = vadd.f32 %v2824_v6, %v6454_v62  ;;  %v2773_v10 = vpop.f32.mrb[46].mxu0  ;;  %v2826_v23 = vpop.f32.mrb[38].mxu1 }
0x111b   : > { %v6464_v14 = vmul.f32 0.5, %v2770_v1  ;;  %v2857_v15 = vmul.f32 %v2770_v1, %v2770_v1  ;;  %v6466_v17 = vmul.f32 0.5, %v2823_v3  ;;  %v2859_v19 = vmul.f32 %v2823_v3, %v2823_v3  ;;  %v2775_v8 = vpop.f32.mrb[47].mxu0  ;;  %v2828_v13 = vpop.f32.mrb[39].mxu1 }
0x111c   : > { %v2858_v20 = vmul.f32 %v6459_v7, %v6459_v7  ;;  %v2860_v16 = vmul.f32 %v6462_v39, %v6462_v39  ;;  %v2774_v21 = vadd.f32 %v2773_v10, %v6448_v59  ;;  %v2827_v22 = vadd.f32 %v2826_v23, %v6450_v60 }
0x111d   : > { %v2873_v34 = vmul.f32 %v2857_v15, %v2770_v1  ;;  %v2875_v44 = vmul.f32 %v2859_v19, %v2823_v3  ;;  %v6475_v36 = vadd.f32 %v2775_v8, %v6452_v61  ;;  %v6478_v43 = vadd.f32 %v2828_v13, %v6454_v62 }
0x111e   : > { %v2874_v24 = vmul.f32 %v2858_v20, %v6459_v7  ;;  %v2876_v48 = vmul.f32 %v2860_v16, %v6462_v39  ;;  %v6482_v25 = vmul.f32 0.5, %v2774_v21  ;;  %v2861_v54 = vmul.f32 %v2774_v21, %v2774_v21 }
0x111f   : > { %v2889_v26 = vmul.f32 0.044715, %v2873_v34  ;;  %v2891_v52 = vmul.f32 0.044715, %v2875_v44  ;;  %v6484_v29 = vmul.f32 0.5, %v2827_v22  ;;  %v2863_v33 = vmul.f32 %v2827_v22, %v2827_v22 }
0x1120   : > { %v2890_v35 = vmul.f32 0.044715, %v2874_v24  ;;  %v2892_v37 = vmul.f32 0.044715, %v2876_v48  ;;  %v2877_v38 = vmul.f32 %v2861_v54, %v2774_v21  ;;  %v2862_v40 = vmul.f32 %v6475_v36, %v6475_v36  ;;  %v2779_v41 = vpop.f32.mrb[48].mxu0  ;;  %v2832_v42 = vpop.f32.mrb[40].mxu1 }
0x1121   : > { %v2905_v45 = vadd.f32 %v2889_v26, %v2770_v1  ;;  %v2907_v28 = vadd.f32 %v2891_v52, %v2823_v3  ;;  %v2879_v30 = vmul.f32 %v2863_v33, %v2827_v22  ;;  %v2864_v46 = vmul.f32 %v6478_v43, %v6478_v43  ;;  %v2781_v49 = vpop.f32.mrb[49].mxu0  ;;  %v2834_v9 = vpop.f32.mrb[41].mxu1 }
0x1122   : > { %v2906_v4 = vadd.f32 %v2890_v35, %v6459_v7  ;;  %v2908_v11 = vadd.f32 %v2892_v37, %v6462_v39  ;;  %v2893_v12 = vmul.f32 0.044715, %v2877_v38  ;;  %v2878_v2 = vmul.f32 %v2862_v40, %v6475_v36  ;;  %v2783_v27 = vpop.f32.mrb[50].mxu0  ;;  %v2836_v31 = vpop.f32.mrb[42].mxu1 }
0x1123   : > { %v2921_v32 = vmul.f32 0.7978846, %v2905_v45  ;;  %v2923_v47 = vmul.f32 0.7978846, %v2907_v28  ;;  %v2895_v51 = vmul.f32 0.044715, %v2879_v30  ;;  %v2880_v53 = vmul.f32 %v2864_v46, %v6478_v43 }
0x1124   : > { %v2922_v57 = vmul.f32 0.7978846, %v2906_v4  ;;  %v2924_v58 = vmul.f32 0.7978846, %v2908_v11  ;;  %v2909_v63 = vadd.f32 %v2893_v12, %v2774_v21  ;;  %v2894_v0 = vmul.f32 0.044715, %v2878_v2 }
0x1125   : > { %4715 = vtanh.f32 %v2921_v32  ;;  %v2911_v1 = vadd.f32 %v2895_v51, %v2827_v22  ;;  %v2896_v3 = vmul.f32 0.044715, %v2880_v53  ;;  %v6495_v5 = vadd.f32 %v2779_v41, %v6448_v59  ;;  %v2785_v6 = vpop.f32.mrb[51].mxu0  ;;  %v2838_v10 = vpop.f32.mrb[43].mxu1 }
0x1126   : > { %4717 = vtanh.f32 %v2923_v47  ;;  %v2925_v23 = vmul.f32 0.7978846, %v2909_v63  ;;  %v2910_v15 = vadd.f32 %v2894_v0, %v6475_v36  ;;  %v6499_v19 = vadd.f32 %v2832_v42, %v6450_v60 }
0x1127   : > { %4719 = vtanh.f32 %v2922_v57  ;;  %v2927_v8 = vmul.f32 0.7978846, %v2911_v1  ;;  %v2912_v13 = vadd.f32 %v2896_v3, %v6478_v43  ;;  %v2865_v20 = vmul.f32 %v6495_v5, %v6495_v5 }
0x1128   : > { %4721 = vtanh.f32 %v2924_v58  ;;  %v2926_v16 = vmul.f32 0.7978846, %v2910_v15  ;;  %v2867_v21 = vmul.f32 %v6499_v19, %v6499_v19  ;;  %v6507_v22 = vadd.f32 %v2781_v49, %v6452_v61 }
0x1129   : > { %4723 = vtanh.f32 %v2925_v23  ;;  %v2928_v34 = vmul.f32 0.7978846, %v2912_v13  ;;  %v2881_v44 = vmul.f32 %v2865_v20, %v6495_v5  ;;  %v6511_v24 = vadd.f32 %v2834_v9, %v6454_v62 }
0x112a   : > { %4725 = vtanh.f32 %v2927_v8  ;;  %v2883_v48 = vmul.f32 %v2867_v21, %v6499_v19  ;;  %v2866_v54 = vmul.f32 %v6507_v22, %v6507_v22  ;;  %v6517_v26 = vadd.f32 %v2783_v27, %v6448_v59 }
0x112b   : > { %4727 = vtanh.f32 %v2926_v16  ;;  %v2897_v52 = vmul.f32 0.044715, %v2881_v44  ;;  %v2868_v33 = vmul.f32 %v6511_v24, %v6511_v24  ;;  %v6522_v35 = vadd.f32 %v2836_v31, %v6450_v60 }
0x112c   : > { %4729 = vtanh.f32 %v2928_v34  ;;  %v2899_v37 = vmul.f32 0.044715, %v2883_v48  ;;  %v2882_v38 = vmul.f32 %v2866_v54, %v6507_v22  ;;  %v2869_v40 = vmul.f32 %v6517_v26, %v6517_v26 }
0x112d   : > { %v2913_v41 = vadd.f32 %v2897_v52, %v6495_v5  ;;  %v2884_v59 = vmul.f32 %v2868_v33, %v6511_v24  ;;  %v2871_v42 = vmul.f32 %v6522_v35, %v6522_v35  ;;  %v6532_v45 = vadd.f32 %v2785_v6, %v6452_v61 }
0x112e   : > { %v2915_v60 = vadd.f32 %v2899_v37, %v6499_v19  ;;  %v2898_v28 = vmul.f32 0.044715, %v2882_v38  ;;  %v2885_v30 = vmul.f32 %v2869_v40, %v6517_v26  ;;  %v6537_v46 = vadd.f32 %v2838_v10, %v6454_v62 }
0x112f   : > { %v4716_v49 = vpop.eup %4715  ;;  %v2929_v9 = vmul.f32 0.7978846, %v2913_v41  ;;  %v2900_v4 = vmul.f32 0.044715, %v2884_v59  ;;  %v2887_v11 = vmul.f32 %v2871_v42, %v6522_v35  ;;  %v2870_v12 = vmul.f32 %v6532_v45, %v6532_v45 }
0x1130   : > { %v4718_v2 = vpop.eup %4717  ;;  %v2953_v27 = vadd.f32 1.0, %v4716_v49  ;;  %v2931_v61 = vmul.f32 0.7978846, %v2915_v60  ;;  %v2914_v31 = vadd.f32 %v2898_v28, %v6507_v22  ;;  %v2901_v32 = vmul.f32 0.044715, %v2885_v30 }
0x1131   : > { %v4720_v47 = vpop.eup %4719  ;;  %v2955_v51 = vadd.f32 1.0, %v4718_v2  ;;  %4731 = vtanh.f32 %v2929_v9  ;;  %v2916_v62 = vadd.f32 %v2900_v4, %v6511_v24  ;;  %v2903_v53 = vmul.f32 0.044715, %v2887_v11 }
0x1132   : > { %v4722_v57 = vpop.eup %4721  ;;  %v2969_v58 = vmul.f32 %v2953_v27, %v6464_v14  ;;  %4733 = vtanh.f32 %v2931_v61  ;;  %v2930_v63 = vmul.f32 0.7978846, %v2914_v31  ;;  %v2917_v0 = vadd.f32 %v2901_v32, %v6517_v26 }
0x1133   : > { %v4724_v1 = vpop.eup %4723  ;;  %v2971_v3 = vmul.f32 %v2955_v51, %v6466_v17  ;;  %v2932_v6 = vmul.f32 0.7978846, %v2916_v62  ;;  %v2919_v10 = vadd.f32 %v2903_v53, %v6522_v35  ;;  %v2886_v23 = vmul.f32 %v2870_v12, %v6532_v45 }
0x1134   : > { %v4726_v15 = vpop.eup %4725  ;;  %v2957_v8 = vadd.f32 1.0, %v4724_v1  ;;  %4735 = vtanh.f32 %v2930_v63  ;;  %v2933_v13 = vmul.f32 0.7978846, %v2917_v0  ;;  %v2872_v20 = vmul.f32 %v6537_v46, %v6537_v46 }
0x1135   : > { %v4728_v14 = vpop.eup %4727  ;;  %v2959_v16 = vadd.f32 1.0, %v4726_v15  ;;  %4737 = vtanh.f32 %v2932_v6  ;;  %v2935_v21 = vmul.f32 0.7978846, %v2919_v10  ;;  %v2902_v34 = vmul.f32 0.044715, %v2886_v23 }
0x1136   : > { %v4730_v44 = vpop.eup %4729  ;;  %v2973_v17 = vmul.f32 %v2957_v8, %v6482_v25  ;;  %4739 = vtanh.f32 %v2933_v13  ;;  %v2888_v48 = vmul.f32 %v2872_v20, %v6537_v46  ;;  %v2842_v54 = vmul.f32 0.5, %v6459_v7 }
0x1137   : > { %v2975_v52 = vmul.f32 %v2959_v16, %v6484_v29  ;;  %4741 = vtanh.f32 %v2935_v21  ;;  %v2918_v33 = vadd.f32 %v2902_v34, %v6532_v45  ;;  %v2846_v37 = vmul.f32 0.5, %v6475_v36 }
0x1138   : > { %v2904_v38 = vmul.f32 0.044715, %v2888_v48  ;;  %v2954_v40 = vadd.f32 1.0, %v4720_v47  ;;  %v2958_v41 = vadd.f32 1.0, %v4728_v14  ;;  %v2844_v59 = vmul.f32 0.5, %v6462_v39 }
0x1139   : > { %v2934_v42 = vmul.f32 0.7978846, %v2918_v33  ;;  %v2848_v25 = vmul.f32 0.5, %v6478_v43  ;;  %v2956_v60 = vadd.f32 1.0, %v4722_v57  ;;  %v2960_v28 = vadd.f32 1.0, %v4730_v44 }
0x113a   : > { %v2920_v30 = vadd.f32 %v2904_v38, %v6537_v46  ;;  %v2970_v7 = vmul.f32 %v2954_v40, %v2842_v54  ;;  %v2974_v49 = vmul.f32 %v2958_v41, %v2846_v37  ;;  %v2985_v29 = vpack.c.bf16 %v2973_v17, %v2969_v58  ;;  %v4008_v33 = vld [vmem:[%s804_s30] ss:$0 sm:$0xff] }
0x113b   : > { %v4732_v9 = vpop.eup %4731  ;;  %4743 = vtanh.f32 %v2934_v42  ;;  %v2972_v4 = vmul.f32 %v2956_v60, %v2844_v59  ;;  %v2976_v11 = vmul.f32 %v2960_v28, %v2848_v25  ;;  %v2987_v36 = vpack.c.bf16 %v2975_v52, %v2971_v3 }
0x113c   : > { %v4734_v12 = vpop.eup %4733  ;;  %v2936_v2 = vmul.f32 0.7978846, %v2920_v30  ;;  %v2986_v27 = vpack.c.bf16 %v2974_v49, %v2970_v7  ;;  %v2961_v31 = vadd.f32 1.0, %v4732_v9  ;;  %v2849_v62 = vmul.f32 0.5, %v6495_v5 }
0x113d   : > { %v2988_v61 = vpack.c.bf16 %v2976_v11, %v2972_v4  ;;  %v2963_v47 = vadd.f32 1.0, %v4734_v12  ;;  %v2853_v53 = vmul.f32 0.5, %v6517_v26  ;;  %v2851_v58 = vmul.f32 0.5, %v6499_v19 }
0x113e   : > { %v4736_v39 = vpop.eup %4735  ;;  %4745 = vtanh.f32 %v2936_v2  ;;  %3288 = vmatprep.mubr.bf16.mxu0 %v2986_v27  ;;  %v2855_v63 = vmul.f32 0.5, %v6522_v35  ;;  %v2977_v1 = vmul.f32 %v2961_v31, %v2849_v62  ;;  %v2850_v13 = vmul.f32 0.5, %v6507_v22 }
0x113f   : > { %v4738_v43 = vpop.eup %4737  ;;  %3337 = vmatprep.mubr.bf16.mxu1 %v2988_v61  ;;  %3289 = vmatmul.mubr.bf16.vlgmr.msra.gmra.mrb[52].mxu0 %v2985_v29  ;;  %v2962_v6 = vadd.f32 1.0, %v4736_v39  ;;  %v2979_v10 = vmul.f32 %v2963_v47, %v2851_v58  ;;  %v2854_v20 = vmul.f32 0.5, %v6532_v45  ;;  %v2852_v35 = vmul.f32 0.5, %v6511_v24  ;;  %v4751_v58 = vld [vmem:[#allocation26 + $0x4] ss:$8 sps:$4 sm:$0xff] (!%p4041_p1)  }
0x1140   : > { %v4740_v32 = vpop.eup %4739  ;;  %3338 = vmatmul.mubr.bf16.vlgmr.msra.gmra.mrb[44].mxu1 %v2987_v36  ;;  %v2964_v26 = vadd.f32 1.0, %v4738_v43  ;;  %v2856_v34 = vmul.f32 0.5, %v6537_v46  ;;  %3530 = vmatprep.subr.bf16.mxu0 (!%p4041_p1), %v4751_v58 }
0x1141   : > { %v4742_v51 = vpop.eup %4741  ;;  %v2965_v57 = vadd.f32 1.0, %v4740_v32  ;;  %v2978_v19 = vmul.f32 %v2962_v6, %v2850_v13  ;;  %4312 = vmatprep.subr.bf16.mxu1 (!%p4041_p1), %v4751_v58 }
0x1142   : > { %v2967_v0 = vadd.f32 1.0, %v4742_v51  ;;  %v2980_v48 = vmul.f32 %v2964_v26, %v2852_v35  ;;  %v4757_v35 = vld [vmem:[#allocation26 + $0x24] ss:$8 sps:$4 sm:$0xff] (!%p4041_p1)  }
0x1143   : > { %v2981_v3 = vmul.f32 %v2965_v57, %v2853_v53 }
0x1144   : > { %v2983_v23 = vmul.f32 %v2967_v0, %v2855_v63  ;;  %v4753_v63 = vld [vmem:[#allocation26] ss:$8 sps:$4 sm:$0xff] (!%p4041_p1)  }
0x1145   : > { %v4744_v15 = vpop.eup %4743  ;;  %v2989_v8 = vpack.c.bf16 %v2981_v3, %v2977_v1  ;;  %3531 = vmatpush1.bf16.msra.mxu0 (!%p4041_p1), %v4753_v63  ;;  %4320 = vmatpush1.bf16.msra.mxu1 (!%p4041_p1), %v4753_v63 }
0x1146   : > { %v2966_v5 = vadd.f32 1.0, %v4744_v15  ;;  %v2991_v14 = vpack.c.bf16 %v2983_v23, %v2979_v10 }
0x1148   : > { %v4746_v16 = vpop.eup %4745  ;;  %v2982_v21 = vmul.f32 %v2966_v5, %v2854_v20 }
0x1149   : > { %v2968_v44 = vadd.f32 1.0, %v4746_v16 }
0x114a   : > { %v2990_v17 = vpack.c.bf16 %v2982_v21, %v2978_v19  ;;  %v4754_v19 = vld [vmem:[#allocation26 + $0x14] ss:$8 sps:$4 sm:$0xff] (!%p4041_p1)   ;;  %v4756_v21 = vld [vmem:[#allocation26 + $0x10] ss:$8 sps:$4 sm:$0xff] (!%p4041_p1)  }
0x114b   : > { %v2984_v54 = vmul.f32 %v2968_v44, %v2856_v34  ;;  %3532 = vmatprep.subr.bf16.mxu0 (!%p4041_p1), %v4754_v19  ;;  %4313 = vmatprep.subr.bf16.mxu1 (!%p4041_p1), %v4754_v19  ;;  %v4759_v34 = vld [vmem:[#allocation26 + $0x20] ss:$8 sps:$4 sm:$0xff] (!%p4041_p1)   ;;  %v4760_v44 = vld [vmem:[#allocation26 + $0x34] ss:$8 sps:$4 sm:$0xff] (!%p4041_p1)  }
0x114c   : > { %3296 = vmatprep.mubr.bf16.mxu0 %v2990_v17  ;;  %3533 = vmatpush1.bf16.msra.mxu0 (!%p4041_p1), %v4756_v21  ;;  %v4762_v17 = vld [vmem:[#allocation26 + $0x30] ss:$8 sps:$4 sm:$0xff] (!%p4041_p1)  }
0x114d   : > { %v2992_v52 = vpack.c.bf16 %v2984_v54, %v2980_v48  ;;  %3297 = vmatmul.mubr.bf16.gmra.mrb[56].mxu0 %v2989_v8  ;;  %4321 = vmatpush1.bf16.msra.mxu1 (!%p4041_p1), %v4756_v21  ;;  %v4763_v48 = vld [vmem:[#allocation26 + $0x44] ss:$8 sps:$4 sm:$0xff] (!%p4041_p1)   ;;  %v4765_v54 = vld [vmem:[#allocation26 + $0x40] ss:$8 sps:$4 sm:$0xff] (!%p4041_p1)  }
0x114e   : > { %3534 = vmatprep.subr.bf16.mxu0 (!%p4041_p1), %v4757_v35  ;;  %4314 = vmatprep.subr.bf16.mxu1 (!%p4041_p1), %v4757_v35 }
0x114f   : > { %3345 = vmatprep.mubr.bf16.mxu1 %v2992_v52  ;;  %v4766_v52 = vld [vmem:[#allocation26 + $0x54] ss:$8 sps:$4 sm:$0xff] (!%p4041_p1)  }
0x1150   : > { %3346 = vmatmul.mubr.bf16.gmra.mrb[48].mxu1 %v2991_v14  ;;  %3535 = vmatpush1.bf16.msra.mxu0 (!%p4041_p1), %v4759_v34 }
0x1151   : > { %4322 = vmatpush1.bf16.msra.mxu1 (!%p4041_p1), %v4759_v34  ;;  %3536 = vmatprep.subr.bf16.mxu0 (!%p4041_p1), %v4760_v44 }
0x1152   : > { %4315 = vmatprep.subr.bf16.mxu1 (!%p4041_p1), %v4760_v44 }
0x1154   : > { %3537 = vmatpush1.bf16.msra.mxu0 (!%p4041_p1), %v4762_v17 }
0x1155   : > { %4323 = vmatpush1.bf16.msra.mxu1 (!%p4041_p1), %v4762_v17  ;;  %3538 = vmatprep.subr.bf16.mxu0 (!%p4041_p1), %v4763_v48 }
0x1156   : > { %4316 = vmatprep.subr.bf16.mxu1 (!%p4041_p1), %v4763_v48 }
0x1158   : > { %3539 = vmatpush1.bf16.msra.mxu0 (!%p4041_p1), %v4765_v54 }
0x1159   : > { %4324 = vmatpush1.bf16.msra.mxu1 (!%p4041_p1), %v4765_v54  ;;  %3540 = vmatprep.subr.bf16.mxu0 (!%p4041_p1), %v4766_v52 }
0x115a   : > { %4317 = vmatprep.subr.bf16.mxu1 (!%p4041_p1), %v4766_v52 }
0x1212   : > { %v4136_v22 = vpop.f32.mrb[52].mxu0 }
0x1213   : > { %v4164_v45 = vpop.f32.mrb[44].mxu1  ;;  %v4137_v37 = vpop.f32.mrb[53].mxu0 }
0x1214   : > { %v4138_v38 = vadd.f32 %v4137_v37, %v4136_v22  ;;  %v4165_v40 = vpop.f32.mrb[45].mxu1  ;;  %v4139_v41 = vpop.f32.mrb[54].mxu0  ;;  %v4768_v22 = vld [vmem:[#allocation26 + $0x50] ss:$8 sps:$4 sm:$0xff] (!%p4041_p1)   ;;  %v4771_v37 = vld [vmem:[#allocation26 + $0x60] ss:$8 sps:$4 sm:$0xff] (!%p4041_p1)  }
0x1215   : > { %v4166_v24 = vadd.f32 %v4165_v40, %v4164_v45  ;;  %v4167_v59 = vpop.f32.mrb[46].mxu1  ;;  %v4140_v46 = vpop.f32.mrb[55].mxu0  ;;  %v4769_v45 = vld [vmem:[#allocation26 + $0x64] ss:$8 sps:$4 sm:$0xff] (!%p4041_p1)   ;;  %3541 = vmatpush1.bf16.msra.mxu0 (!%p4041_p1), %v4768_v22  ;;  %4325 = vmatpush1.bf16.msra.mxu1 (!%p4041_p1), %v4768_v22  ;;  %v4774_v40 = vld [vmem:[#allocation26 + $0x70] ss:$8 sps:$4 sm:$0xff] (!%p4041_p1)  }
0x1216   : > { %v3291_v42 = vadd.f32 %v4138_v38, %v4008_v33  ;;  %v4141_v25 = vadd.f32 %v4140_v46, %v4139_v41  ;;  %v4168_v60 = vpop.f32.mrb[47].mxu1  ;;  %3542 = vmatprep.subr.bf16.mxu0 (!%p4041_p1), %v4769_v45  ;;  %4318 = vmatprep.subr.bf16.mxu1 (!%p4041_p1), %v4769_v45  ;;  %v4772_v38 = vld [vmem:[#allocation26 + $0x74] ss:$8 sps:$4 sm:$0xff] (!%p4041_p1)  }
0x1217   : > { %v4169_v28 = vadd.f32 %v4168_v60, %v4167_v59 }
0x1218   : > { %v3340_v30 = vadd.f32 %v4166_v24, %v3291_v42  ;;  %v3294_v7 = vadd.f32 %v4141_v25, %v4008_v33 }
0x1219   : > { %3543 = vmatpush1.bf16.msra.mxu0 (!%p4041_p1), %v4771_v37  ;;  %4326 = vmatpush1.bf16.msra.mxu1 (!%p4041_p1), %v4771_v37 }
0x121a   : > { %v3354_v49 = vadd.f32 %v3340_v30, %v6337_v50  ;;  %v3343_v29 = vadd.f32 %v4169_v28, %v3294_v7  ;;  %3544 = vmatprep.subr.bf16.mxu0 (!%p4041_p1), %v4772_v38  ;;  %4319 = vmatprep.subr.bf16.mxu1 (!%p4041_p1), %v4772_v38 }
0x121c   : > { %3358 = vst [vmem:[#allocation2] sm:$0xff] %v3354_v49  ;;  %v3355_v9 = vadd.f32 %v3343_v29, %v6339_v55  ;;  %3368 = vadd.xlane.f32.xlu0 (!%p4041_p1), %v3354_v49 }
0x121d   : > { %3545 = vmatpush1.bf16.msra.mxu0 (!%p4041_p1), %v4774_v40  ;;  %4327 = vmatpush1.bf16.msra.mxu1 (!%p4041_p1), %v4774_v40 }
0x121e   : > { %3359 = vst [vmem:[#allocation2 + $0x8] sm:$0xff] %v3355_v9 }
0x1220   : > { %v4142_v4 = vpop.f32.mrb[56].mxu0  ;;  %3370 = vadd.xlane.f32.xlu0 (!%p4041_p1), %v3355_v9 }
0x1221   : > { %v4143_v11 = vpop.f32.mrb[57].mxu0 }
0x1222   : > { %v4144_v36 = vadd.f32 %v4143_v11, %v4142_v4  ;;  %v4145_v12 = vpop.f32.mrb[58].mxu0  ;;  %v4042_v11 = vld [vmem:[#allocation23] ss:$0 sm:$0xff] (!%p4041_p1) }
0x1223   : > { %v4170_v2 = vpop.f32.mrb[48].mxu1  ;;  %v4146_v27 = vpop.f32.mrb[59].mxu0 }
0x1224   : > { %v3299_v61 = vadd.f32 %v4144_v36, %v4008_v33  ;;  %v4171_v39 = vpop.f32.mrb[49].mxu1  ;;  %v4147_v43 = vadd.f32 %v4146_v27, %v4145_v12 }
0x1225   : > { %v4172_v31 = vadd.f32 %v4171_v39, %v4170_v2  ;;  %v4173_v32 = vpop.f32.mrb[50].mxu1 }
0x1226   : > { %v3302_v47 = vadd.f32 %v4147_v43, %v4008_v33  ;;  %v4174_v51 = vpop.f32.mrb[51].mxu1  ;;  %v5352_v33 = vmov (!%p4041_p1), 0  }
0x1227   : > { %v3348_v62 = vadd.f32 %v4172_v31, %v3299_v61  ;;  %v4175_v50 = vadd.f32 %v4174_v51, %v4173_v32  ;;  %3365 = sbr.rel (%p4041_p1) target bundleno = 5184 (0x1440), region = 148  ;;  %3562 = vmatprep.mubr.bf16.mxu0 (!%p4041_p1), %v5352_v33  ;;  %3572 = vmatprep.mubr.bf16.mxu1 (!%p4041_p1), %v5352_v33  ;;  %v4043_v61 = vld [vmem:[#allocation24] ss:$0 sm:$0xff] (!%p4041_p1) }
0x1229   : > { %v3356_v53 = vadd.f32 %v3348_v62, %v6342_v56  ;;  %v3351_v57 = vadd.f32 %v4175_v50, %v3302_v47 }
0x122b   : > { %3360 = vst [vmem:[#allocation2 + $0x10] sm:$0xff] %v3356_v53  ;;  %v3357_v55 = vadd.f32 %v3351_v57, %v6346_v18  ;;  %3372 = vadd.xlane.f32.xlu1 (!%p4041_p1), %v3356_v53 }
0x122d   : > { %3361 = vst [vmem:[#allocation2 + $0x18] sm:$0xff] %v3357_v55 }
0x122f   : > { %3374 = vadd.xlane.f32.xlu1 %v3357_v55 }
0x12a9   : > { %v3369_v0 = vpop.xlane.xlu0 %3368 }
0x12aa   : > { %v3376_v1 = vmul.f32 0.0078125, %v3369_v0 }
0x12ac   : > { %v6575_v6 = vsub.f32 %v3354_v49, %v3376_v1 }
0x12ad   : > { %v3371_v10 = vpop.xlane.xlu0 %3370 }
0x12ae   : > { %v3377_v15 = vmul.f32 0.0078125, %v3371_v10  ;;  %v3384_v8 = vmul.f32 %v6575_v6, %v6575_v6 }
0x12b0   : > { %v6581_v20 = vsub.f32 %v3355_v9, %v3377_v15  ;;  %3388 = vadd.xlane.f32.xlu0 %v3384_v8 }
0x12b2   : > { %v3385_v26 = vmul.f32 %v6581_v20, %v6581_v20 }
0x12b4   : > { %3390 = vadd.xlane.f32.xlu1 %v3385_v26 }
0x12b8   : > { %v3373_v56 = vpop.xlane.xlu1 %3372 }
0x12b9   : > { %v3378_v3 = vmul.f32 0.0078125, %v3373_v56 }
0x12bb   : > { %v6577_v18 = vsub.f32 %v3356_v53, %v3378_v3 }
0x12bc   : > { %v3375_v23 = vpop.xlane.xlu1 %3374 }
0x12bd   : > { %v3379_v13 = vmul.f32 0.0078125, %v3375_v23  ;;  %v3386_v14 = vmul.f32 %v6577_v18, %v6577_v18 }
0x12bf   : > { %v6583_v5 = vsub.f32 %v3357_v55, %v3379_v13  ;;  %3392 = vadd.xlane.f32.xlu0 %v3386_v14 }
0x12c1   : > { %v3387_v16 = vmul.f32 %v6583_v5, %v6583_v5 }
0x12c3   : > { %3394 = vadd.xlane.f32.xlu1 %v3387_v16 }
0x133d   : > { %v3389_v41 = vpop.xlane.xlu0 %3388 }
0x133e   : > { %v3396_v24 = vmul.f32 0.0078125, %v3389_v41 }
0x1340   : > { %v3400_v59 = vadd.f32 1e-05, %v3396_v24 }
0x1341   : > { %v3391_v46 = vpop.xlane.xlu1 %3390 }
0x1342   : > { %4775 = vrsqrt.f32 %v3400_v59  ;;  %v3397_v25 = vmul.f32 0.0078125, %v3391_v46 }
0x1344   : > { %v3401_v28 = vadd.f32 1e-05, %v3397_v25 }
0x1346   : > { %4777 = vrsqrt.f32 %v3401_v28 }
0x134c   : > { %v3393_v42 = vpop.xlane.xlu0 %3392  ;;  %v4776_v9 = vpop.eup %4775 }
0x134d   : > { %v3398_v60 = vmul.f32 0.0078125, %v3393_v42  ;;  %v3408_v4 = vmul.f32 %v4776_v9, %v6575_v6 }
0x134f   : > { %v3402_v30 = vadd.f32 1e-05, %v3398_v60  ;;  %v3418_v27 = vmul.f32 %v4042_v11, %v3408_v4 }
0x1350   : > { %v3395_v7 = vpop.xlane.xlu1 %3394  ;;  %v4778_v36 = vpop.eup %4777 }
0x1351   : > { %v3399_v49 = vmul.f32 0.0078125, %v3395_v7  ;;  %4779 = vrsqrt.f32 %v3402_v30  ;;  %v3409_v2 = vmul.f32 %v4778_v36, %v6581_v20  ;;  %v3428_v32 = vadd.f32 %v4043_v61, %v3418_v27 }
0x1353   : > { %v3403_v29 = vadd.f32 1e-05, %v3399_v49  ;;  %v3419_v43 = vmul.f32 %v4042_v11, %v3409_v2 }
0x1355   : > { %4781 = vrsqrt.f32 %v3403_v29  ;;  %v3429_v47 = vadd.f32 %v4043_v61, %v3419_v43 }
0x1357   : > { %v3432_v50 = vpack.c.bf16 %v3429_v47, %v3428_v32 }
0x1359   : > { %3563 = vmatmul.mubr.bf16.vlgmr.msra.gmra.mrb[0].mxu0 %v3432_v50 }
0x135b   : > { %v4780_v12 = vpop.eup %4779 }
0x135c   : > { %v3410_v39 = vmul.f32 %v4780_v12, %v6577_v18 }
0x135e   : > { %v3420_v62 = vmul.f32 %v4042_v11, %v3410_v39 }
0x135f   : > { %v4782_v31 = vpop.eup %4781 }
0x1360   : > { %v3411_v51 = vmul.f32 %v4782_v31, %v6583_v5  ;;  %v3430_v57 = vadd.f32 %v4043_v61, %v3420_v62 }
0x1362   : > { %v3421_v53 = vmul.f32 %v4042_v11, %v3411_v51 }
0x1364   : > { %v3431_v55 = vadd.f32 %v4043_v61, %v3421_v53 }
0x1366   : > { %v3433_v58 = vpack.c.bf16 %v3431_v55, %v3430_v57 }
0x1368   : > { %3573 = vmatmul.mubr.bf16.vlgmr.msra.gmra.mrb[0].mxu1 %v3433_v58 }
0x142c   : > { %v3564_v63 = vpop.f32.mrb[0].mxu0 }
0x142d   : > { %3583 = vst [vmem:[#allocation27] sm:$0xff] %v3564_v63  ;;  %v3566_v0 = vpop.f32.mrb[1].mxu0 }
0x142e   : > { %3584 = vst [vmem:[#allocation27 + $0x8] sm:$0xff] %v3566_v0  ;;  %v3568_v56 = vpop.f32.mrb[2].mxu0 }
0x142f   : > { %3585 = vst [vmem:[#allocation27 + $0x10] sm:$0xff] %v3568_v56  ;;  %v3570_v1 = vpop.f32.mrb[3].mxu0 }
0x1430   : > { %3586 = vst [vmem:[#allocation27 + $0x18] sm:$0xff] %v3570_v1 }
0x143b   : > { %v3574_v3 = vpop.f32.mrb[0].mxu1 }
0x143c   : > { %3587 = vst [vmem:[#allocation27 + $0x20] sm:$0xff] %v3574_v3  ;;  %v3576_v6 = vpop.f32.mrb[1].mxu1 }
0x143d   : > { %3588 = vst [vmem:[#allocation27 + $0x28] sm:$0xff] %v3576_v6  ;;  %v3578_v18 = vpop.f32.mrb[2].mxu1 }
0x143e   : > { %3589 = vst [vmem:[#allocation27 + $0x30] sm:$0xff] %v3578_v18  ;;  %v3580_v10 = vpop.f32.mrb[3].mxu1 }
0x143f   : > { %3590 = vst [vmem:[#allocation27 + $0x38] sm:$0xff] %v3580_v10 }
0x1440 PF: > { %s6739_s23 = sld [smem:[#allocation40_spill]]  ;;  %s5353_s21 = smov [#allocation27]  }
0x1441   : > { %s3597_s29 = sshll.u32 %s5353_s21, 4  ;;  %s3598_s29 = int_to_ptr.vmem [resolvable:$true] %s3597_s29 }
0x1442   : > { %s5225_s11 = scalar_lea.vmem %s3598_s29, 1024  ;;  %p5232_p12 = scmp.lt.s32.totalorder %s3598_s29, %s3598_s29 }
0x1443   : > { %p5226_p13 = scmp.ne.s32.totalorder %s3598_s29, %s5225_s11  ;;  %p5233_p10 = scmp.lt.s32.totalorder %s5225_s11, %s5225_s11 }
0x1445   : > { %p5234_p9 = por %p5233_p10, %p5232_p12 }
0x1446   : > { %p4429_p8 = scmp.eq.s32.totalorder %s6739_s23, 1 }
0x1448   : > { %p5227_p2 = pnand %p5226_p13, %p4429_p8 }
0x144a   : > { %p5228_p7 = pneg %p5227_p2 }
0x144c   : > { %p5235_p4 = pnand %p5234_p9, %p5228_p7 }
0x144e   : > { %5238 = shalt.err (!%p5235_p4)
}
0x144f   : > { %s6740_s5 = sld [smem:[#allocation52_spill]] }
0x1455   : > { %s5239_s1 = scalar_lea.hbm %s6740_s5, 1024 }
0x1456   : > { %p5240_p3 = scmp.ne.s32.totalorder %s6740_s5, %s5239_s1  ;;  %p5245_p0 = scmp.lt.u32.totalorder %s5239_s1, %s6740_s5 }
0x1458   : > { %p5241_p5 = pnand %p5240_p3, %p4429_p8 }
0x145a   : > { %p5242_p6 = pneg %p5241_p5 }
0x145c   : > { %p5247_p11 = pnand %p5245_p0, %p5242_p6 }
0x145e   : > { %5250 = shalt.err (!%p5247_p11)
}
0x145f   : > { %s5354_s15 = smov 256   ;;  %s5355_s12 = smov 16  }
0x1460   : > { %4370 = dma.vmem_to_hbm [thread:$0]  (%p4429_p8), %s3598_s29, 1024, %s6740_s5, [#allocation5], %s5354_s15, %s5354_s15, %s5355_s12  }
0x1461   : > { %5304 = dma.done.wait (%p4429_p8), [#allocation5], 1024  }
0x1462   : > { %5306 = vsyncadd (%p4429_p8), [#allocation5], 4294966272 }
0x1463 PF: > { %s6741_s21 = sld [smem:[#allocation41_spill]]  ;;  %s6742_s18 = sld [smem:[#allocation38_spill]] }
0x1464   : > { %s6743_s19 = sld [smem:[#allocation39_spill]]  ;;  %s6744_s20 = sld [smem:[#allocation42_spill]] }
0x1469   : > { %p43_p1 = scmp.ge.s32.totalorder %s6741_s21, 4  }
0x146b   :  { %45 = sbr.rel (!%p43_p1) target bundleno = 25 (0x19), region = 262 }
0x1472   :  { %3613 = vsyncpa [#allocation4], 1 }
0x1473   :  { %3615 = vsyncpa [#allocation4 + $0x1], 1 }
0x1474   :  { %3616 = vsyncpa [#allocation7], 1 }
0x1475   :  { %3618 = vsyncpa [#allocation7 + $0x1], 1 }
0x1476   :  { %3619 = vsyncpa [#allocation10], 1 }
0x1477   :  { %3621 = vsyncpa [#allocation10 + $0x1], 1 }
0x1478   :  { %3622 = vsyncpa [#allocation13], 1 }
0x1479   :  { %3624 = vsyncpa [#allocation13 + $0x1], 1 }
0x147a   :  { %3625 = vsyncpa [#allocation16], 1 }
0x147b   :  { %3627 = vsyncpa [#allocation16 + $0x1], 1 }
0x147c   :  { %3628 = vsyncpa [#allocation19], 1 }
0x147d   :  { %3630 = vsyncpa [#allocation19 + $0x1], 1 }
0x147e   :  { %3631 = vsyncpa [#allocation22], 1 }
0x147f   :  { %3633 = vsyncpa [#allocation22 + $0x1], 1 }
0x1480   :  { %3634 = vsyncpa [#allocation25], 1 }
0x1481   :  { %3635 = vsyncpa [#allocation5], 1 }
0x1482   :  { %3637 = vsyncpa [#allocation5 + $0x1], 1 }

</bundles_post_ra>
